<compile_context>
chip_gen: v6e
topology: v6e:2x2x1
jax: 0.10.0
libtpu: 0.0.40
codegen_flags: <defaults>
</compile_context>

<pallas_src>
import jax
import jax.numpy as jnp
from jax import lax
from jax.experimental import pallas as pl
from jax.experimental.pallas import tpu as pltpu

D_MODEL = 32
NHEAD = 4
DIM_FF = 64
HEAD_DIM = D_MODEL // NHEAD
LN_EPS = 1e-5


# ----------------------------------------------------------------------------
# In-kernel helpers
# ----------------------------------------------------------------------------
def _layer_norm(x, g, b):
    m = jnp.mean(x, axis=-1, keepdims=True)
    c = x - m
    var = jnp.mean(c * c, axis=-1, keepdims=True)
    return c * lax.rsqrt(var + LN_EPS) * g + b


def _mha_core(pq, pk, pv, wo, bo):
    """Multi-head attention core on packed projection results.

    pq: (Lq, 3D) rows whose cols [0:D]   hold the projected queries  (x @ Wq + bq)
    pk: (Lk, 3D) rows whose cols [D:2D]  hold the projected keys     (x @ Wk + bk)
    pv: (Lk, 3D) rows whose cols [2D:3D] hold the projected values   (x @ Wv + bv)
    wo: (D, D) output projection, bo: (1, D) output bias.
    Returns (Lq, D).
    """
    D = D_MODEL
    hd = HEAD_DIM
    Lq = pq.shape[0]
    scale = 1.0 / (hd ** 0.5)

    # Per-head score blocks stacked along sublanes -> ONE softmax for all heads.
    s_blocks = []
    for h in range(NHEAD):
        qh = pq[:, h * hd:(h + 1) * hd]                     # (Lq, hd)
        kh = pk[:, D + h * hd: D + (h + 1) * hd]            # (Lk, hd)
        s_blocks.append(
            lax.dot_general(qh, kh, (((1,), (1,)), ((), ())),
                            preferred_element_type=jnp.float32))   # q @ k^T
    s = jnp.concatenate(s_blocks, axis=0) * scale           # (H*Lq, Lk)
    s = s - jnp.max(s, axis=-1, keepdims=True)
    e = jnp.exp(s)
    a = e / jnp.sum(e, axis=-1, keepdims=True)

    # Per-head PV + output projection accumulated over heads (sublane-aligned
    # slices of `a` and of Wo rows only; no lane-sliced weights anywhere).
    out = bo                                                # (1, D) broadcasts
    for h in range(NHEAD):
        vh = pv[:, 2 * D + h * hd: 2 * D + (h + 1) * hd]    # (Lk, hd)
        oh = jnp.dot(a[h * Lq:(h + 1) * Lq, :], vh,
                     preferred_element_type=jnp.float32)    # (Lq, hd)
        out = out + jnp.dot(oh, wo[h * hd:(h + 1) * hd, :],
                            preferred_element_type=jnp.float32)
    return out


# ----------------------------------------------------------------------------
# Fused full-layer Pallas kernel (single invocation, whole batch)
# ----------------------------------------------------------------------------
def fused_layer_kernel(
    t_ref, v_ref, p_ref, ln_ref,
    t_qkv_w_ref, t_qkv_b_ref, t_wo_ref, t_bo_ref,
    c_qkv_w_ref, c_qkv_b_ref, c_wo_ref, c_bo_ref,
    v_qkv_w_ref, v_qkv_b_ref, v_wo_ref, v_bo_ref,
    v_w1_ref, v_b1_ref, v_w2_ref, v_b2_ref,
    t_w1_ref, t_b1_ref, t_w2_ref, t_b2_ref,
    t_out_ref, v_out_ref,
):
    Lt, B, _ = t_ref.shape
    Lv = v_ref.shape[0]
    BLv = B * Lv

    # ---- hoisted, batch-independent weight loads ----
    ln = ln_ref[...]                                       # (8, D)
    tw, tb_, two, tbo = (t_qkv_w_ref[...], t_qkv_b_ref[...],
                         t_wo_ref[...], t_bo_ref[...])
    cw, cb_, cwo, cbo = (c_qkv_w_ref[...], c_qkv_b_ref[...],
                         c_wo_ref[...], c_bo_ref[...])
    vw, vb_, vwo, vbo = (v_qkv_w_ref[...], v_qkv_b_ref[...],
                         v_wo_ref[...], v_bo_ref[...])

    # ---- gather batch-major 2-D slabs from the seq-first (L, B, D) refs.
    #      (in-VMEM sublane shuffles only -- no HBM traffic, no XLA transpose) ----
    t_all = jnp.concatenate([t_ref[:, b, :] for b in range(B)], axis=0)   # (B*Lt, D)
    v_all = jnp.concatenate([v_ref[:, b, :] for b in range(B)], axis=0)   # (B*Lv, D)
    p_all = jnp.concatenate([p_ref[:, b, :] for b in range(B)], axis=0)   # (B*Lv, D)

    # ---- pre-norms + positional embedding (row-wise, batch-folded) ----
    img2 = _layer_norm(v_all, ln[2:3, :], ln[3:4, :])      # v_norm1
    Qv = img2 + p_all                                      # Qv = Kv = img2 + pos
    t2 = _layer_norm(t_all, ln[0:1, :], ln[1:2, :])        # t_norm1

    # ---- text self-attention: one full-width (D,3D) QKV GEMM for all batches ----
    tproj = jnp.dot(t2, tw, preferred_element_type=jnp.float32) + tb_     # (B*Lt, 3D)
    text_att = jnp.concatenate(
        [_mha_core(tproj[b * Lt:(b + 1) * Lt],
                   tproj[b * Lt:(b + 1) * Lt],
                   tproj[b * Lt:(b + 1) * Lt], two, tbo)
         for b in range(B)], axis=0)                                       # (B*Lt, D)

    # ---- cross attention: Q = Qv, K = V = text_att.
    #      Stack both streams along sublanes -> ONE projection GEMM. ----
    c_lhs = jnp.concatenate([Qv, text_att], axis=0)                        # (B*Lv+B*Lt, D)
    cproj = jnp.dot(c_lhs, cw, preferred_element_type=jnp.float32) + cb_
    cross_att = jnp.concatenate(
        [_mha_core(cproj[b * Lv:(b + 1) * Lv],
                   cproj[BLv + b * Lt: BLv + (b + 1) * Lt],
                   cproj[BLv + b * Lt: BLv + (b + 1) * Lt], cwo, cbo)
         for b in range(B)], axis=0)                                       # (B*Lv, D)

    # ---- visual self-attention: Q = Qv + cross, K = Qv, V = img2.
    #      Stack the three query/key/value sources -> ONE projection GEMM. ----
    Qv2 = Qv + cross_att
    v_lhs = jnp.concatenate([Qv2, Qv, img2], axis=0)                       # (3*B*Lv, D)
    vproj = jnp.dot(v_lhs, vw, preferred_element_type=jnp.float32) + vb_
    vis_att = jnp.concatenate(
        [_mha_core(vproj[b * Lv:(b + 1) * Lv],
                   vproj[BLv + b * Lv: BLv + (b + 1) * Lv],
                   vproj[2 * BLv + b * Lv: 2 * BLv + (b + 1) * Lv], vwo, vbo)
         for b in range(B)], axis=0)                                       # (B*Lv, D)

    # ---- residuals (dropout = identity in eval mode) ----
    v_res = v_all + vis_att
    t_res = t_all + text_att

    # ---- FFNs (pre-norm -> linear1 -> relu -> linear2 -> residual), batch-folded ----
    v2n = _layer_norm(v_res, ln[6:7, :], ln[7:8, :])       # v_norm2
    t2n = _layer_norm(t_res, ln[4:5, :], ln[5:6, :])       # t_norm2
    v_h = jnp.maximum(jnp.dot(v2n, v_w1_ref[...],
                              preferred_element_type=jnp.float32) + v_b1_ref[...], 0.0)
    v_ff = jnp.dot(v_h, v_w2_ref[...],
                   preferred_element_type=jnp.float32) + v_b2_ref[...]
    t_h = jnp.maximum(jnp.dot(t2n, t_w1_ref[...],
                              preferred_element_type=jnp.float32) + t_b1_ref[...], 0.0)
    t_ff = jnp.dot(t_h, t_w2_ref[...],
                   preferred_element_type=jnp.float32) + t_b2_ref[...]

    t_fin = (t_res + t_ff).astype(t_out_ref.dtype)         # (B*Lt, D)
    v_fin = (v_res + v_ff).astype(v_out_ref.dtype)         # (B*Lv, D)

    # ---- scatter back into the seq-first (L, B, D) outputs ----
    for b in range(B):
        t_out_ref[:, b, :] = t_fin[b * Lt:(b + 1) * Lt, :]
        v_out_ref[:, b, :] = v_fin[b * Lv:(b + 1) * Lv, :]


# ----------------------------------------------------------------------------
# Parameter packing (done once, outside the hot path)
# ----------------------------------------------------------------------------
def pack_params(params):
    def pack_mha(p):
        qkv_w = jnp.concatenate([p["wq"], p["wk"], p["wv"]], axis=1).astype(jnp.float32)   # (D, 3D)
        qkv_b = jnp.concatenate([p["bq"], p["bk"], p["bv"]])[None, :].astype(jnp.float32)  # (1, 3D)
        return qkv_w, qkv_b, p["wo"].astype(jnp.float32), p["bo"][None, :].astype(jnp.float32)

    ln = jnp.stack([
        params["t_norm1_g"], params["t_norm1_b"],
        params["v_norm1_g"], params["v_norm1_b"],
        params["t_norm2_g"], params["t_norm2_b"],
        params["v_norm2_g"], params["v_norm2_b"],
    ], axis=0).astype(jnp.float32)                                                          # (8, D)

    t_qkv_w, t_qkv_b, t_wo, t_bo = pack_mha(params["t_attn"])
    c_qkv_w, c_qkv_b, c_wo, c_bo = pack_mha(params["cross_attn"])
    v_qkv_w, v_qkv_b, v_wo, v_bo = pack_mha(params["v_attn"])
    return dict(
        ln=ln,
        t_qkv_w=t_qkv_w, t_qkv_b=t_qkv_b, t_wo=t_wo, t_bo=t_bo,
        c_qkv_w=c_qkv_w, c_qkv_b=c_qkv_b, c_wo=c_wo, c_bo=c_bo,
        v_qkv_w=v_qkv_w, v_qkv_b=v_qkv_b, v_wo=v_wo, v_bo=v_bo,
        v_w1=params["v_w1"].astype(jnp.float32), v_b1=params["v_b1"][None, :].astype(jnp.float32),
        v_w2=params["v_w2"].astype(jnp.float32), v_b2=params["v_b2"][None, :].astype(jnp.float32),
        t_w1=params["t_w1"].astype(jnp.float32), t_b1=params["t_b1"][None, :].astype(jnp.float32),
        t_w2=params["t_w2"].astype(jnp.float32), t_b2=params["t_b2"][None, :].astype(jnp.float32),
    )


# ----------------------------------------------------------------------------
# Public API: native seq-first (L, B, D) like PyTorch nn.MultiheadAttention
# ----------------------------------------------------------------------------
def transformer_encoder_layer_packed(text_src, img_src, pos, pk):
    if pos is None:
        pos = jnp.zeros_like(img_src)
    t = text_src.astype(jnp.float32)     # (Lt, B, D) -- no transpose
    v = img_src.astype(jnp.float32)      # (Lv, B, D)
    p = pos.astype(jnp.float32)          # (Lv, B, D)

    Lt, B, D = t.shape
    Lv = v.shape[0]

    def full_spec(shape):
        # Whole-array block, resident for the single grid step.
        return pl.BlockSpec(shape, lambda i, _n=len(shape): (0,) * _n)

    in_arrays = [
        t, v, p, pk["ln"],
        pk["t_qkv_w"], pk["t_qkv_b"], pk["t_wo"], pk["t_bo"],
        pk["c_qkv_w"], pk["c_qkv_b"], pk["c_wo"], pk["c_bo"],
        pk["v_qkv_w"], pk["v_qkv_b"], pk["v_wo"], pk["v_bo"],
        pk["v_w1"], pk["v_b1"], pk["v_w2"], pk["v_b2"],
        pk["t_w1"], pk["t_b1"], pk["t_w2"], pk["t_b2"],
    ]
    in_specs = [full_spec(a.shape) for a in in_arrays]
    out_specs = (full_spec((Lt, B, D)), full_spec((Lv, B, D)))

    t_out, v_out = pl.pallas_call(
        fused_layer_kernel,
        grid=(1,),
        in_specs=in_specs,
        out_specs=out_specs,
        out_shape=(
            jax.ShapeDtypeStruct((Lt, B, D), jnp.float32),
            jax.ShapeDtypeStruct((Lv, B, D), jnp.float32),
        ),
        compiler_params=pltpu.CompilerParams(dimension_semantics=("arbitrary",)),
    )(*in_arrays)
    return t_out, v_out


def transformer_encoder_layer(text_src, img_src, pos, params):
    # Convenience wrapper taking unpacked PyTorch-style params.
    return transformer_encoder_layer_packed(text_src, img_src, pos, pack_params(params))


# ----------------------------------------------------------------------------
# Pure-JAX reference (for correctness check)
# ----------------------------------------------------------------------------
def _ref_ln(x, g, b):
    m = jnp.mean(x, axis=-1, keepdims=True)
    var = jnp.mean((x - m) ** 2, axis=-1, keepdims=True)
    return (x - m) * lax.rsqrt(var + LN_EPS) * g + b


def _ref_mha(q, k, v, p):
    B, Lq, D = q.shape
    Lk = k.shape[1]
    H, hd = NHEAD, HEAD_DIM
    qp = (q @ p["wq"] + p["bq"]).reshape(B, Lq, H, hd)
    kp = (k @ p["wk"] + p["bk"]).reshape(B, Lk, H, hd)
    vp = (v @ p["wv"] + p["bv"]).reshape(B, Lk, H, hd)
    s = jnp.einsum("bqhd,bkhd->bhqk", qp, kp) / (hd ** 0.5)
    a = jax.nn.softmax(s, axis=-1)
    o = jnp.einsum("bhqk,bkhd->bqhd", a, vp).reshape(B, Lq, D)
    return o @ p["wo"] + p["bo"]


def _ref_layer(text_src, img_src, pos, params):
    t = jnp.transpose(text_src, (1, 0, 2))
    v = jnp.transpose(img_src, (1, 0, 2))
    p = jnp.transpose(pos, (1, 0, 2))
    img2 = _ref_ln(v, params["v_norm1_g"], params["v_norm1_b"])
    Qv = img2 + p
    t2 = _ref_ln(t, params["t_norm1_g"], params["t_norm1_b"])
    text_att = _ref_mha(t2, t2, t2, params["t_attn"])
    cross_att = _ref_mha(Qv, text_att, text_att, params["cross_attn"])
    vis_att = _ref_mha(Qv + cross_att, Qv, img2, params["v_attn"])
    v_out = v + vis_att
    t_out = t + text_att
    v2 = _ref_ln(v_out, params["v_norm2_g"], params["v_norm2_b"])
    t2b = _ref_ln(t_out, params["t_norm2_g"], params["t_norm2_b"])
    v2 = jnp.maximum(v2 @ params["v_w1"] + params["v_b1"], 0.0) @ params["v_w2"] + params["v_b2"]
    t2b = jnp.maximum(t2b @ params["t_w1"] + params["t_b1"], 0.0) @ params["t_w2"] + params["t_b2"]
    return jnp.transpose(t_out + t2b, (1, 0, 2)), jnp.transpose(v_out + v2, (1, 0, 2))


# ----------------------------------------------------------------------------
# Deterministic parameter init
# ----------------------------------------------------------------------------
def _mha_params(key, d):
    ks = jax.random.split(key, 8)
    s = 0.1
    return dict(
        wq=jax.random.normal(ks[0], (d, d), jnp.float32) * s,
        wk=jax.random.normal(ks[1], (d, d), jnp.float32) * s,
        wv=jax.random.normal(ks[2], (d, d), jnp.float32) * s,
        wo=jax.random.normal(ks[3], (d, d), jnp.float32) * s,
        bq=jax.random.normal(ks[4], (d,), jnp.float32) * s,
        bk=jax.random.normal(ks[5], (d,), jnp.float32) * s,
        bv=jax.random.normal(ks[6], (d,), jnp.float32) * s,
        bo=jax.random.normal(ks[7], (d,), jnp.float32) * s,
    )


def init_params(key, d, ff):
    ks = jax.random.split(key, 16)
    s = 0.1
    return dict(
        t_attn=_mha_params(ks[0], d),
        cross_attn=_mha_params(ks[1], d),
        v_attn=_mha_params(ks[2], d),
        v_norm1_g=jnp.ones((d,), jnp.float32), v_norm1_b=jnp.zeros((d,), jnp.float32),
        v_norm2_g=jnp.ones((d,), jnp.float32), v_norm2_b=jnp.zeros((d,), jnp.float32),
        t_norm1_g=jnp.ones((d,), jnp.float32), t_norm1_b=jnp.zeros((d,), jnp.float32),
        t_norm2_g=jnp.ones((d,), jnp.float32), t_norm2_b=jnp.zeros((d,), jnp.float32),
        v_w1=jax.random.normal(ks[3], (d, ff), jnp.float32) * s,
        v_b1=jax.random.normal(ks[4], (ff,), jnp.float32) * s,
        v_w2=jax.random.normal(ks[5], (ff, d), jnp.float32) * s,
        v_b2=jax.random.normal(ks[6], (d,), jnp.float32) * s,
        t_w1=jax.random.normal(ks[7], (d, ff), jnp.float32) * s,
        t_b1=jax.random.normal(ks[8], (ff,), jnp.float32) * s,
        t_w2=jax.random.normal(ks[9], (ff, d), jnp.float32) * s,
        t_b2=jax.random.normal(ks[10], (d,), jnp.float32) * s,
    )


# TODO(synk): dropout layers are treated as identity (inference mode); training-mode
# stochastic dropout and attention masks (unused by forward_pre) are not implemented.

if __name__ == "__main__":
    B, Lt, Lv = 2, 8, 16
    key = jax.random.PRNGKey(0)
    k_t, k_v, k_p, k_w = jax.random.split(key, 4)

    text_src = jax.random.normal(k_t, (Lt, B, D_MODEL), jnp.float32)
    img_src = jax.random.normal(k_v, (Lv, B, D_MODEL), jnp.float32)
    pos = jax.random.normal(k_p, (Lv, B, D_MODEL), jnp.float32)
    params = init_params(k_w, D_MODEL, DIM_FF)

    # Pack weights once (outside the hot jitted path).
    packed = pack_params(params)

    fwd = jax.jit(transformer_encoder_layer_packed)
    t_out, v_out = fwd(text_src, img_src, pos, packed)
    jax.block_until_ready((t_out, v_out))

    # correctness check against pure-JAX reference
    t_ref, v_ref = _ref_layer(text_src, img_src, pos, params)
    assert t_out.shape == (Lt, B, D_MODEL) and v_out.shape == (Lv, B, D_MODEL)
    assert jnp.allclose(t_out, t_ref, atol=1e-4, rtol=1e-4)
    assert jnp.allclose(v_out, v_ref, atol=1e-4, rtol=1e-4)

    print("KERNEL_OK")
</pallas_src>

<mosaic_0001>
module attributes {stable_mosaic.version = 11 : i64} {
  func.func @fused_layer_kernel(%arg0: i32, %arg1: memref<8x2x32xf32, #tpu.memory_space<vmem>>, %arg2: memref<16x2x32xf32, #tpu.memory_space<vmem>>, %arg3: memref<16x2x32xf32, #tpu.memory_space<vmem>>, %arg4: memref<8x32xf32, #tpu.memory_space<vmem>>, %arg5: memref<32x96xf32, #tpu.memory_space<vmem>>, %arg6: memref<1x96xf32, #tpu.memory_space<vmem>>, %arg7: memref<32x32xf32, #tpu.memory_space<vmem>>, %arg8: memref<1x32xf32, #tpu.memory_space<vmem>>, %arg9: memref<32x96xf32, #tpu.memory_space<vmem>>, %arg10: memref<1x96xf32, #tpu.memory_space<vmem>>, %arg11: memref<32x32xf32, #tpu.memory_space<vmem>>, %arg12: memref<1x32xf32, #tpu.memory_space<vmem>>, %arg13: memref<32x96xf32, #tpu.memory_space<vmem>>, %arg14: memref<1x96xf32, #tpu.memory_space<vmem>>, %arg15: memref<32x32xf32, #tpu.memory_space<vmem>>, %arg16: memref<1x32xf32, #tpu.memory_space<vmem>>, %arg17: memref<32x64xf32, #tpu.memory_space<vmem>>, %arg18: memref<1x64xf32, #tpu.memory_space<vmem>>, %arg19: memref<64x32xf32, #tpu.memory_space<vmem>>, %arg20: memref<1x32xf32, #tpu.memory_space<vmem>>, %arg21: memref<32x64xf32, #tpu.memory_space<vmem>>, %arg22: memref<1x64xf32, #tpu.memory_space<vmem>>, %arg23: memref<64x32xf32, #tpu.memory_space<vmem>>, %arg24: memref<1x32xf32, #tpu.memory_space<vmem>>, %arg25: memref<8x2x32xf32, #tpu.memory_space<vmem>>, %arg26: memref<16x2x32xf32, #tpu.memory_space<vmem>>) attributes {dimension_semantics = [#tpu.dimension_semantics<arbitrary>], iteration_bounds = array<i64: 1>, scalar_prefetch = 0 : i64, scratch_operands = 0 : i64, tpu.core_type = #tpu.core_type<tc>, window_params = [{pipeline_mode = #tpu.pipeline_mode<synchronous>, transform_indices = @transform_0, window_bounds = array<i64: 8, 2, 32>}, {pipeline_mode = #tpu.pipeline_mode<synchronous>, transform_indices = @transform_1, window_bounds = array<i64: 16, 2, 32>}, {pipeline_mode = #tpu.pipeline_mode<synchronous>, transform_indices = @transform_2, window_bounds = array<i64: 16, 2, 32>}, {pipeline_mode = #tpu.pipeline_mode<synchronous>, transform_indices = @transform_3, window_bounds = array<i64: 8, 32>}, {pipeline_mode = #tpu.pipeline_mode<synchronous>, transform_indices = @transform_4, window_bounds = array<i64: 32, 96>}, {pipeline_mode = #tpu.pipeline_mode<synchronous>, transform_indices = @transform_5, window_bounds = array<i64: 1, 96>}, {pipeline_mode = #tpu.pipeline_mode<synchronous>, transform_indices = @transform_6, window_bounds = array<i64: 32, 32>}, {pipeline_mode = #tpu.pipeline_mode<synchronous>, transform_indices = @transform_7, window_bounds = array<i64: 1, 32>}, {pipeline_mode = #tpu.pipeline_mode<synchronous>, transform_indices = @transform_8, window_bounds = array<i64: 32, 96>}, {pipeline_mode = #tpu.pipeline_mode<synchronous>, transform_indices = @transform_9, window_bounds = array<i64: 1, 96>}, {pipeline_mode = #tpu.pipeline_mode<synchronous>, transform_indices = @transform_10, window_bounds = array<i64: 32, 32>}, {pipeline_mode = #tpu.pipeline_mode<synchronous>, transform_indices = @transform_11, window_bounds = array<i64: 1, 32>}, {pipeline_mode = #tpu.pipeline_mode<synchronous>, transform_indices = @transform_12, window_bounds = array<i64: 32, 96>}, {pipeline_mode = #tpu.pipeline_mode<synchronous>, transform_indices = @transform_13, window_bounds = array<i64: 1, 96>}, {pipeline_mode = #tpu.pipeline_mode<synchronous>, transform_indices = @transform_14, window_bounds = array<i64: 32, 32>}, {pipeline_mode = #tpu.pipeline_mode<synchronous>, transform_indices = @transform_15, window_bounds = array<i64: 1, 32>}, {pipeline_mode = #tpu.pipeline_mode<synchronous>, transform_indices = @transform_16, window_bounds = array<i64: 32, 64>}, {pipeline_mode = #tpu.pipeline_mode<synchronous>, transform_indices = @transform_17, window_bounds = array<i64: 1, 64>}, {pipeline_mode = #tpu.pipeline_mode<synchronous>, transform_indices = @transform_18, window_bounds = array<i64: 64, 32>}, {pipeline_mode = #tpu.pipeline_mode<synchronous>, transform_indices = @transform_19, window_bounds = array<i64: 1, 32>}, {pipeline_mode = #tpu.pipeline_mode<synchronous>, transform_indices = @transform_20, window_bounds = array<i64: 32, 64>}, {pipeline_mode = #tpu.pipeline_mode<synchronous>, transform_indices = @transform_21, window_bounds = array<i64: 1, 64>}, {pipeline_mode = #tpu.pipeline_mode<synchronous>, transform_indices = @transform_22, window_bounds = array<i64: 64, 32>}, {pipeline_mode = #tpu.pipeline_mode<synchronous>, transform_indices = @transform_23, window_bounds = array<i64: 1, 32>}, {pipeline_mode = #tpu.pipeline_mode<synchronous>, transform_indices = @transform_24, window_bounds = array<i64: 8, 2, 32>}, {pipeline_mode = #tpu.pipeline_mode<synchronous>, transform_indices = @transform_25, window_bounds = array<i64: 16, 2, 32>}]} {
    %c0 = arith.constant 0 : index
    %c0_0 = arith.constant 0 : index
    %0 = vector.load %arg4[%c0, %c0_0] : memref<8x32xf32, #tpu.memory_space<vmem>>, vector<8x32xf32>
    %c0_1 = arith.constant 0 : index
    %c0_2 = arith.constant 0 : index
    %1 = vector.load %arg5[%c0_1, %c0_2] : memref<32x96xf32, #tpu.memory_space<vmem>>, vector<32x96xf32>
    %c0_3 = arith.constant 0 : index
    %c0_4 = arith.constant 0 : index
    %2 = vector.load %arg6[%c0_3, %c0_4] : memref<1x96xf32, #tpu.memory_space<vmem>>, vector<1x96xf32>
    %c0_5 = arith.constant 0 : index
    %c0_6 = arith.constant 0 : index
    %3 = vector.load %arg7[%c0_5, %c0_6] : memref<32x32xf32, #tpu.memory_space<vmem>>, vector<32x32xf32>
    %c0_7 = arith.constant 0 : index
    %c0_8 = arith.constant 0 : index
    %4 = vector.load %arg8[%c0_7, %c0_8] : memref<1x32xf32, #tpu.memory_space<vmem>>, vector<1x32xf32>
    %c0_9 = arith.constant 0 : index
    %c0_10 = arith.constant 0 : index
    %5 = vector.load %arg9[%c0_9, %c0_10] : memref<32x96xf32, #tpu.memory_space<vmem>>, vector<32x96xf32>
    %c0_11 = arith.constant 0 : index
    %c0_12 = arith.constant 0 : index
    %6 = vector.load %arg10[%c0_11, %c0_12] : memref<1x96xf32, #tpu.memory_space<vmem>>, vector<1x96xf32>
    %c0_13 = arith.constant 0 : index
    %c0_14 = arith.constant 0 : index
    %7 = vector.load %arg11[%c0_13, %c0_14] : memref<32x32xf32, #tpu.memory_space<vmem>>, vector<32x32xf32>
    %c0_15 = arith.constant 0 : index
    %c0_16 = arith.constant 0 : index
    %8 = vector.load %arg12[%c0_15, %c0_16] : memref<1x32xf32, #tpu.memory_space<vmem>>, vector<1x32xf32>
    %c0_17 = arith.constant 0 : index
    %c0_18 = arith.constant 0 : index
    %9 = vector.load %arg13[%c0_17, %c0_18] : memref<32x96xf32, #tpu.memory_space<vmem>>, vector<32x96xf32>
    %c0_19 = arith.constant 0 : index
    %c0_20 = arith.constant 0 : index
    %10 = vector.load %arg14[%c0_19, %c0_20] : memref<1x96xf32, #tpu.memory_space<vmem>>, vector<1x96xf32>
    %c0_21 = arith.constant 0 : index
    %c0_22 = arith.constant 0 : index
    %11 = vector.load %arg15[%c0_21, %c0_22] : memref<32x32xf32, #tpu.memory_space<vmem>>, vector<32x32xf32>
    %c0_23 = arith.constant 0 : index
    %c0_24 = arith.constant 0 : index
    %12 = vector.load %arg16[%c0_23, %c0_24] : memref<1x32xf32, #tpu.memory_space<vmem>>, vector<1x32xf32>
    %c0_25 = arith.constant 0 : index
    %c0_26 = arith.constant 0 : index
    %c0_27 = arith.constant 0 : index
    %13 = vector.load %arg1[%c0_25, %c0_26, %c0_27] : memref<8x2x32xf32, #tpu.memory_space<vmem>>, vector<8x1x32xf32>
    %14 = vector.shape_cast %13 : vector<8x1x32xf32> to vector<8x32xf32>
    %c0_28 = arith.constant 0 : index
    %c1 = arith.constant 1 : index
    %c0_29 = arith.constant 0 : index
    %15 = vector.load %arg1[%c0_28, %c1, %c0_29] : memref<8x2x32xf32, #tpu.memory_space<vmem>>, vector<8x1x32xf32>
    %16 = vector.shape_cast %15 : vector<8x1x32xf32> to vector<8x32xf32>
    %17 = tpu.concatenate %14, %16 in 0 : vector<8x32xf32>, vector<8x32xf32> -> vector<16x32xf32>
    %c0_30 = arith.constant 0 : index
    %c0_31 = arith.constant 0 : index
    %c0_32 = arith.constant 0 : index
    %18 = vector.load %arg2[%c0_30, %c0_31, %c0_32] : memref<16x2x32xf32, #tpu.memory_space<vmem>>, vector<16x1x32xf32>
    %19 = vector.shape_cast %18 : vector<16x1x32xf32> to vector<16x32xf32>
    %c0_33 = arith.constant 0 : index
    %c1_34 = arith.constant 1 : index
    %c0_35 = arith.constant 0 : index
    %20 = vector.load %arg2[%c0_33, %c1_34, %c0_35] : memref<16x2x32xf32, #tpu.memory_space<vmem>>, vector<16x1x32xf32>
    %21 = vector.shape_cast %20 : vector<16x1x32xf32> to vector<16x32xf32>
    %22 = tpu.concatenate %19, %21 in 0 : vector<16x32xf32>, vector<16x32xf32> -> vector<32x32xf32>
    %c0_36 = arith.constant 0 : index
    %c0_37 = arith.constant 0 : index
    %c0_38 = arith.constant 0 : index
    %23 = vector.load %arg3[%c0_36, %c0_37, %c0_38] : memref<16x2x32xf32, #tpu.memory_space<vmem>>, vector<16x1x32xf32>
    %24 = vector.shape_cast %23 : vector<16x1x32xf32> to vector<16x32xf32>
    %c0_39 = arith.constant 0 : index
    %c1_40 = arith.constant 1 : index
    %c0_41 = arith.constant 0 : index
    %25 = vector.load %arg3[%c0_39, %c1_40, %c0_41] : memref<16x2x32xf32, #tpu.memory_space<vmem>>, vector<16x1x32xf32>
    %26 = vector.shape_cast %25 : vector<16x1x32xf32> to vector<16x32xf32>
    %27 = tpu.concatenate %24, %26 in 0 : vector<16x32xf32>, vector<16x32xf32> -> vector<32x32xf32>
    %28 = vector.extract_strided_slice %0 {offsets = [2, 0], sizes = [1, 32], strides = [1, 1]} : vector<8x32xf32> to vector<1x32xf32>
    %29 = vector.extract_strided_slice %0 {offsets = [3, 0], sizes = [1, 32], strides = [1, 1]} : vector<8x32xf32> to vector<1x32xf32>
    %cst = arith.constant dense<0.000000e+00> : vector<32xf32>
    %30 = vector.multi_reduction <add>, %22, %cst [1] : vector<32x32xf32> to vector<32xf32>
    %31 = vector.shape_cast %30 : vector<32xf32> to vector<32x1xf32>
    %cst_42 = arith.constant 3.200000e+01 : f32
    %32 = vector.broadcast %cst_42 : f32 to vector<32x1xf32>
    %33 = arith.divf %31, %32 : vector<32x1xf32>
    %34 = vector.broadcast %33 : vector<32x1xf32> to vector<32x32xf32>
    %35 = arith.subf %22, %34 : vector<32x32xf32>
    %36 = arith.mulf %35, %35 : vector<32x32xf32>
    %cst_43 = arith.constant dense<0.000000e+00> : vector<32xf32>
    %37 = vector.multi_reduction <add>, %36, %cst_43 [1] : vector<32x32xf32> to vector<32xf32>
    %38 = vector.shape_cast %37 : vector<32xf32> to vector<32x1xf32>
    %cst_44 = arith.constant 3.200000e+01 : f32
    %39 = vector.broadcast %cst_44 : f32 to vector<32x1xf32>
    %40 = arith.divf %38, %39 : vector<32x1xf32>
    %cst_45 = arith.constant 9.99999974E-6 : f32
    %41 = vector.broadcast %cst_45 : f32 to vector<32x1xf32>
    %42 = arith.addf %40, %41 : vector<32x1xf32>
    %43 = math.rsqrt %42 : vector<32x1xf32>
    %44 = vector.broadcast %43 : vector<32x1xf32> to vector<32x32xf32>
    %45 = arith.mulf %35, %44 : vector<32x32xf32>
    %46 = vector.broadcast %28 : vector<1x32xf32> to vector<32x32xf32>
    %47 = arith.mulf %45, %46 : vector<32x32xf32>
    %48 = vector.broadcast %29 : vector<1x32xf32> to vector<32x32xf32>
    %49 = arith.addf %47, %48 : vector<32x32xf32>
    %50 = arith.addf %49, %27 : vector<32x32xf32>
    %51 = vector.extract_strided_slice %0 {offsets = [0, 0], sizes = [1, 32], strides = [1, 1]} : vector<8x32xf32> to vector<1x32xf32>
    %52 = vector.extract_strided_slice %0 {offsets = [1, 0], sizes = [1, 32], strides = [1, 1]} : vector<8x32xf32> to vector<1x32xf32>
    %cst_46 = arith.constant dense<0.000000e+00> : vector<16xf32>
    %53 = vector.multi_reduction <add>, %17, %cst_46 [1] : vector<16x32xf32> to vector<16xf32>
    %54 = vector.shape_cast %53 : vector<16xf32> to vector<16x1xf32>
    %cst_47 = arith.constant 3.200000e+01 : f32
    %55 = vector.broadcast %cst_47 : f32 to vector<16x1xf32>
    %56 = arith.divf %54, %55 : vector<16x1xf32>
    %57 = vector.broadcast %56 : vector<16x1xf32> to vector<16x32xf32>
    %58 = arith.subf %17, %57 : vector<16x32xf32>
    %59 = arith.mulf %58, %58 : vector<16x32xf32>
    %cst_48 = arith.constant dense<0.000000e+00> : vector<16xf32>
    %60 = vector.multi_reduction <add>, %59, %cst_48 [1] : vector<16x32xf32> to vector<16xf32>
    %61 = vector.shape_cast %60 : vector<16xf32> to vector<16x1xf32>
    %cst_49 = arith.constant 3.200000e+01 : f32
    %62 = vector.broadcast %cst_49 : f32 to vector<16x1xf32>
    %63 = arith.divf %61, %62 : vector<16x1xf32>
    %cst_50 = arith.constant 9.99999974E-6 : f32
    %64 = vector.broadcast %cst_50 : f32 to vector<16x1xf32>
    %65 = arith.addf %63, %64 : vector<16x1xf32>
    %66 = math.rsqrt %65 : vector<16x1xf32>
    %67 = vector.broadcast %66 : vector<16x1xf32> to vector<16x32xf32>
    %68 = arith.mulf %58, %67 : vector<16x32xf32>
    %69 = vector.broadcast %51 : vector<1x32xf32> to vector<16x32xf32>
    %70 = arith.mulf %68, %69 : vector<16x32xf32>
    %71 = vector.broadcast %52 : vector<1x32xf32> to vector<16x32xf32>
    %72 = arith.addf %70, %71 : vector<16x32xf32>
    %cst_51 = arith.constant dense<0.000000e+00> : vector<16x96xf32>
    %73 = tpu.matmul %72, %1, %cst_51 {dimension_numbers = #tpu.dot_dimension_numbers<[1], [0], [0], [1], [0, 0, 1, 1], [], []>} : vector<16x32xf32>, vector<32x96xf32>, vector<16x96xf32> -> vector<16x96xf32>
    %74 = vector.broadcast %2 : vector<1x96xf32> to vector<16x96xf32>
    %75 = arith.addf %73, %74 : vector<16x96xf32>
    %76 = vector.extract_strided_slice %75 {offsets = [0, 0], sizes = [8, 96], strides = [1, 1]} : vector<16x96xf32> to vector<8x96xf32>
    %77 = vector.extract_strided_slice %75 {offsets = [0, 0], sizes = [8, 96], strides = [1, 1]} : vector<16x96xf32> to vector<8x96xf32>
    %78 = vector.extract_strided_slice %75 {offsets = [0, 0], sizes = [8, 96], strides = [1, 1]} : vector<16x96xf32> to vector<8x96xf32>
    %79 = vector.extract_strided_slice %76 {offsets = [0, 0], sizes = [8, 8], strides = [1, 1]} : vector<8x96xf32> to vector<8x8xf32>
    %80 = vector.extract_strided_slice %77 {offsets = [0, 32], sizes = [8, 8], strides = [1, 1]} : vector<8x96xf32> to vector<8x8xf32>
    %cst_52 = arith.constant dense<0.000000e+00> : vector<8x8xf32>
    %81 = tpu.matmul %79, %80, %cst_52 {dimension_numbers = #tpu.dot_dimension_numbers<[1], [1], [0], [0], [0, 0, 1, 0], [], []>} : vector<8x8xf32>, vector<8x8xf32>, vector<8x8xf32> -> vector<8x8xf32>
    %82 = vector.extract_strided_slice %76 {offsets = [0, 8], sizes = [8, 8], strides = [1, 1]} : vector<8x96xf32> to vector<8x8xf32>
    %83 = vector.extract_strided_slice %77 {offsets = [0, 40], sizes = [8, 8], strides = [1, 1]} : vector<8x96xf32> to vector<8x8xf32>
    %cst_53 = arith.constant dense<0.000000e+00> : vector<8x8xf32>
    %84 = tpu.matmul %82, %83, %cst_53 {dimension_numbers = #tpu.dot_dimension_numbers<[1], [1], [0], [0], [0, 0, 1, 0], [], []>} : vector<8x8xf32>, vector<8x8xf32>, vector<8x8xf32> -> vector<8x8xf32>
    %85 = vector.extract_strided_slice %76 {offsets = [0, 16], sizes = [8, 8], strides = [1, 1]} : vector<8x96xf32> to vector<8x8xf32>
    %86 = vector.extract_strided_slice %77 {offsets = [0, 48], sizes = [8, 8], strides = [1, 1]} : vector<8x96xf32> to vector<8x8xf32>
    %cst_54 = arith.constant dense<0.000000e+00> : vector<8x8xf32>
    %87 = tpu.matmul %85, %86, %cst_54 {dimension_numbers = #tpu.dot_dimension_numbers<[1], [1], [0], [0], [0, 0, 1, 0], [], []>} : vector<8x8xf32>, vector<8x8xf32>, vector<8x8xf32> -> vector<8x8xf32>
    %88 = vector.extract_strided_slice %76 {offsets = [0, 24], sizes = [8, 8], strides = [1, 1]} : vector<8x96xf32> to vector<8x8xf32>
    %89 = vector.extract_strided_slice %77 {offsets = [0, 56], sizes = [8, 8], strides = [1, 1]} : vector<8x96xf32> to vector<8x8xf32>
    %cst_55 = arith.constant dense<0.000000e+00> : vector<8x8xf32>
    %90 = tpu.matmul %88, %89, %cst_55 {dimension_numbers = #tpu.dot_dimension_numbers<[1], [1], [0], [0], [0, 0, 1, 0], [], []>} : vector<8x8xf32>, vector<8x8xf32>, vector<8x8xf32> -> vector<8x8xf32>
    %91 = tpu.concatenate %81, %84, %87, %90 in 0 : vector<8x8xf32>, vector<8x8xf32>, vector<8x8xf32>, vector<8x8xf32> -> vector<32x8xf32>
    %cst_56 = arith.constant 0.353553385 : f32
    %92 = vector.broadcast %cst_56 : f32 to vector<32x8xf32>
    %93 = arith.mulf %91, %92 : vector<32x8xf32>
    %cst_57 = arith.constant dense<0xFF800000> : vector<32xf32>
    %94 = vector.multi_reduction <maximumf>, %93, %cst_57 [1] : vector<32x8xf32> to vector<32xf32>
    %95 = vector.shape_cast %94 : vector<32xf32> to vector<32x1xf32>
    %96 = vector.broadcast %95 : vector<32x1xf32> to vector<32x8xf32>
    %97 = arith.subf %93, %96 : vector<32x8xf32>
    %98 = math.exp %97 : vector<32x8xf32>
    %cst_58 = arith.constant dense<0.000000e+00> : vector<32xf32>
    %99 = vector.multi_reduction <add>, %98, %cst_58 [1] : vector<32x8xf32> to vector<32xf32>
    %100 = vector.shape_cast %99 : vector<32xf32> to vector<32x1xf32>
    %101 = vector.broadcast %100 : vector<32x1xf32> to vector<32x8xf32>
    %102 = arith.divf %98, %101 : vector<32x8xf32>
    %103 = vector.extract_strided_slice %78 {offsets = [0, 64], sizes = [8, 8], strides = [1, 1]} : vector<8x96xf32> to vector<8x8xf32>
    %104 = vector.extract_strided_slice %102 {offsets = [0, 0], sizes = [8, 8], strides = [1, 1]} : vector<32x8xf32> to vector<8x8xf32>
    %cst_59 = arith.constant dense<0.000000e+00> : vector<8x8xf32>
    %105 = tpu.matmul %104, %103, %cst_59 {dimension_numbers = #tpu.dot_dimension_numbers<[1], [0], [0], [1], [0, 0, 1, 1], [], []>} : vector<8x8xf32>, vector<8x8xf32>, vector<8x8xf32> -> vector<8x8xf32>
    %106 = vector.extract_strided_slice %3 {offsets = [0, 0], sizes = [8, 32], strides = [1, 1]} : vector<32x32xf32> to vector<8x32xf32>
    %cst_60 = arith.constant dense<0.000000e+00> : vector<8x32xf32>
    %107 = tpu.matmul %105, %106, %cst_60 {dimension_numbers = #tpu.dot_dimension_numbers<[1], [0], [0], [1], [0, 0, 1, 1], [], []>} : vector<8x8xf32>, vector<8x32xf32>, vector<8x32xf32> -> vector<8x32xf32>
    %108 = vector.broadcast %4 : vector<1x32xf32> to vector<8x32xf32>
    %109 = arith.addf %108, %107 : vector<8x32xf32>
    %110 = vector.extract_strided_slice %78 {offsets = [0, 72], sizes = [8, 8], strides = [1, 1]} : vector<8x96xf32> to vector<8x8xf32>
    %111 = vector.extract_strided_slice %102 {offsets = [8, 0], sizes = [8, 8], strides = [1, 1]} : vector<32x8xf32> to vector<8x8xf32>
    %cst_61 = arith.constant dense<0.000000e+00> : vector<8x8xf32>
    %112 = tpu.matmul %111, %110, %cst_61 {dimension_numbers = #tpu.dot_dimension_numbers<[1], [0], [0], [1], [0, 0, 1, 1], [], []>} : vector<8x8xf32>, vector<8x8xf32>, vector<8x8xf32> -> vector<8x8xf32>
    %113 = vector.extract_strided_slice %3 {offsets = [8, 0], sizes = [8, 32], strides = [1, 1]} : vector<32x32xf32> to vector<8x32xf32>
    %cst_62 = arith.constant dense<0.000000e+00> : vector<8x32xf32>
    %114 = tpu.matmul %112, %113, %cst_62 {dimension_numbers = #tpu.dot_dimension_numbers<[1], [0], [0], [1], [0, 0, 1, 1], [], []>} : vector<8x8xf32>, vector<8x32xf32>, vector<8x32xf32> -> vector<8x32xf32>
    %115 = arith.addf %109, %114 : vector<8x32xf32>
    %116 = vector.extract_strided_slice %78 {offsets = [0, 80], sizes = [8, 8], strides = [1, 1]} : vector<8x96xf32> to vector<8x8xf32>
    %117 = vector.extract_strided_slice %102 {offsets = [16, 0], sizes = [8, 8], strides = [1, 1]} : vector<32x8xf32> to vector<8x8xf32>
    %cst_63 = arith.constant dense<0.000000e+00> : vector<8x8xf32>
    %118 = tpu.matmul %117, %116, %cst_63 {dimension_numbers = #tpu.dot_dimension_numbers<[1], [0], [0], [1], [0, 0, 1, 1], [], []>} : vector<8x8xf32>, vector<8x8xf32>, vector<8x8xf32> -> vector<8x8xf32>
    %119 = vector.extract_strided_slice %3 {offsets = [16, 0], sizes = [8, 32], strides = [1, 1]} : vector<32x32xf32> to vector<8x32xf32>
    %cst_64 = arith.constant dense<0.000000e+00> : vector<8x32xf32>
    %120 = tpu.matmul %118, %119, %cst_64 {dimension_numbers = #tpu.dot_dimension_numbers<[1], [0], [0], [1], [0, 0, 1, 1], [], []>} : vector<8x8xf32>, vector<8x32xf32>, vector<8x32xf32> -> vector<8x32xf32>
    %121 = arith.addf %115, %120 : vector<8x32xf32>
    %122 = vector.extract_strided_slice %78 {offsets = [0, 88], sizes = [8, 8], strides = [1, 1]} : vector<8x96xf32> to vector<8x8xf32>
    %123 = vector.extract_strided_slice %102 {offsets = [24, 0], sizes = [8, 8], strides = [1, 1]} : vector<32x8xf32> to vector<8x8xf32>
    %cst_65 = arith.constant dense<0.000000e+00> : vector<8x8xf32>
    %124 = tpu.matmul %123, %122, %cst_65 {dimension_numbers = #tpu.dot_dimension_numbers<[1], [0], [0], [1], [0, 0, 1, 1], [], []>} : vector<8x8xf32>, vector<8x8xf32>, vector<8x8xf32> -> vector<8x8xf32>
    %125 = vector.extract_strided_slice %3 {offsets = [24, 0], sizes = [8, 32], strides = [1, 1]} : vector<32x32xf32> to vector<8x32xf32>
    %cst_66 = arith.constant dense<0.000000e+00> : vector<8x32xf32>
    %126 = tpu.matmul %124, %125, %cst_66 {dimension_numbers = #tpu.dot_dimension_numbers<[1], [0], [0], [1], [0, 0, 1, 1], [], []>} : vector<8x8xf32>, vector<8x32xf32>, vector<8x32xf32> -> vector<8x32xf32>
    %127 = arith.addf %121, %126 : vector<8x32xf32>
    %128 = vector.extract_strided_slice %75 {offsets = [8, 0], sizes = [8, 96], strides = [1, 1]} : vector<16x96xf32> to vector<8x96xf32>
    %129 = vector.extract_strided_slice %75 {offsets = [8, 0], sizes = [8, 96], strides = [1, 1]} : vector<16x96xf32> to vector<8x96xf32>
    %130 = vector.extract_strided_slice %75 {offsets = [8, 0], sizes = [8, 96], strides = [1, 1]} : vector<16x96xf32> to vector<8x96xf32>
    %131 = vector.extract_strided_slice %128 {offsets = [0, 0], sizes = [8, 8], strides = [1, 1]} : vector<8x96xf32> to vector<8x8xf32>
    %132 = vector.extract_strided_slice %129 {offsets = [0, 32], sizes = [8, 8], strides = [1, 1]} : vector<8x96xf32> to vector<8x8xf32>
    %cst_67 = arith.constant dense<0.000000e+00> : vector<8x8xf32>
    %133 = tpu.matmul %131, %132, %cst_67 {dimension_numbers = #tpu.dot_dimension_numbers<[1], [1], [0], [0], [0, 0, 1, 0], [], []>} : vector<8x8xf32>, vector<8x8xf32>, vector<8x8xf32> -> vector<8x8xf32>
    %134 = vector.extract_strided_slice %128 {offsets = [0, 8], sizes = [8, 8], strides = [1, 1]} : vector<8x96xf32> to vector<8x8xf32>
    %135 = vector.extract_strided_slice %129 {offsets = [0, 40], sizes = [8, 8], strides = [1, 1]} : vector<8x96xf32> to vector<8x8xf32>
    %cst_68 = arith.constant dense<0.000000e+00> : vector<8x8xf32>
    %136 = tpu.matmul %134, %135, %cst_68 {dimension_numbers = #tpu.dot_dimension_numbers<[1], [1], [0], [0], [0, 0, 1, 0], [], []>} : vector<8x8xf32>, vector<8x8xf32>, vector<8x8xf32> -> vector<8x8xf32>
    %137 = vector.extract_strided_slice %128 {offsets = [0, 16], sizes = [8, 8], strides = [1, 1]} : vector<8x96xf32> to vector<8x8xf32>
    %138 = vector.extract_strided_slice %129 {offsets = [0, 48], sizes = [8, 8], strides = [1, 1]} : vector<8x96xf32> to vector<8x8xf32>
    %cst_69 = arith.constant dense<0.000000e+00> : vector<8x8xf32>
    %139 = tpu.matmul %137, %138, %cst_69 {dimension_numbers = #tpu.dot_dimension_numbers<[1], [1], [0], [0], [0, 0, 1, 0], [], []>} : vector<8x8xf32>, vector<8x8xf32>, vector<8x8xf32> -> vector<8x8xf32>
    %140 = vector.extract_strided_slice %128 {offsets = [0, 24], sizes = [8, 8], strides = [1, 1]} : vector<8x96xf32> to vector<8x8xf32>
    %141 = vector.extract_strided_slice %129 {offsets = [0, 56], sizes = [8, 8], strides = [1, 1]} : vector<8x96xf32> to vector<8x8xf32>
    %cst_70 = arith.constant dense<0.000000e+00> : vector<8x8xf32>
    %142 = tpu.matmul %140, %141, %cst_70 {dimension_numbers = #tpu.dot_dimension_numbers<[1], [1], [0], [0], [0, 0, 1, 0], [], []>} : vector<8x8xf32>, vector<8x8xf32>, vector<8x8xf32> -> vector<8x8xf32>
    %143 = tpu.concatenate %133, %136, %139, %142 in 0 : vector<8x8xf32>, vector<8x8xf32>, vector<8x8xf32>, vector<8x8xf32> -> vector<32x8xf32>
    %cst_71 = arith.constant 0.353553385 : f32
    %144 = vector.broadcast %cst_71 : f32 to vector<32x8xf32>
    %145 = arith.mulf %143, %144 : vector<32x8xf32>
    %cst_72 = arith.constant dense<0xFF800000> : vector<32xf32>
    %146 = vector.multi_reduction <maximumf>, %145, %cst_72 [1] : vector<32x8xf32> to vector<32xf32>
    %147 = vector.shape_cast %146 : vector<32xf32> to vector<32x1xf32>
    %148 = vector.broadcast %147 : vector<32x1xf32> to vector<32x8xf32>
    %149 = arith.subf %145, %148 : vector<32x8xf32>
    %150 = math.exp %149 : vector<32x8xf32>
    %cst_73 = arith.constant dense<0.000000e+00> : vector<32xf32>
    %151 = vector.multi_reduction <add>, %150, %cst_73 [1] : vector<32x8xf32> to vector<32xf32>
    %152 = vector.shape_cast %151 : vector<32xf32> to vector<32x1xf32>
    %153 = vector.broadcast %152 : vector<32x1xf32> to vector<32x8xf32>
    %154 = arith.divf %150, %153 : vector<32x8xf32>
    %155 = vector.extract_strided_slice %130 {offsets = [0, 64], sizes = [8, 8], strides = [1, 1]} : vector<8x96xf32> to vector<8x8xf32>
    %156 = vector.extract_strided_slice %154 {offsets = [0, 0], sizes = [8, 8], strides = [1, 1]} : vector<32x8xf32> to vector<8x8xf32>
    %cst_74 = arith.constant dense<0.000000e+00> : vector<8x8xf32>
    %157 = tpu.matmul %156, %155, %cst_74 {dimension_numbers = #tpu.dot_dimension_numbers<[1], [0], [0], [1], [0, 0, 1, 1], [], []>} : vector<8x8xf32>, vector<8x8xf32>, vector<8x8xf32> -> vector<8x8xf32>
    %158 = vector.extract_strided_slice %3 {offsets = [0, 0], sizes = [8, 32], strides = [1, 1]} : vector<32x32xf32> to vector<8x32xf32>
    %cst_75 = arith.constant dense<0.000000e+00> : vector<8x32xf32>
    %159 = tpu.matmul %157, %158, %cst_75 {dimension_numbers = #tpu.dot_dimension_numbers<[1], [0], [0], [1], [0, 0, 1, 1], [], []>} : vector<8x8xf32>, vector<8x32xf32>, vector<8x32xf32> -> vector<8x32xf32>
    %160 = vector.broadcast %4 : vector<1x32xf32> to vector<8x32xf32>
    %161 = arith.addf %160, %159 : vector<8x32xf32>
    %162 = vector.extract_strided_slice %130 {offsets = [0, 72], sizes = [8, 8], strides = [1, 1]} : vector<8x96xf32> to vector<8x8xf32>
    %163 = vector.extract_strided_slice %154 {offsets = [8, 0], sizes = [8, 8], strides = [1, 1]} : vector<32x8xf32> to vector<8x8xf32>
    %cst_76 = arith.constant dense<0.000000e+00> : vector<8x8xf32>
    %164 = tpu.matmul %163, %162, %cst_76 {dimension_numbers = #tpu.dot_dimension_numbers<[1], [0], [0], [1], [0, 0, 1, 1], [], []>} : vector<8x8xf32>, vector<8x8xf32>, vector<8x8xf32> -> vector<8x8xf32>
    %165 = vector.extract_strided_slice %3 {offsets = [8, 0], sizes = [8, 32], strides = [1, 1]} : vector<32x32xf32> to vector<8x32xf32>
    %cst_77 = arith.constant dense<0.000000e+00> : vector<8x32xf32>
    %166 = tpu.matmul %164, %165, %cst_77 {dimension_numbers = #tpu.dot_dimension_numbers<[1], [0], [0], [1], [0, 0, 1, 1], [], []>} : vector<8x8xf32>, vector<8x32xf32>, vector<8x32xf32> -> vector<8x32xf32>
    %167 = arith.addf %161, %166 : vector<8x32xf32>
    %168 = vector.extract_strided_slice %130 {offsets = [0, 80], sizes = [8, 8], strides = [1, 1]} : vector<8x96xf32> to vector<8x8xf32>
    %169 = vector.extract_strided_slice %154 {offsets = [16, 0], sizes = [8, 8], strides = [1, 1]} : vector<32x8xf32> to vector<8x8xf32>
    %cst_78 = arith.constant dense<0.000000e+00> : vector<8x8xf32>
    %170 = tpu.matmul %169, %168, %cst_78 {dimension_numbers = #tpu.dot_dimension_numbers<[1], [0], [0], [1], [0, 0, 1, 1], [], []>} : vector<8x8xf32>, vector<8x8xf32>, vector<8x8xf32> -> vector<8x8xf32>
    %171 = vector.extract_strided_slice %3 {offsets = [16, 0], sizes = [8, 32], strides = [1, 1]} : vector<32x32xf32> to vector<8x32xf32>
    %cst_79 = arith.constant dense<0.000000e+00> : vector<8x32xf32>
    %172 = tpu.matmul %170, %171, %cst_79 {dimension_numbers = #tpu.dot_dimension_numbers<[1], [0], [0], [1], [0, 0, 1, 1], [], []>} : vector<8x8xf32>, vector<8x32xf32>, vector<8x32xf32> -> vector<8x32xf32>
    %173 = arith.addf %167, %172 : vector<8x32xf32>
    %174 = vector.extract_strided_slice %130 {offsets = [0, 88], sizes = [8, 8], strides = [1, 1]} : vector<8x96xf32> to vector<8x8xf32>
    %175 = vector.extract_strided_slice %154 {offsets = [24, 0], sizes = [8, 8], strides = [1, 1]} : vector<32x8xf32> to vector<8x8xf32>
    %cst_80 = arith.constant dense<0.000000e+00> : vector<8x8xf32>
    %176 = tpu.matmul %175, %174, %cst_80 {dimension_numbers = #tpu.dot_dimension_numbers<[1], [0], [0], [1], [0, 0, 1, 1], [], []>} : vector<8x8xf32>, vector<8x8xf32>, vector<8x8xf32> -> vector<8x8xf32>
    %177 = vector.extract_strided_slice %3 {offsets = [24, 0], sizes = [8, 32], strides = [1, 1]} : vector<32x32xf32> to vector<8x32xf32>
    %cst_81 = arith.constant dense<0.000000e+00> : vector<8x32xf32>
    %178 = tpu.matmul %176, %177, %cst_81 {dimension_numbers = #tpu.dot_dimension_numbers<[1], [0], [0], [1], [0, 0, 1, 1], [], []>} : vector<8x8xf32>, vector<8x32xf32>, vector<8x32xf32> -> vector<8x32xf32>
    %179 = arith.addf %173, %178 : vector<8x32xf32>
    %180 = tpu.concatenate %127, %179 in 0 : vector<8x32xf32>, vector<8x32xf32> -> vector<16x32xf32>
    %181 = tpu.concatenate %50, %180 in 0 : vector<32x32xf32>, vector<16x32xf32> -> vector<48x32xf32>
    %cst_82 = arith.constant dense<0.000000e+00> : vector<48x96xf32>
    %182 = tpu.matmul %181, %5, %cst_82 {dimension_numbers = #tpu.dot_dimension_numbers<[1], [0], [0], [1], [0, 0, 1, 1], [], []>} : vector<48x32xf32>, vector<32x96xf32>, vector<48x96xf32> -> vector<48x96xf32>
    %183 = vector.broadcast %6 : vector<1x96xf32> to vector<48x96xf32>
    %184 = arith.addf %182, %183 : vector<48x96xf32>
    %185 = vector.extract_strided_slice %184 {offsets = [0, 0], sizes = [16, 96], strides = [1, 1]} : vector<48x96xf32> to vector<16x96xf32>
    %186 = vector.extract_strided_slice %184 {offsets = [32, 0], sizes = [8, 96], strides = [1, 1]} : vector<48x96xf32> to vector<8x96xf32>
    %187 = vector.extract_strided_slice %184 {offsets = [32, 0], sizes = [8, 96], strides = [1, 1]} : vector<48x96xf32> to vector<8x96xf32>
    %188 = vector.extract_strided_slice %185 {offsets = [0, 0], sizes = [16, 8], strides = [1, 1]} : vector<16x96xf32> to vector<16x8xf32>
    %189 = vector.extract_strided_slice %186 {offsets = [0, 32], sizes = [8, 8], strides = [1, 1]} : vector<8x96xf32> to vector<8x8xf32>
    %cst_83 = arith.constant dense<0.000000e+00> : vector<16x8xf32>
    %190 = tpu.matmul %188, %189, %cst_83 {dimension_numbers = #tpu.dot_dimension_numbers<[1], [1], [0], [0], [0, 0, 1, 0], [], []>} : vector<16x8xf32>, vector<8x8xf32>, vector<16x8xf32> -> vector<16x8xf32>
    %191 = vector.extract_strided_slice %185 {offsets = [0, 8], sizes = [16, 8], strides = [1, 1]} : vector<16x96xf32> to vector<16x8xf32>
    %192 = vector.extract_strided_slice %186 {offsets = [0, 40], sizes = [8, 8], strides = [1, 1]} : vector<8x96xf32> to vector<8x8xf32>
    %cst_84 = arith.constant dense<0.000000e+00> : vector<16x8xf32>
    %193 = tpu.matmul %191, %192, %cst_84 {dimension_numbers = #tpu.dot_dimension_numbers<[1], [1], [0], [0], [0, 0, 1, 0], [], []>} : vector<16x8xf32>, vector<8x8xf32>, vector<16x8xf32> -> vector<16x8xf32>
    %194 = vector.extract_strided_slice %185 {offsets = [0, 16], sizes = [16, 8], strides = [1, 1]} : vector<16x96xf32> to vector<16x8xf32>
    %195 = vector.extract_strided_slice %186 {offsets = [0, 48], sizes = [8, 8], strides = [1, 1]} : vector<8x96xf32> to vector<8x8xf32>
    %cst_85 = arith.constant dense<0.000000e+00> : vector<16x8xf32>
    %196 = tpu.matmul %194, %195, %cst_85 {dimension_numbers = #tpu.dot_dimension_numbers<[1], [1], [0], [0], [0, 0, 1, 0], [], []>} : vector<16x8xf32>, vector<8x8xf32>, vector<16x8xf32> -> vector<16x8xf32>
    %197 = vector.extract_strided_slice %185 {offsets = [0, 24], sizes = [16, 8], strides = [1, 1]} : vector<16x96xf32> to vector<16x8xf32>
    %198 = vector.extract_strided_slice %186 {offsets = [0, 56], sizes = [8, 8], strides = [1, 1]} : vector<8x96xf32> to vector<8x8xf32>
    %cst_86 = arith.constant dense<0.000000e+00> : vector<16x8xf32>
    %199 = tpu.matmul %197, %198, %cst_86 {dimension_numbers = #tpu.dot_dimension_numbers<[1], [1], [0], [0], [0, 0, 1, 0], [], []>} : vector<16x8xf32>, vector<8x8xf32>, vector<16x8xf32> -> vector<16x8xf32>
    %200 = tpu.concatenate %190, %193, %196, %199 in 0 : vector<16x8xf32>, vector<16x8xf32>, vector<16x8xf32>, vector<16x8xf32> -> vector<64x8xf32>
    %cst_87 = arith.constant 0.353553385 : f32
    %201 = vector.broadcast %cst_87 : f32 to vector<64x8xf32>
    %202 = arith.mulf %200, %201 : vector<64x8xf32>
    %cst_88 = arith.constant dense<0xFF800000> : vector<64xf32>
    %203 = vector.multi_reduction <maximumf>, %202, %cst_88 [1] : vector<64x8xf32> to vector<64xf32>
    %204 = vector.shape_cast %203 : vector<64xf32> to vector<64x1xf32>
    %205 = vector.broadcast %204 : vector<64x1xf32> to vector<64x8xf32>
    %206 = arith.subf %202, %205 : vector<64x8xf32>
    %207 = math.exp %206 : vector<64x8xf32>
    %cst_89 = arith.constant dense<0.000000e+00> : vector<64xf32>
    %208 = vector.multi_reduction <add>, %207, %cst_89 [1] : vector<64x8xf32> to vector<64xf32>
    %209 = vector.shape_cast %208 : vector<64xf32> to vector<64x1xf32>
    %210 = vector.broadcast %209 : vector<64x1xf32> to vector<64x8xf32>
    %211 = arith.divf %207, %210 : vector<64x8xf32>
    %212 = vector.extract_strided_slice %187 {offsets = [0, 64], sizes = [8, 8], strides = [1, 1]} : vector<8x96xf32> to vector<8x8xf32>
    %213 = vector.extract_strided_slice %211 {offsets = [0, 0], sizes = [16, 8], strides = [1, 1]} : vector<64x8xf32> to vector<16x8xf32>
    %cst_90 = arith.constant dense<0.000000e+00> : vector<16x8xf32>
    %214 = tpu.matmul %213, %212, %cst_90 {dimension_numbers = #tpu.dot_dimension_numbers<[1], [0], [0], [1], [0, 0, 1, 1], [], []>} : vector<16x8xf32>, vector<8x8xf32>, vector<16x8xf32> -> vector<16x8xf32>
    %215 = vector.extract_strided_slice %7 {offsets = [0, 0], sizes = [8, 32], strides = [1, 1]} : vector<32x32xf32> to vector<8x32xf32>
    %cst_91 = arith.constant dense<0.000000e+00> : vector<16x32xf32>
    %216 = tpu.matmul %214, %215, %cst_91 {dimension_numbers = #tpu.dot_dimension_numbers<[1], [0], [0], [1], [0, 0, 1, 1], [], []>} : vector<16x8xf32>, vector<8x32xf32>, vector<16x32xf32> -> vector<16x32xf32>
    %217 = vector.broadcast %8 : vector<1x32xf32> to vector<16x32xf32>
    %218 = arith.addf %217, %216 : vector<16x32xf32>
    %219 = vector.extract_strided_slice %187 {offsets = [0, 72], sizes = [8, 8], strides = [1, 1]} : vector<8x96xf32> to vector<8x8xf32>
    %220 = vector.extract_strided_slice %211 {offsets = [16, 0], sizes = [16, 8], strides = [1, 1]} : vector<64x8xf32> to vector<16x8xf32>
    %cst_92 = arith.constant dense<0.000000e+00> : vector<16x8xf32>
    %221 = tpu.matmul %220, %219, %cst_92 {dimension_numbers = #tpu.dot_dimension_numbers<[1], [0], [0], [1], [0, 0, 1, 1], [], []>} : vector<16x8xf32>, vector<8x8xf32>, vector<16x8xf32> -> vector<16x8xf32>
    %222 = vector.extract_strided_slice %7 {offsets = [8, 0], sizes = [8, 32], strides = [1, 1]} : vector<32x32xf32> to vector<8x32xf32>
    %cst_93 = arith.constant dense<0.000000e+00> : vector<16x32xf32>
    %223 = tpu.matmul %221, %222, %cst_93 {dimension_numbers = #tpu.dot_dimension_numbers<[1], [0], [0], [1], [0, 0, 1, 1], [], []>} : vector<16x8xf32>, vector<8x32xf32>, vector<16x32xf32> -> vector<16x32xf32>
    %224 = arith.addf %218, %223 : vector<16x32xf32>
    %225 = vector.extract_strided_slice %187 {offsets = [0, 80], sizes = [8, 8], strides = [1, 1]} : vector<8x96xf32> to vector<8x8xf32>
    %226 = vector.extract_strided_slice %211 {offsets = [32, 0], sizes = [16, 8], strides = [1, 1]} : vector<64x8xf32> to vector<16x8xf32>
    %cst_94 = arith.constant dense<0.000000e+00> : vector<16x8xf32>
    %227 = tpu.matmul %226, %225, %cst_94 {dimension_numbers = #tpu.dot_dimension_numbers<[1], [0], [0], [1], [0, 0, 1, 1], [], []>} : vector<16x8xf32>, vector<8x8xf32>, vector<16x8xf32> -> vector<16x8xf32>
    %228 = vector.extract_strided_slice %7 {offsets = [16, 0], sizes = [8, 32], strides = [1, 1]} : vector<32x32xf32> to vector<8x32xf32>
    %cst_95 = arith.constant dense<0.000000e+00> : vector<16x32xf32>
    %229 = tpu.matmul %227, %228, %cst_95 {dimension_numbers = #tpu.dot_dimension_numbers<[1], [0], [0], [1], [0, 0, 1, 1], [], []>} : vector<16x8xf32>, vector<8x32xf32>, vector<16x32xf32> -> vector<16x32xf32>
    %230 = arith.addf %224, %229 : vector<16x32xf32>
    %231 = vector.extract_strided_slice %187 {offsets = [0, 88], sizes = [8, 8], strides = [1, 1]} : vector<8x96xf32> to vector<8x8xf32>
    %232 = vector.extract_strided_slice %211 {offsets = [48, 0], sizes = [16, 8], strides = [1, 1]} : vector<64x8xf32> to vector<16x8xf32>
    %cst_96 = arith.constant dense<0.000000e+00> : vector<16x8xf32>
    %233 = tpu.matmul %232, %231, %cst_96 {dimension_numbers = #tpu.dot_dimension_numbers<[1], [0], [0], [1], [0, 0, 1, 1], [], []>} : vector<16x8xf32>, vector<8x8xf32>, vector<16x8xf32> -> vector<16x8xf32>
    %234 = vector.extract_strided_slice %7 {offsets = [24, 0], sizes = [8, 32], strides = [1, 1]} : vector<32x32xf32> to vector<8x32xf32>
    %cst_97 = arith.constant dense<0.000000e+00> : vector<16x32xf32>
    %235 = tpu.matmul %233, %234, %cst_97 {dimension_numbers = #tpu.dot_dimension_numbers<[1], [0], [0], [1], [0, 0, 1, 1], [], []>} : vector<16x8xf32>, vector<8x32xf32>, vector<16x32xf32> -> vector<16x32xf32>
    %236 = arith.addf %230, %235 : vector<16x32xf32>
    %237 = vector.extract_strided_slice %184 {offsets = [16, 0], sizes = [16, 96], strides = [1, 1]} : vector<48x96xf32> to vector<16x96xf32>
    %238 = vector.extract_strided_slice %184 {offsets = [40, 0], sizes = [8, 96], strides = [1, 1]} : vector<48x96xf32> to vector<8x96xf32>
    %239 = vector.extract_strided_slice %184 {offsets = [40, 0], sizes = [8, 96], strides = [1, 1]} : vector<48x96xf32> to vector<8x96xf32>
    %240 = vector.extract_strided_slice %237 {offsets = [0, 0], sizes = [16, 8], strides = [1, 1]} : vector<16x96xf32> to vector<16x8xf32>
    %241 = vector.extract_strided_slice %238 {offsets = [0, 32], sizes = [8, 8], strides = [1, 1]} : vector<8x96xf32> to vector<8x8xf32>
    %cst_98 = arith.constant dense<0.000000e+00> : vector<16x8xf32>
    %242 = tpu.matmul %240, %241, %cst_98 {dimension_numbers = #tpu.dot_dimension_numbers<[1], [1], [0], [0], [0, 0, 1, 0], [], []>} : vector<16x8xf32>, vector<8x8xf32>, vector<16x8xf32> -> vector<16x8xf32>
    %243 = vector.extract_strided_slice %237 {offsets = [0, 8], sizes = [16, 8], strides = [1, 1]} : vector<16x96xf32> to vector<16x8xf32>
    %244 = vector.extract_strided_slice %238 {offsets = [0, 40], sizes = [8, 8], strides = [1, 1]} : vector<8x96xf32> to vector<8x8xf32>
    %cst_99 = arith.constant dense<0.000000e+00> : vector<16x8xf32>
    %245 = tpu.matmul %243, %244, %cst_99 {dimension_numbers = #tpu.dot_dimension_numbers<[1], [1], [0], [0], [0, 0, 1, 0], [], []>} : vector<16x8xf32>, vector<8x8xf32>, vector<16x8xf32> -> vector<16x8xf32>
    %246 = vector.extract_strided_slice %237 {offsets = [0, 16], sizes = [16, 8], strides = [1, 1]} : vector<16x96xf32> to vector<16x8xf32>
    %247 = vector.extract_strided_slice %238 {offsets = [0, 48], sizes = [8, 8], strides = [1, 1]} : vector<8x96xf32> to vector<8x8xf32>
    %cst_100 = arith.constant dense<0.000000e+00> : vector<16x8xf32>
    %248 = tpu.matmul %246, %247, %cst_100 {dimension_numbers = #tpu.dot_dimension_numbers<[1], [1], [0], [0], [0, 0, 1, 0], [], []>} : vector<16x8xf32>, vector<8x8xf32>, vector<16x8xf32> -> vector<16x8xf32>
    %249 = vector.extract_strided_slice %237 {offsets = [0, 24], sizes = [16, 8], strides = [1, 1]} : vector<16x96xf32> to vector<16x8xf32>
    %250 = vector.extract_strided_slice %238 {offsets = [0, 56], sizes = [8, 8], strides = [1, 1]} : vector<8x96xf32> to vector<8x8xf32>
    %cst_101 = arith.constant dense<0.000000e+00> : vector<16x8xf32>
    %251 = tpu.matmul %249, %250, %cst_101 {dimension_numbers = #tpu.dot_dimension_numbers<[1], [1], [0], [0], [0, 0, 1, 0], [], []>} : vector<16x8xf32>, vector<8x8xf32>, vector<16x8xf32> -> vector<16x8xf32>
    %252 = tpu.concatenate %242, %245, %248, %251 in 0 : vector<16x8xf32>, vector<16x8xf32>, vector<16x8xf32>, vector<16x8xf32> -> vector<64x8xf32>
    %cst_102 = arith.constant 0.353553385 : f32
    %253 = vector.broadcast %cst_102 : f32 to vector<64x8xf32>
    %254 = arith.mulf %252, %253 : vector<64x8xf32>
    %cst_103 = arith.constant dense<0xFF800000> : vector<64xf32>
    %255 = vector.multi_reduction <maximumf>, %254, %cst_103 [1] : vector<64x8xf32> to vector<64xf32>
    %256 = vector.shape_cast %255 : vector<64xf32> to vector<64x1xf32>
    %257 = vector.broadcast %256 : vector<64x1xf32> to vector<64x8xf32>
    %258 = arith.subf %254, %257 : vector<64x8xf32>
    %259 = math.exp %258 : vector<64x8xf32>
    %cst_104 = arith.constant dense<0.000000e+00> : vector<64xf32>
    %260 = vector.multi_reduction <add>, %259, %cst_104 [1] : vector<64x8xf32> to vector<64xf32>
    %261 = vector.shape_cast %260 : vector<64xf32> to vector<64x1xf32>
    %262 = vector.broadcast %261 : vector<64x1xf32> to vector<64x8xf32>
    %263 = arith.divf %259, %262 : vector<64x8xf32>
    %264 = vector.extract_strided_slice %239 {offsets = [0, 64], sizes = [8, 8], strides = [1, 1]} : vector<8x96xf32> to vector<8x8xf32>
    %265 = vector.extract_strided_slice %263 {offsets = [0, 0], sizes = [16, 8], strides = [1, 1]} : vector<64x8xf32> to vector<16x8xf32>
    %cst_105 = arith.constant dense<0.000000e+00> : vector<16x8xf32>
    %266 = tpu.matmul %265, %264, %cst_105 {dimension_numbers = #tpu.dot_dimension_numbers<[1], [0], [0], [1], [0, 0, 1, 1], [], []>} : vector<16x8xf32>, vector<8x8xf32>, vector<16x8xf32> -> vector<16x8xf32>
    %267 = vector.extract_strided_slice %7 {offsets = [0, 0], sizes = [8, 32], strides = [1, 1]} : vector<32x32xf32> to vector<8x32xf32>
    %cst_106 = arith.constant dense<0.000000e+00> : vector<16x32xf32>
    %268 = tpu.matmul %266, %267, %cst_106 {dimension_numbers = #tpu.dot_dimension_numbers<[1], [0], [0], [1], [0, 0, 1, 1], [], []>} : vector<16x8xf32>, vector<8x32xf32>, vector<16x32xf32> -> vector<16x32xf32>
    %269 = vector.broadcast %8 : vector<1x32xf32> to vector<16x32xf32>
    %270 = arith.addf %269, %268 : vector<16x32xf32>
    %271 = vector.extract_strided_slice %239 {offsets = [0, 72], sizes = [8, 8], strides = [1, 1]} : vector<8x96xf32> to vector<8x8xf32>
    %272 = vector.extract_strided_slice %263 {offsets = [16, 0], sizes = [16, 8], strides = [1, 1]} : vector<64x8xf32> to vector<16x8xf32>
    %cst_107 = arith.constant dense<0.000000e+00> : vector<16x8xf32>
    %273 = tpu.matmul %272, %271, %cst_107 {dimension_numbers = #tpu.dot_dimension_numbers<[1], [0], [0], [1], [0, 0, 1, 1], [], []>} : vector<16x8xf32>, vector<8x8xf32>, vector<16x8xf32> -> vector<16x8xf32>
    %274 = vector.extract_strided_slice %7 {offsets = [8, 0], sizes = [8, 32], strides = [1, 1]} : vector<32x32xf32> to vector<8x32xf32>
    %cst_108 = arith.constant dense<0.000000e+00> : vector<16x32xf32>
    %275 = tpu.matmul %273, %274, %cst_108 {dimension_numbers = #tpu.dot_dimension_numbers<[1], [0], [0], [1], [0, 0, 1, 1], [], []>} : vector<16x8xf32>, vector<8x32xf32>, vector<16x32xf32> -> vector<16x32xf32>
    %276 = arith.addf %270, %275 : vector<16x32xf32>
    %277 = vector.extract_strided_slice %239 {offsets = [0, 80], sizes = [8, 8], strides = [1, 1]} : vector<8x96xf32> to vector<8x8xf32>
    %278 = vector.extract_strided_slice %263 {offsets = [32, 0], sizes = [16, 8], strides = [1, 1]} : vector<64x8xf32> to vector<16x8xf32>
    %cst_109 = arith.constant dense<0.000000e+00> : vector<16x8xf32>
    %279 = tpu.matmul %278, %277, %cst_109 {dimension_numbers = #tpu.dot_dimension_numbers<[1], [0], [0], [1], [0, 0, 1, 1], [], []>} : vector<16x8xf32>, vector<8x8xf32>, vector<16x8xf32> -> vector<16x8xf32>
    %280 = vector.extract_strided_slice %7 {offsets = [16, 0], sizes = [8, 32], strides = [1, 1]} : vector<32x32xf32> to vector<8x32xf32>
    %cst_110 = arith.constant dense<0.000000e+00> : vector<16x32xf32>
    %281 = tpu.matmul %279, %280, %cst_110 {dimension_numbers = #tpu.dot_dimension_numbers<[1], [0], [0], [1], [0, 0, 1, 1], [], []>} : vector<16x8xf32>, vector<8x32xf32>, vector<16x32xf32> -> vector<16x32xf32>
    %282 = arith.addf %276, %281 : vector<16x32xf32>
    %283 = vector.extract_strided_slice %239 {offsets = [0, 88], sizes = [8, 8], strides = [1, 1]} : vector<8x96xf32> to vector<8x8xf32>
    %284 = vector.extract_strided_slice %263 {offsets = [48, 0], sizes = [16, 8], strides = [1, 1]} : vector<64x8xf32> to vector<16x8xf32>
    %cst_111 = arith.constant dense<0.000000e+00> : vector<16x8xf32>
    %285 = tpu.matmul %284, %283, %cst_111 {dimension_numbers = #tpu.dot_dimension_numbers<[1], [0], [0], [1], [0, 0, 1, 1], [], []>} : vector<16x8xf32>, vector<8x8xf32>, vector<16x8xf32> -> vector<16x8xf32>
    %286 = vector.extract_strided_slice %7 {offsets = [24, 0], sizes = [8, 32], strides = [1, 1]} : vector<32x32xf32> to vector<8x32xf32>
    %cst_112 = arith.constant dense<0.000000e+00> : vector<16x32xf32>
    %287 = tpu.matmul %285, %286, %cst_112 {dimension_numbers = #tpu.dot_dimension_numbers<[1], [0], [0], [1], [0, 0, 1, 1], [], []>} : vector<16x8xf32>, vector<8x32xf32>, vector<16x32xf32> -> vector<16x32xf32>
    %288 = arith.addf %282, %287 : vector<16x32xf32>
    %289 = tpu.concatenate %236, %288 in 0 : vector<16x32xf32>, vector<16x32xf32> -> vector<32x32xf32>
    %290 = arith.addf %50, %289 : vector<32x32xf32>
    %291 = tpu.concatenate %290, %50, %49 in 0 : vector<32x32xf32>, vector<32x32xf32>, vector<32x32xf32> -> vector<96x32xf32>
    %cst_113 = arith.constant dense<0.000000e+00> : vector<96x96xf32>
    %292 = tpu.matmul %291, %9, %cst_113 {dimension_numbers = #tpu.dot_dimension_numbers<[1], [0], [0], [1], [0, 0, 1, 1], [], []>} : vector<96x32xf32>, vector<32x96xf32>, vector<96x96xf32> -> vector<96x96xf32>
    %293 = vector.broadcast %10 : vector<1x96xf32> to vector<96x96xf32>
    %294 = arith.addf %292, %293 : vector<96x96xf32>
    %295 = vector.extract_strided_slice %294 {offsets = [0, 0], sizes = [16, 96], strides = [1, 1]} : vector<96x96xf32> to vector<16x96xf32>
    %296 = vector.extract_strided_slice %294 {offsets = [32, 0], sizes = [16, 96], strides = [1, 1]} : vector<96x96xf32> to vector<16x96xf32>
    %297 = vector.extract_strided_slice %294 {offsets = [64, 0], sizes = [16, 96], strides = [1, 1]} : vector<96x96xf32> to vector<16x96xf32>
    %298 = vector.extract_strided_slice %295 {offsets = [0, 0], sizes = [16, 8], strides = [1, 1]} : vector<16x96xf32> to vector<16x8xf32>
    %299 = vector.extract_strided_slice %296 {offsets = [0, 32], sizes = [16, 8], strides = [1, 1]} : vector<16x96xf32> to vector<16x8xf32>
    %cst_114 = arith.constant dense<0.000000e+00> : vector<16x16xf32>
    %300 = tpu.matmul %298, %299, %cst_114 {dimension_numbers = #tpu.dot_dimension_numbers<[1], [1], [0], [0], [0, 0, 1, 0], [], []>} : vector<16x8xf32>, vector<16x8xf32>, vector<16x16xf32> -> vector<16x16xf32>
    %301 = vector.extract_strided_slice %295 {offsets = [0, 8], sizes = [16, 8], strides = [1, 1]} : vector<16x96xf32> to vector<16x8xf32>
    %302 = vector.extract_strided_slice %296 {offsets = [0, 40], sizes = [16, 8], strides = [1, 1]} : vector<16x96xf32> to vector<16x8xf32>
    %cst_115 = arith.constant dense<0.000000e+00> : vector<16x16xf32>
    %303 = tpu.matmul %301, %302, %cst_115 {dimension_numbers = #tpu.dot_dimension_numbers<[1], [1], [0], [0], [0, 0, 1, 0], [], []>} : vector<16x8xf32>, vector<16x8xf32>, vector<16x16xf32> -> vector<16x16xf32>
    %304 = vector.extract_strided_slice %295 {offsets = [0, 16], sizes = [16, 8], strides = [1, 1]} : vector<16x96xf32> to vector<16x8xf32>
    %305 = vector.extract_strided_slice %296 {offsets = [0, 48], sizes = [16, 8], strides = [1, 1]} : vector<16x96xf32> to vector<16x8xf32>
    %cst_116 = arith.constant dense<0.000000e+00> : vector<16x16xf32>
    %306 = tpu.matmul %304, %305, %cst_116 {dimension_numbers = #tpu.dot_dimension_numbers<[1], [1], [0], [0], [0, 0, 1, 0], [], []>} : vector<16x8xf32>, vector<16x8xf32>, vector<16x16xf32> -> vector<16x16xf32>
    %307 = vector.extract_strided_slice %295 {offsets = [0, 24], sizes = [16, 8], strides = [1, 1]} : vector<16x96xf32> to vector<16x8xf32>
    %308 = vector.extract_strided_slice %296 {offsets = [0, 56], sizes = [16, 8], strides = [1, 1]} : vector<16x96xf32> to vector<16x8xf32>
    %cst_117 = arith.constant dense<0.000000e+00> : vector<16x16xf32>
    %309 = tpu.matmul %307, %308, %cst_117 {dimension_numbers = #tpu.dot_dimension_numbers<[1], [1], [0], [0], [0, 0, 1, 0], [], []>} : vector<16x8xf32>, vector<16x8xf32>, vector<16x16xf32> -> vector<16x16xf32>
    %310 = tpu.concatenate %300, %303, %306, %309 in 0 : vector<16x16xf32>, vector<16x16xf32>, vector<16x16xf32>, vector<16x16xf32> -> vector<64x16xf32>
    %cst_118 = arith.constant 0.353553385 : f32
    %311 = vector.broadcast %cst_118 : f32 to vector<64x16xf32>
    %312 = arith.mulf %310, %311 : vector<64x16xf32>
    %cst_119 = arith.constant dense<0xFF800000> : vector<64xf32>
    %313 = vector.multi_reduction <maximumf>, %312, %cst_119 [1] : vector<64x16xf32> to vector<64xf32>
    %314 = vector.shape_cast %313 : vector<64xf32> to vector<64x1xf32>
    %315 = vector.broadcast %314 : vector<64x1xf32> to vector<64x16xf32>
    %316 = arith.subf %312, %315 : vector<64x16xf32>
    %317 = math.exp %316 : vector<64x16xf32>
    %cst_120 = arith.constant dense<0.000000e+00> : vector<64xf32>
    %318 = vector.multi_reduction <add>, %317, %cst_120 [1] : vector<64x16xf32> to vector<64xf32>
    %319 = vector.shape_cast %318 : vector<64xf32> to vector<64x1xf32>
    %320 = vector.broadcast %319 : vector<64x1xf32> to vector<64x16xf32>
    %321 = arith.divf %317, %320 : vector<64x16xf32>
    %322 = vector.extract_strided_slice %297 {offsets = [0, 64], sizes = [16, 8], strides = [1, 1]} : vector<16x96xf32> to vector<16x8xf32>
    %323 = vector.extract_strided_slice %321 {offsets = [0, 0], sizes = [16, 16], strides = [1, 1]} : vector<64x16xf32> to vector<16x16xf32>
    %cst_121 = arith.constant dense<0.000000e+00> : vector<16x8xf32>
    %324 = tpu.matmul %323, %322, %cst_121 {dimension_numbers = #tpu.dot_dimension_numbers<[1], [0], [0], [1], [0, 0, 1, 1], [], []>} : vector<16x16xf32>, vector<16x8xf32>, vector<16x8xf32> -> vector<16x8xf32>
    %325 = vector.extract_strided_slice %11 {offsets = [0, 0], sizes = [8, 32], strides = [1, 1]} : vector<32x32xf32> to vector<8x32xf32>
    %cst_122 = arith.constant dense<0.000000e+00> : vector<16x32xf32>
    %326 = tpu.matmul %324, %325, %cst_122 {dimension_numbers = #tpu.dot_dimension_numbers<[1], [0], [0], [1], [0, 0, 1, 1], [], []>} : vector<16x8xf32>, vector<8x32xf32>, vector<16x32xf32> -> vector<16x32xf32>
    %327 = vector.broadcast %12 : vector<1x32xf32> to vector<16x32xf32>
    %328 = arith.addf %327, %326 : vector<16x32xf32>
    %329 = vector.extract_strided_slice %297 {offsets = [0, 72], sizes = [16, 8], strides = [1, 1]} : vector<16x96xf32> to vector<16x8xf32>
    %330 = vector.extract_strided_slice %321 {offsets = [16, 0], sizes = [16, 16], strides = [1, 1]} : vector<64x16xf32> to vector<16x16xf32>
    %cst_123 = arith.constant dense<0.000000e+00> : vector<16x8xf32>
    %331 = tpu.matmul %330, %329, %cst_123 {dimension_numbers = #tpu.dot_dimension_numbers<[1], [0], [0], [1], [0, 0, 1, 1], [], []>} : vector<16x16xf32>, vector<16x8xf32>, vector<16x8xf32> -> vector<16x8xf32>
    %332 = vector.extract_strided_slice %11 {offsets = [8, 0], sizes = [8, 32], strides = [1, 1]} : vector<32x32xf32> to vector<8x32xf32>
    %cst_124 = arith.constant dense<0.000000e+00> : vector<16x32xf32>
    %333 = tpu.matmul %331, %332, %cst_124 {dimension_numbers = #tpu.dot_dimension_numbers<[1], [0], [0], [1], [0, 0, 1, 1], [], []>} : vector<16x8xf32>, vector<8x32xf32>, vector<16x32xf32> -> vector<16x32xf32>
    %334 = arith.addf %328, %333 : vector<16x32xf32>
    %335 = vector.extract_strided_slice %297 {offsets = [0, 80], sizes = [16, 8], strides = [1, 1]} : vector<16x96xf32> to vector<16x8xf32>
    %336 = vector.extract_strided_slice %321 {offsets = [32, 0], sizes = [16, 16], strides = [1, 1]} : vector<64x16xf32> to vector<16x16xf32>
    %cst_125 = arith.constant dense<0.000000e+00> : vector<16x8xf32>
    %337 = tpu.matmul %336, %335, %cst_125 {dimension_numbers = #tpu.dot_dimension_numbers<[1], [0], [0], [1], [0, 0, 1, 1], [], []>} : vector<16x16xf32>, vector<16x8xf32>, vector<16x8xf32> -> vector<16x8xf32>
    %338 = vector.extract_strided_slice %11 {offsets = [16, 0], sizes = [8, 32], strides = [1, 1]} : vector<32x32xf32> to vector<8x32xf32>
    %cst_126 = arith.constant dense<0.000000e+00> : vector<16x32xf32>
    %339 = tpu.matmul %337, %338, %cst_126 {dimension_numbers = #tpu.dot_dimension_numbers<[1], [0], [0], [1], [0, 0, 1, 1], [], []>} : vector<16x8xf32>, vector<8x32xf32>, vector<16x32xf32> -> vector<16x32xf32>
    %340 = arith.addf %334, %339 : vector<16x32xf32>
    %341 = vector.extract_strided_slice %297 {offsets = [0, 88], sizes = [16, 8], strides = [1, 1]} : vector<16x96xf32> to vector<16x8xf32>
    %342 = vector.extract_strided_slice %321 {offsets = [48, 0], sizes = [16, 16], strides = [1, 1]} : vector<64x16xf32> to vector<16x16xf32>
    %cst_127 = arith.constant dense<0.000000e+00> : vector<16x8xf32>
    %343 = tpu.matmul %342, %341, %cst_127 {dimension_numbers = #tpu.dot_dimension_numbers<[1], [0], [0], [1], [0, 0, 1, 1], [], []>} : vector<16x16xf32>, vector<16x8xf32>, vector<16x8xf32> -> vector<16x8xf32>
    %344 = vector.extract_strided_slice %11 {offsets = [24, 0], sizes = [8, 32], strides = [1, 1]} : vector<32x32xf32> to vector<8x32xf32>
    %cst_128 = arith.constant dense<0.000000e+00> : vector<16x32xf32>
    %345 = tpu.matmul %343, %344, %cst_128 {dimension_numbers = #tpu.dot_dimension_numbers<[1], [0], [0], [1], [0, 0, 1, 1], [], []>} : vector<16x8xf32>, vector<8x32xf32>, vector<16x32xf32> -> vector<16x32xf32>
    %346 = arith.addf %340, %345 : vector<16x32xf32>
    %347 = vector.extract_strided_slice %294 {offsets = [16, 0], sizes = [16, 96], strides = [1, 1]} : vector<96x96xf32> to vector<16x96xf32>
    %348 = vector.extract_strided_slice %294 {offsets = [48, 0], sizes = [16, 96], strides = [1, 1]} : vector<96x96xf32> to vector<16x96xf32>
    %349 = vector.extract_strided_slice %294 {offsets = [80, 0], sizes = [16, 96], strides = [1, 1]} : vector<96x96xf32> to vector<16x96xf32>
    %350 = vector.extract_strided_slice %347 {offsets = [0, 0], sizes = [16, 8], strides = [1, 1]} : vector<16x96xf32> to vector<16x8xf32>
    %351 = vector.extract_strided_slice %348 {offsets = [0, 32], sizes = [16, 8], strides = [1, 1]} : vector<16x96xf32> to vector<16x8xf32>
    %cst_129 = arith.constant dense<0.000000e+00> : vector<16x16xf32>
    %352 = tpu.matmul %350, %351, %cst_129 {dimension_numbers = #tpu.dot_dimension_numbers<[1], [1], [0], [0], [0, 0, 1, 0], [], []>} : vector<16x8xf32>, vector<16x8xf32>, vector<16x16xf32> -> vector<16x16xf32>
    %353 = vector.extract_strided_slice %347 {offsets = [0, 8], sizes = [16, 8], strides = [1, 1]} : vector<16x96xf32> to vector<16x8xf32>
    %354 = vector.extract_strided_slice %348 {offsets = [0, 40], sizes = [16, 8], strides = [1, 1]} : vector<16x96xf32> to vector<16x8xf32>
    %cst_130 = arith.constant dense<0.000000e+00> : vector<16x16xf32>
    %355 = tpu.matmul %353, %354, %cst_130 {dimension_numbers = #tpu.dot_dimension_numbers<[1], [1], [0], [0], [0, 0, 1, 0], [], []>} : vector<16x8xf32>, vector<16x8xf32>, vector<16x16xf32> -> vector<16x16xf32>
    %356 = vector.extract_strided_slice %347 {offsets = [0, 16], sizes = [16, 8], strides = [1, 1]} : vector<16x96xf32> to vector<16x8xf32>
    %357 = vector.extract_strided_slice %348 {offsets = [0, 48], sizes = [16, 8], strides = [1, 1]} : vector<16x96xf32> to vector<16x8xf32>
    %cst_131 = arith.constant dense<0.000000e+00> : vector<16x16xf32>
    %358 = tpu.matmul %356, %357, %cst_131 {dimension_numbers = #tpu.dot_dimension_numbers<[1], [1], [0], [0], [0, 0, 1, 0], [], []>} : vector<16x8xf32>, vector<16x8xf32>, vector<16x16xf32> -> vector<16x16xf32>
    %359 = vector.extract_strided_slice %347 {offsets = [0, 24], sizes = [16, 8], strides = [1, 1]} : vector<16x96xf32> to vector<16x8xf32>
    %360 = vector.extract_strided_slice %348 {offsets = [0, 56], sizes = [16, 8], strides = [1, 1]} : vector<16x96xf32> to vector<16x8xf32>
    %cst_132 = arith.constant dense<0.000000e+00> : vector<16x16xf32>
    %361 = tpu.matmul %359, %360, %cst_132 {dimension_numbers = #tpu.dot_dimension_numbers<[1], [1], [0], [0], [0, 0, 1, 0], [], []>} : vector<16x8xf32>, vector<16x8xf32>, vector<16x16xf32> -> vector<16x16xf32>
    %362 = tpu.concatenate %352, %355, %358, %361 in 0 : vector<16x16xf32>, vector<16x16xf32>, vector<16x16xf32>, vector<16x16xf32> -> vector<64x16xf32>
    %cst_133 = arith.constant 0.353553385 : f32
    %363 = vector.broadcast %cst_133 : f32 to vector<64x16xf32>
    %364 = arith.mulf %362, %363 : vector<64x16xf32>
    %cst_134 = arith.constant dense<0xFF800000> : vector<64xf32>
    %365 = vector.multi_reduction <maximumf>, %364, %cst_134 [1] : vector<64x16xf32> to vector<64xf32>
    %366 = vector.shape_cast %365 : vector<64xf32> to vector<64x1xf32>
    %367 = vector.broadcast %366 : vector<64x1xf32> to vector<64x16xf32>
    %368 = arith.subf %364, %367 : vector<64x16xf32>
    %369 = math.exp %368 : vector<64x16xf32>
    %cst_135 = arith.constant dense<0.000000e+00> : vector<64xf32>
    %370 = vector.multi_reduction <add>, %369, %cst_135 [1] : vector<64x16xf32> to vector<64xf32>
    %371 = vector.shape_cast %370 : vector<64xf32> to vector<64x1xf32>
    %372 = vector.broadcast %371 : vector<64x1xf32> to vector<64x16xf32>
    %373 = arith.divf %369, %372 : vector<64x16xf32>
    %374 = vector.extract_strided_slice %349 {offsets = [0, 64], sizes = [16, 8], strides = [1, 1]} : vector<16x96xf32> to vector<16x8xf32>
    %375 = vector.extract_strided_slice %373 {offsets = [0, 0], sizes = [16, 16], strides = [1, 1]} : vector<64x16xf32> to vector<16x16xf32>
    %cst_136 = arith.constant dense<0.000000e+00> : vector<16x8xf32>
    %376 = tpu.matmul %375, %374, %cst_136 {dimension_numbers = #tpu.dot_dimension_numbers<[1], [0], [0], [1], [0, 0, 1, 1], [], []>} : vector<16x16xf32>, vector<16x8xf32>, vector<16x8xf32> -> vector<16x8xf32>
    %377 = vector.extract_strided_slice %11 {offsets = [0, 0], sizes = [8, 32], strides = [1, 1]} : vector<32x32xf32> to vector<8x32xf32>
    %cst_137 = arith.constant dense<0.000000e+00> : vector<16x32xf32>
    %378 = tpu.matmul %376, %377, %cst_137 {dimension_numbers = #tpu.dot_dimension_numbers<[1], [0], [0], [1], [0, 0, 1, 1], [], []>} : vector<16x8xf32>, vector<8x32xf32>, vector<16x32xf32> -> vector<16x32xf32>
    %379 = vector.broadcast %12 : vector<1x32xf32> to vector<16x32xf32>
    %380 = arith.addf %379, %378 : vector<16x32xf32>
    %381 = vector.extract_strided_slice %349 {offsets = [0, 72], sizes = [16, 8], strides = [1, 1]} : vector<16x96xf32> to vector<16x8xf32>
    %382 = vector.extract_strided_slice %373 {offsets = [16, 0], sizes = [16, 16], strides = [1, 1]} : vector<64x16xf32> to vector<16x16xf32>
    %cst_138 = arith.constant dense<0.000000e+00> : vector<16x8xf32>
    %383 = tpu.matmul %382, %381, %cst_138 {dimension_numbers = #tpu.dot_dimension_numbers<[1], [0], [0], [1], [0, 0, 1, 1], [], []>} : vector<16x16xf32>, vector<16x8xf32>, vector<16x8xf32> -> vector<16x8xf32>
    %384 = vector.extract_strided_slice %11 {offsets = [8, 0], sizes = [8, 32], strides = [1, 1]} : vector<32x32xf32> to vector<8x32xf32>
    %cst_139 = arith.constant dense<0.000000e+00> : vector<16x32xf32>
    %385 = tpu.matmul %383, %384, %cst_139 {dimension_numbers = #tpu.dot_dimension_numbers<[1], [0], [0], [1], [0, 0, 1, 1], [], []>} : vector<16x8xf32>, vector<8x32xf32>, vector<16x32xf32> -> vector<16x32xf32>
    %386 = arith.addf %380, %385 : vector<16x32xf32>
    %387 = vector.extract_strided_slice %349 {offsets = [0, 80], sizes = [16, 8], strides = [1, 1]} : vector<16x96xf32> to vector<16x8xf32>
    %388 = vector.extract_strided_slice %373 {offsets = [32, 0], sizes = [16, 16], strides = [1, 1]} : vector<64x16xf32> to vector<16x16xf32>
    %cst_140 = arith.constant dense<0.000000e+00> : vector<16x8xf32>
    %389 = tpu.matmul %388, %387, %cst_140 {dimension_numbers = #tpu.dot_dimension_numbers<[1], [0], [0], [1], [0, 0, 1, 1], [], []>} : vector<16x16xf32>, vector<16x8xf32>, vector<16x8xf32> -> vector<16x8xf32>
    %390 = vector.extract_strided_slice %11 {offsets = [16, 0], sizes = [8, 32], strides = [1, 1]} : vector<32x32xf32> to vector<8x32xf32>
    %cst_141 = arith.constant dense<0.000000e+00> : vector<16x32xf32>
    %391 = tpu.matmul %389, %390, %cst_141 {dimension_numbers = #tpu.dot_dimension_numbers<[1], [0], [0], [1], [0, 0, 1, 1], [], []>} : vector<16x8xf32>, vector<8x32xf32>, vector<16x32xf32> -> vector<16x32xf32>
    %392 = arith.addf %386, %391 : vector<16x32xf32>
    %393 = vector.extract_strided_slice %349 {offsets = [0, 88], sizes = [16, 8], strides = [1, 1]} : vector<16x96xf32> to vector<16x8xf32>
    %394 = vector.extract_strided_slice %373 {offsets = [48, 0], sizes = [16, 16], strides = [1, 1]} : vector<64x16xf32> to vector<16x16xf32>
    %cst_142 = arith.constant dense<0.000000e+00> : vector<16x8xf32>
    %395 = tpu.matmul %394, %393, %cst_142 {dimension_numbers = #tpu.dot_dimension_numbers<[1], [0], [0], [1], [0, 0, 1, 1], [], []>} : vector<16x16xf32>, vector<16x8xf32>, vector<16x8xf32> -> vector<16x8xf32>
    %396 = vector.extract_strided_slice %11 {offsets = [24, 0], sizes = [8, 32], strides = [1, 1]} : vector<32x32xf32> to vector<8x32xf32>
    %cst_143 = arith.constant dense<0.000000e+00> : vector<16x32xf32>
    %397 = tpu.matmul %395, %396, %cst_143 {dimension_numbers = #tpu.dot_dimension_numbers<[1], [0], [0], [1], [0, 0, 1, 1], [], []>} : vector<16x8xf32>, vector<8x32xf32>, vector<16x32xf32> -> vector<16x32xf32>
    %398 = arith.addf %392, %397 : vector<16x32xf32>
    %399 = tpu.concatenate %346, %398 in 0 : vector<16x32xf32>, vector<16x32xf32> -> vector<32x32xf32>
    %400 = arith.addf %22, %399 : vector<32x32xf32>
    %401 = arith.addf %17, %180 : vector<16x32xf32>
    %402 = vector.extract_strided_slice %0 {offsets = [6, 0], sizes = [1, 32], strides = [1, 1]} : vector<8x32xf32> to vector<1x32xf32>
    %403 = vector.extract_strided_slice %0 {offsets = [7, 0], sizes = [1, 32], strides = [1, 1]} : vector<8x32xf32> to vector<1x32xf32>
    %cst_144 = arith.constant dense<0.000000e+00> : vector<32xf32>
    %404 = vector.multi_reduction <add>, %400, %cst_144 [1] : vector<32x32xf32> to vector<32xf32>
    %405 = vector.shape_cast %404 : vector<32xf32> to vector<32x1xf32>
    %cst_145 = arith.constant 3.200000e+01 : f32
    %406 = vector.broadcast %cst_145 : f32 to vector<32x1xf32>
    %407 = arith.divf %405, %406 : vector<32x1xf32>
    %408 = vector.broadcast %407 : vector<32x1xf32> to vector<32x32xf32>
    %409 = arith.subf %400, %408 : vector<32x32xf32>
    %410 = arith.mulf %409, %409 : vector<32x32xf32>
    %cst_146 = arith.constant dense<0.000000e+00> : vector<32xf32>
    %411 = vector.multi_reduction <add>, %410, %cst_146 [1] : vector<32x32xf32> to vector<32xf32>
    %412 = vector.shape_cast %411 : vector<32xf32> to vector<32x1xf32>
    %cst_147 = arith.constant 3.200000e+01 : f32
    %413 = vector.broadcast %cst_147 : f32 to vector<32x1xf32>
    %414 = arith.divf %412, %413 : vector<32x1xf32>
    %cst_148 = arith.constant 9.99999974E-6 : f32
    %415 = vector.broadcast %cst_148 : f32 to vector<32x1xf32>
    %416 = arith.addf %414, %415 : vector<32x1xf32>
    %417 = math.rsqrt %416 : vector<32x1xf32>
    %418 = vector.broadcast %417 : vector<32x1xf32> to vector<32x32xf32>
    %419 = arith.mulf %409, %418 : vector<32x32xf32>
    %420 = vector.broadcast %402 : vector<1x32xf32> to vector<32x32xf32>
    %421 = arith.mulf %419, %420 : vector<32x32xf32>
    %422 = vector.broadcast %403 : vector<1x32xf32> to vector<32x32xf32>
    %423 = arith.addf %421, %422 : vector<32x32xf32>
    %424 = vector.extract_strided_slice %0 {offsets = [4, 0], sizes = [1, 32], strides = [1, 1]} : vector<8x32xf32> to vector<1x32xf32>
    %425 = vector.extract_strided_slice %0 {offsets = [5, 0], sizes = [1, 32], strides = [1, 1]} : vector<8x32xf32> to vector<1x32xf32>
    %cst_149 = arith.constant dense<0.000000e+00> : vector<16xf32>
    %426 = vector.multi_reduction <add>, %401, %cst_149 [1] : vector<16x32xf32> to vector<16xf32>
    %427 = vector.shape_cast %426 : vector<16xf32> to vector<16x1xf32>
    %cst_150 = arith.constant 3.200000e+01 : f32
    %428 = vector.broadcast %cst_150 : f32 to vector<16x1xf32>
    %429 = arith.divf %427, %428 : vector<16x1xf32>
    %430 = vector.broadcast %429 : vector<16x1xf32> to vector<16x32xf32>
    %431 = arith.subf %401, %430 : vector<16x32xf32>
    %432 = arith.mulf %431, %431 : vector<16x32xf32>
    %cst_151 = arith.constant dense<0.000000e+00> : vector<16xf32>
    %433 = vector.multi_reduction <add>, %432, %cst_151 [1] : vector<16x32xf32> to vector<16xf32>
    %434 = vector.shape_cast %433 : vector<16xf32> to vector<16x1xf32>
    %cst_152 = arith.constant 3.200000e+01 : f32
    %435 = vector.broadcast %cst_152 : f32 to vector<16x1xf32>
    %436 = arith.divf %434, %435 : vector<16x1xf32>
    %cst_153 = arith.constant 9.99999974E-6 : f32
    %437 = vector.broadcast %cst_153 : f32 to vector<16x1xf32>
    %438 = arith.addf %436, %437 : vector<16x1xf32>
    %439 = math.rsqrt %438 : vector<16x1xf32>
    %440 = vector.broadcast %439 : vector<16x1xf32> to vector<16x32xf32>
    %441 = arith.mulf %431, %440 : vector<16x32xf32>
    %442 = vector.broadcast %424 : vector<1x32xf32> to vector<16x32xf32>
    %443 = arith.mulf %441, %442 : vector<16x32xf32>
    %444 = vector.broadcast %425 : vector<1x32xf32> to vector<16x32xf32>
    %445 = arith.addf %443, %444 : vector<16x32xf32>
    %c0_154 = arith.constant 0 : index
    %c0_155 = arith.constant 0 : index
    %446 = vector.load %arg17[%c0_154, %c0_155] : memref<32x64xf32, #tpu.memory_space<vmem>>, vector<32x64xf32>
    %cst_156 = arith.constant dense<0.000000e+00> : vector<32x64xf32>
    %447 = tpu.matmul %423, %446, %cst_156 {dimension_numbers = #tpu.dot_dimension_numbers<[1], [0], [0], [1], [0, 0, 1, 1], [], []>} : vector<32x32xf32>, vector<32x64xf32>, vector<32x64xf32> -> vector<32x64xf32>
    %c0_157 = arith.constant 0 : index
    %c0_158 = arith.constant 0 : index
    %448 = vector.load %arg18[%c0_157, %c0_158] : memref<1x64xf32, #tpu.memory_space<vmem>>, vector<1x64xf32>
    %449 = vector.broadcast %448 : vector<1x64xf32> to vector<32x64xf32>
    %450 = arith.addf %447, %449 : vector<32x64xf32>
    %cst_159 = arith.constant 0.000000e+00 : f32
    %451 = vector.broadcast %cst_159 : f32 to vector<32x64xf32>
    %452 = arith.maximumf %450, %451 : vector<32x64xf32>
    %c0_160 = arith.constant 0 : index
    %c0_161 = arith.constant 0 : index
    %453 = vector.load %arg19[%c0_160, %c0_161] : memref<64x32xf32, #tpu.memory_space<vmem>>, vector<64x32xf32>
    %cst_162 = arith.constant dense<0.000000e+00> : vector<32x32xf32>
    %454 = tpu.matmul %452, %453, %cst_162 {dimension_numbers = #tpu.dot_dimension_numbers<[1], [0], [0], [1], [0, 0, 1, 1], [], []>} : vector<32x64xf32>, vector<64x32xf32>, vector<32x32xf32> -> vector<32x32xf32>
    %c0_163 = arith.constant 0 : index
    %c0_164 = arith.constant 0 : index
    %455 = vector.load %arg20[%c0_163, %c0_164] : memref<1x32xf32, #tpu.memory_space<vmem>>, vector<1x32xf32>
    %456 = vector.broadcast %455 : vector<1x32xf32> to vector<32x32xf32>
    %457 = arith.addf %454, %456 : vector<32x32xf32>
    %c0_165 = arith.constant 0 : index
    %c0_166 = arith.constant 0 : index
    %458 = vector.load %arg21[%c0_165, %c0_166] : memref<32x64xf32, #tpu.memory_space<vmem>>, vector<32x64xf32>
    %cst_167 = arith.constant dense<0.000000e+00> : vector<16x64xf32>
    %459 = tpu.matmul %445, %458, %cst_167 {dimension_numbers = #tpu.dot_dimension_numbers<[1], [0], [0], [1], [0, 0, 1, 1], [], []>} : vector<16x32xf32>, vector<32x64xf32>, vector<16x64xf32> -> vector<16x64xf32>
    %c0_168 = arith.constant 0 : index
    %c0_169 = arith.constant 0 : index
    %460 = vector.load %arg22[%c0_168, %c0_169] : memref<1x64xf32, #tpu.memory_space<vmem>>, vector<1x64xf32>
    %461 = vector.broadcast %460 : vector<1x64xf32> to vector<16x64xf32>
    %462 = arith.addf %459, %461 : vector<16x64xf32>
    %cst_170 = arith.constant 0.000000e+00 : f32
    %463 = vector.broadcast %cst_170 : f32 to vector<16x64xf32>
    %464 = arith.maximumf %462, %463 : vector<16x64xf32>
    %c0_171 = arith.constant 0 : index
    %c0_172 = arith.constant 0 : index
    %465 = vector.load %arg23[%c0_171, %c0_172] : memref<64x32xf32, #tpu.memory_space<vmem>>, vector<64x32xf32>
    %cst_173 = arith.constant dense<0.000000e+00> : vector<16x32xf32>
    %466 = tpu.matmul %464, %465, %cst_173 {dimension_numbers = #tpu.dot_dimension_numbers<[1], [0], [0], [1], [0, 0, 1, 1], [], []>} : vector<16x64xf32>, vector<64x32xf32>, vector<16x32xf32> -> vector<16x32xf32>
    %c0_174 = arith.constant 0 : index
    %c0_175 = arith.constant 0 : index
    %467 = vector.load %arg24[%c0_174, %c0_175] : memref<1x32xf32, #tpu.memory_space<vmem>>, vector<1x32xf32>
    %468 = vector.broadcast %467 : vector<1x32xf32> to vector<16x32xf32>
    %469 = arith.addf %466, %468 : vector<16x32xf32>
    %470 = arith.addf %401, %469 : vector<16x32xf32>
    %471 = arith.addf %400, %457 : vector<32x32xf32>
    %472 = vector.extract_strided_slice %470 {offsets = [0, 0], sizes = [8, 32], strides = [1, 1]} : vector<16x32xf32> to vector<8x32xf32>
    %c0_176 = arith.constant 0 : index
    %c0_177 = arith.constant 0 : index
    %c0_178 = arith.constant 0 : index
    %473 = vector.load %arg25[%c0_176, %c0_177, %c0_178] : memref<8x2x32xf32, #tpu.memory_space<vmem>>, vector<8x1x32xf32>
    %474 = vector.shape_cast %473 : vector<8x1x32xf32> to vector<8x32xf32>
    %475 = vector.shape_cast %472 : vector<8x32xf32> to vector<8x1x32xf32>
    tpu.vector_store %arg25[%c0_176, %c0_177, %c0_178], %475 {strides = array<i32>} : memref<8x2x32xf32, #tpu.memory_space<vmem>>, vector<8x1x32xf32>,
    %476 = vector.extract_strided_slice %471 {offsets = [0, 0], sizes = [16, 32], strides = [1, 1]} : vector<32x32xf32> to vector<16x32xf32>
    %c0_179 = arith.constant 0 : index
    %c0_180 = arith.constant 0 : index
    %c0_181 = arith.constant 0 : index
    %477 = vector.load %arg26[%c0_179, %c0_180, %c0_181] : memref<16x2x32xf32, #tpu.memory_space<vmem>>, vector<16x1x32xf32>
    %478 = vector.shape_cast %477 : vector<16x1x32xf32> to vector<16x32xf32>
    %479 = vector.shape_cast %476 : vector<16x32xf32> to vector<16x1x32xf32>
    tpu.vector_store %arg26[%c0_179, %c0_180, %c0_181], %479 {strides = array<i32>} : memref<16x2x32xf32, #tpu.memory_space<vmem>>, vector<16x1x32xf32>,
    %480 = vector.extract_strided_slice %470 {offsets = [8, 0], sizes = [8, 32], strides = [1, 1]} : vector<16x32xf32> to vector<8x32xf32>
    %c0_182 = arith.constant 0 : index
    %c1_183 = arith.constant 1 : index
    %c0_184 = arith.constant 0 : index
    %481 = vector.load %arg25[%c0_182, %c1_183, %c0_184] : memref<8x2x32xf32, #tpu.memory_space<vmem>>, vector<8x1x32xf32>
    %482 = vector.shape_cast %481 : vector<8x1x32xf32> to vector<8x32xf32>
    %483 = vector.shape_cast %480 : vector<8x32xf32> to vector<8x1x32xf32>
    tpu.vector_store %arg25[%c0_182, %c1_183, %c0_184], %483 {strides = array<i32>} : memref<8x2x32xf32, #tpu.memory_space<vmem>>, vector<8x1x32xf32>,
    %484 = vector.extract_strided_slice %471 {offsets = [16, 0], sizes = [16, 32], strides = [1, 1]} : vector<32x32xf32> to vector<16x32xf32>
    %c0_185 = arith.constant 0 : index
    %c1_186 = arith.constant 1 : index
    %c0_187 = arith.constant 0 : index
    %485 = vector.load %arg26[%c0_185, %c1_186, %c0_187] : memref<16x2x32xf32, #tpu.memory_space<vmem>>, vector<16x1x32xf32>
    %486 = vector.shape_cast %485 : vector<16x1x32xf32> to vector<16x32xf32>
    %487 = vector.shape_cast %484 : vector<16x32xf32> to vector<16x1x32xf32>
    tpu.vector_store %arg26[%c0_185, %c1_186, %c0_187], %487 {strides = array<i32>} : memref<16x2x32xf32, #tpu.memory_space<vmem>>, vector<16x1x32xf32>,
    return
  }
  func.func @transform_0(%arg0: i32) -> (i32, i32, i32) {
    %c0_i32 = arith.constant 0 : i32
    %c0_i32_0 = arith.constant 0 : i32
    %c0_i32_1 = arith.constant 0 : i32
    %c0_i32_2 = arith.constant 0 : i32
    return %c0_i32, %c0_i32_0, %c0_i32_1 : i32, i32, i32
  }
  func.func @transform_1(%arg0: i32) -> (i32, i32, i32) {
    %c0_i32 = arith.constant 0 : i32
    %c0_i32_0 = arith.constant 0 : i32
    %c0_i32_1 = arith.constant 0 : i32
    %c0_i32_2 = arith.constant 0 : i32
    return %c0_i32, %c0_i32_0, %c0_i32_1 : i32, i32, i32
  }
  func.func @transform_2(%arg0: i32) -> (i32, i32, i32) {
    %c0_i32 = arith.constant 0 : i32
    %c0_i32_0 = arith.constant 0 : i32
    %c0_i32_1 = arith.constant 0 : i32
    %c0_i32_2 = arith.constant 0 : i32
    return %c0_i32, %c0_i32_0, %c0_i32_1 : i32, i32, i32
  }
  func.func @transform_3(%arg0: i32) -> (i32, i32) {
    %c0_i32 = arith.constant 0 : i32
    %c0_i32_0 = arith.constant 0 : i32
    %c0_i32_1 = arith.constant 0 : i32
    return %c0_i32, %c0_i32_0 : i32, i32
  }
  func.func @transform_4(%arg0: i32) -> (i32, i32) {
    %c0_i32 = arith.constant 0 : i32
    %c0_i32_0 = arith.constant 0 : i32
    %c0_i32_1 = arith.constant 0 : i32
    return %c0_i32, %c0_i32_0 : i32, i32
  }
  func.func @transform_5(%arg0: i32) -> (i32, i32) {
    %c0_i32 = arith.constant 0 : i32
    %c0_i32_0 = arith.constant 0 : i32
    %c0_i32_1 = arith.constant 0 : i32
    return %c0_i32, %c0_i32_0 : i32, i32
  }
  func.func @transform_6(%arg0: i32) -> (i32, i32) {
    %c0_i32 = arith.constant 0 : i32
    %c0_i32_0 = arith.constant 0 : i32
    %c0_i32_1 = arith.constant 0 : i32
    return %c0_i32, %c0_i32_0 : i32, i32
  }
  func.func @transform_7(%arg0: i32) -> (i32, i32) {
    %c0_i32 = arith.constant 0 : i32
    %c0_i32_0 = arith.constant 0 : i32
    %c0_i32_1 = arith.constant 0 : i32
    return %c0_i32, %c0_i32_0 : i32, i32
  }
  func.func @transform_8(%arg0: i32) -> (i32, i32) {
    %c0_i32 = arith.constant 0 : i32
    %c0_i32_0 = arith.constant 0 : i32
    %c0_i32_1 = arith.constant 0 : i32
    return %c0_i32, %c0_i32_0 : i32, i32
  }
  func.func @transform_9(%arg0: i32) -> (i32, i32) {
    %c0_i32 = arith.constant 0 : i32
    %c0_i32_0 = arith.constant 0 : i32
    %c0_i32_1 = arith.constant 0 : i32
    return %c0_i32, %c0_i32_0 : i32, i32
  }
  func.func @transform_10(%arg0: i32) -> (i32, i32) {
    %c0_i32 = arith.constant 0 : i32
    %c0_i32_0 = arith.constant 0 : i32
    %c0_i32_1 = arith.constant 0 : i32
    return %c0_i32, %c0_i32_0 : i32, i32
  }
  func.func @transform_11(%arg0: i32) -> (i32, i32) {
    %c0_i32 = arith.constant 0 : i32
    %c0_i32_0 = arith.constant 0 : i32
    %c0_i32_1 = arith.constant 0 : i32
    return %c0_i32, %c0_i32_0 : i32, i32
  }
  func.func @transform_12(%arg0: i32) -> (i32, i32) {
    %c0_i32 = arith.constant 0 : i32
    %c0_i32_0 = arith.constant 0 : i32
    %c0_i32_1 = arith.constant 0 : i32
    return %c0_i32, %c0_i32_0 : i32, i32
  }
  func.func @transform_13(%arg0: i32) -> (i32, i32) {
    %c0_i32 = arith.constant 0 : i32
    %c0_i32_0 = arith.constant 0 : i32
    %c0_i32_1 = arith.constant 0 : i32
    return %c0_i32, %c0_i32_0 : i32, i32
  }
  func.func @transform_14(%arg0: i32) -> (i32, i32) {
    %c0_i32 = arith.constant 0 : i32
    %c0_i32_0 = arith.constant 0 : i32
    %c0_i32_1 = arith.constant 0 : i32
    return %c0_i32, %c0_i32_0 : i32, i32
  }
  func.func @transform_15(%arg0: i32) -> (i32, i32) {
    %c0_i32 = arith.constant 0 : i32
    %c0_i32_0 = arith.constant 0 : i32
    %c0_i32_1 = arith.constant 0 : i32
    return %c0_i32, %c0_i32_0 : i32, i32
  }
  func.func @transform_16(%arg0: i32) -> (i32, i32) {
    %c0_i32 = arith.constant 0 : i32
    %c0_i32_0 = arith.constant 0 : i32
    %c0_i32_1 = arith.constant 0 : i32
    return %c0_i32, %c0_i32_0 : i32, i32
  }
  func.func @transform_17(%arg0: i32) -> (i32, i32) {
    %c0_i32 = arith.constant 0 : i32
    %c0_i32_0 = arith.constant 0 : i32
    %c0_i32_1 = arith.constant 0 : i32
    return %c0_i32, %c0_i32_0 : i32, i32
  }
  func.func @transform_18(%arg0: i32) -> (i32, i32) {
    %c0_i32 = arith.constant 0 : i32
    %c0_i32_0 = arith.constant 0 : i32
    %c0_i32_1 = arith.constant 0 : i32
    return %c0_i32, %c0_i32_0 : i32, i32
  }
  func.func @transform_19(%arg0: i32) -> (i32, i32) {
    %c0_i32 = arith.constant 0 : i32
    %c0_i32_0 = arith.constant 0 : i32
    %c0_i32_1 = arith.constant 0 : i32
    return %c0_i32, %c0_i32_0 : i32, i32
  }
  func.func @transform_20(%arg0: i32) -> (i32, i32) {
    %c0_i32 = arith.constant 0 : i32
    %c0_i32_0 = arith.constant 0 : i32
    %c0_i32_1 = arith.constant 0 : i32
    return %c0_i32, %c0_i32_0 : i32, i32
  }
  func.func @transform_21(%arg0: i32) -> (i32, i32) {
    %c0_i32 = arith.constant 0 : i32
    %c0_i32_0 = arith.constant 0 : i32
    %c0_i32_1 = arith.constant 0 : i32
    return %c0_i32, %c0_i32_0 : i32, i32
  }
  func.func @transform_22(%arg0: i32) -> (i32, i32) {
    %c0_i32 = arith.constant 0 : i32
    %c0_i32_0 = arith.constant 0 : i32
    %c0_i32_1 = arith.constant 0 : i32
    return %c0_i32, %c0_i32_0 : i32, i32
  }
  func.func @transform_23(%arg0: i32) -> (i32, i32) {
    %c0_i32 = arith.constant 0 : i32
    %c0_i32_0 = arith.constant 0 : i32
    %c0_i32_1 = arith.constant 0 : i32
    return %c0_i32, %c0_i32_0 : i32, i32
  }
  func.func @transform_24(%arg0: i32) -> (i32, i32, i32) {
    %c0_i32 = arith.constant 0 : i32
    %c0_i32_0 = arith.constant 0 : i32
    %c0_i32_1 = arith.constant 0 : i32
    %c0_i32_2 = arith.constant 0 : i32
    return %c0_i32, %c0_i32_0, %c0_i32_1 : i32, i32, i32
  }
  func.func @transform_25(%arg0: i32) -> (i32, i32, i32) {
    %c0_i32 = arith.constant 0 : i32
    %c0_i32_0 = arith.constant 0 : i32
    %c0_i32_1 = arith.constant 0 : i32
    %c0_i32_2 = arith.constant 0 : i32
    return %c0_i32, %c0_i32_0, %c0_i32_1 : i32, i32, i32
  }
}

</mosaic_0001>

<bundles_post_ra>
// kernel: transformer_encoder_layer_packed.1
= control target key start
LH: loop header
LB: loop body
LE: loop exit
PB: predicated region body
PF: predicated region fallthrough
CT: control target
= control target key end

     0   :  { %s11781_s0 = inlined_call_operand.hbm [shape: f32[8,2,32], index: 0, kind: input, shape index: {}]   ;;  %s11782_s1 = inlined_call_operand.vmem [shape: f32[16,2,32], index: 1, kind: input, shape index: {}]   ;;  %s11783_s2 = inlined_call_operand.vmem [shape: f32[16,2,32], index: 2, kind: input, shape index: {}]   ;;  %s11784_s3 = inlined_call_operand.hbm [shape: f32[8,32], index: 3, kind: input, shape index: {}]   ;;  %s11785_s4 = inlined_call_operand.vmem [shape: f32[32,96], index: 4, kind: input, shape index: {}]   ;;  %s11786_s5 = inlined_call_operand.hbm [shape: f32[1,96], index: 5, kind: input, shape index: {}]   ;;  %s11787_s6 = inlined_call_operand.vmem [shape: f32[32,32], index: 6, kind: input, shape index: {}]   ;;  %s11788_s7 = inlined_call_operand.hbm [shape: f32[1,32], index: 7, kind: input, shape index: {}]   ;;  %s11789_s8 = inlined_call_operand.vmem [shape: f32[32,96], index: 8, kind: input, shape index: {}]   ;;  %s11790_s9 = inlined_call_operand.hbm [shape: f32[1,96], index: 9, kind: input, shape index: {}]   ;;  %s11791_s10 = inlined_call_operand.hbm [shape: f32[32,32], index: 10, kind: input, shape index: {}]   ;;  %s11792_s11 = inlined_call_operand.hbm [shape: f32[1,32], index: 11, kind: input, shape index: {}]   ;;  %s11793_s12 = inlined_call_operand.vmem [shape: f32[32,96], index: 12, kind: input, shape index: {}]   ;;  %s11794_s13 = inlined_call_operand.hbm [shape: f32[1,96], index: 13, kind: input, shape index: {}]   ;;  %s11795_s14 = inlined_call_operand.hbm [shape: f32[32,32], index: 14, kind: input, shape index: {}]   ;;  %s11796_s15 = inlined_call_operand.hbm [shape: f32[1,32], index: 15, kind: input, shape index: {}]   ;;  %s11797_s16 = inlined_call_operand.hbm [shape: f32[32,64], index: 16, kind: input, shape index: {}]   ;;  %s11798_s17 = inlined_call_operand.hbm [shape: f32[1,64], index: 17, kind: input, shape index: {}]   ;;  %s11799_s18 = inlined_call_operand.vmem [shape: f32[64,32], index: 18, kind: input, shape index: {}]   ;;  %s11800_s19 = inlined_call_operand.hbm [shape: f32[1,32], index: 19, kind: input, shape index: {}]   ;;  %s11801_s20 = inlined_call_operand.hbm [shape: f32[32,64], index: 20, kind: input, shape index: {}]   ;;  %s11802_s21 = inlined_call_operand.hbm [shape: f32[1,64], index: 21, kind: input, shape index: {}]   ;;  %s11803_s22 = inlined_call_operand.vmem [shape: f32[64,32], index: 22, kind: input, shape index: {}]   ;;  %s11804_s23 = inlined_call_operand.hbm [shape: f32[1,32], index: 23, kind: input, shape index: {}]   ;;  %s11805_s24 = inlined_call_operand.hbm [shape: f32[8,2,32], index: 24, kind: output, shape index: {0}]   ;;  %s11806_s25 = inlined_call_operand.hbm [shape: f32[16,2,32], index: 25, kind: output, shape index: {1}]  }
   0x1   :  { %11812 = sst [smem:[#allocation42_spill]] %s11781_s0 }
   0x2   :  { %11813 = sst [smem:[#allocation43_spill]] %s11782_s1 }
   0x3   :  { %11814 = sst [smem:[#allocation44_spill]] %s11783_s2 }
   0x4   :  { %11815 = sst [smem:[#allocation45_spill]] %s11784_s3 }
   0x5   :  { %11816 = sst [smem:[#allocation46_spill]] %s11785_s4 }
   0x6   :  { %11817 = sst [smem:[#allocation47_spill]] %s11786_s5 }
   0x7   :  { %11818 = sst [smem:[#allocation48_spill]] %s11787_s6 }
   0x8   :  { %11819 = sst [smem:[#allocation49_spill]] %s11788_s7 }
   0x9   :  { %11820 = sst [smem:[#allocation50_spill]] %s11789_s8 }
   0xa   :  { %11821 = sst [smem:[#allocation51_spill]] %s11790_s9 }
   0xb   :  { %31 = vsyncpa [#allocation3], 0 }
   0xc   :  { %32 = vsyncpa [#allocation6], 0 }
   0xd   :  { %33 = vsyncpa [#allocation9], 0 }
   0xe   :  { %34 = vsyncpa [#allocation12], 0 }
   0xf   :  { %35 = vsyncpa [#allocation15], 0 }
  0x10   :  { %36 = vsyncpa [#allocation18], 0 }
  0x11   :  { %37 = vsyncpa [#allocation21], 0 }
  0x12   :  { %38 = vsyncpa [#allocation24], 0 }
  0x13   :  { %39 = vsyncpa [#allocation27], 0 }
  0x14   :  { %40 = vsyncpa [#allocation4], 0 }
  0x15   :  { %41 = vsyncpa [#allocation30], 0  ;;  %s10101_s29 = smov [#allocation5]   ;;  %s10102_s6 = smov [#allocation8]  }
  0x16   :  { %s64_s2 = sshll.u32 %s10101_s29, 4  ;;  %s88_s30 = sshll.u32 %s10102_s6, 4  ;;  %s65_s2 = int_to_ptr.vmem [resolvable:$true] %s64_s2  ;;  %s89_s30 = int_to_ptr.vmem [resolvable:$true] %s88_s30 }
  0x17   :  { %s9727_s7 = scalar_lea.vmem %s65_s2, 128  ;;  %p9732_p1 = scmp.lt.s32.totalorder %s65_s2, %s65_s2 }
  0x18   :  { %p9728_p0 = scmp.ne.s32.totalorder %s65_s2, %s9727_s7  ;;  %p9733_p2 = scmp.lt.s32.totalorder %s9727_s7, %s9727_s7 }
  0x1a   :  { %p9734_p3 = por %p9733_p2, %p9732_p1 }
  0x1c   :  { %p9735_p4 = pnand %p9734_p3, %p9728_p0 }
  0x1e   :  { %9738 = shalt.err (!%p9735_p4)
}
  0x1f   :  { %s11822_s1 = sld [smem:[#allocation45_spill]]  ;;  %s9747_s8 = scalar_lea.vmem %s89_s30, 16 }
  0x20   :  { %p9748_p5 = scmp.ne.s32.totalorder %s89_s30, %s9747_s8  ;;  %s9751_s27 = scalar_lea.vmem %s89_s30, 32 }
  0x21   :  { %p9752_p6 = scmp.lt.s32.totalorder %s89_s30, %s89_s30  ;;  %p9753_p7 = scmp.lt.s32.totalorder %s9751_s27, %s9747_s8 }
  0x23   :  { %p9754_p8 = por %p9753_p7, %p9752_p6 }
  0x25   :  { %67 = dma.hbm_to_vmem [thread:$0]  %s11822_s1, 128, %s65_s2, [#allocation6]  }
  0x26   :  { %p9755_p9 = pnand %p9754_p8, %p9748_p5 }
  0x28   :  { %9758 = shalt.err (!%p9755_p9)
}
  0x29   :  { %s11823_s9 = sld [smem:[#allocation49_spill]]  ;;  %s10103_s5 = smov [#allocation11]  }
  0x2a   :  { %s109_s0 = sshll.u32 %s10103_s5, 4  ;;  %s110_s0 = int_to_ptr.vmem [resolvable:$true] %s109_s0 }
  0x2b   :  { %s9767_s29 = scalar_lea.vmem %s110_s0, 512  ;;  %p9772_p11 = scmp.lt.s32.totalorder %s110_s0, %s110_s0 }
  0x2c   :  { %p9768_p10 = scmp.ne.s32.totalorder %s110_s0, %s9767_s29  ;;  %p9773_p12 = scmp.lt.s32.totalorder %s9767_s29, %s9767_s29 }
  0x2e   :  { %p9774_p13 = por %p9773_p12, %p9772_p11 }
  0x2f   :  { %91 = dma.hbm_to_vmem [thread:$0]  %s11823_s9, 16, %s89_s30, [#allocation9]  }
  0x30   :  { %p9775_p0 = pnand %p9774_p13, %p9768_p10 }
  0x32   :  { %9778 = shalt.err (!%p9775_p0)
}
  0x33   :  { %s10104_s2 = smov 128   ;;  %s10105_s6 = smov 8  }
  0x34   :  { %115 = dma.hbm_to_vmem [thread:$0]  %s11791_s10, 512, %s110_s0, [#allocation12], %s10104_s2, %s10104_s2, %s10105_s6  }
  0x35   :  { %s10106_s30 = smov [#allocation14]   ;;  %s10107_s1 = smov [#allocation17]  }
  0x36   :  { %s134_s26 = sshll.u32 %s10106_s30, 4  ;;  %s156_s8 = sshll.u32 %s10107_s1, 4  ;;  %s135_s26 = int_to_ptr.vmem [resolvable:$true] %s134_s26  ;;  %s157_s8 = int_to_ptr.vmem [resolvable:$true] %s156_s8 }
  0x37   :  { %s9787_s27 = scalar_lea.vmem %s135_s26, 16  ;;  %s9791_s4 = scalar_lea.vmem %s135_s26, 32 }
  0x38   :  { %p9788_p1 = scmp.ne.s32.totalorder %s135_s26, %s9787_s27  ;;  %p9792_p2 = scmp.lt.s32.totalorder %s135_s26, %s135_s26 }
  0x39   :  { %p9793_p3 = scmp.lt.s32.totalorder %s9791_s4, %s9787_s27 }
  0x3b   :  { %p9794_p4 = por %p9793_p3, %p9792_p2 }
  0x3d   :  { %p9795_p5 = pnand %p9794_p4, %p9788_p1 }
  0x3f   :  { %9798 = shalt.err (!%p9795_p5)
}
  0x40   :  { %137 = dma.hbm_to_vmem [thread:$0]  %s11794_s13, 16, %s135_s26, [#allocation15]  }
  0x41   :  { %s9807_s5 = scalar_lea.vmem %s157_s8, 16  ;;  %s9811_s10 = scalar_lea.vmem %s157_s8, 32 }
  0x42   :  { %p9808_p6 = scmp.ne.s32.totalorder %s157_s8, %s9807_s5  ;;  %p9812_p7 = scmp.lt.s32.totalorder %s157_s8, %s157_s8 }
  0x43   :  { %p9813_p8 = scmp.lt.s32.totalorder %s9811_s10, %s9807_s5 }
  0x45   :  { %p9814_p9 = por %p9813_p8, %p9812_p7 }
  0x47   :  { %p9815_p10 = pnand %p9814_p9, %p9808_p6 }
  0x49   :  { %9818 = shalt.err (!%p9815_p10)
}
  0x4a   :  { %159 = dma.hbm_to_vmem [thread:$0]  %s11796_s15, 16, %s157_s8, [#allocation18]  }
  0x4b   :  { %s10108_s7 = smov [#allocation20]   ;;  %s10109_s30 = smov [#allocation23]  }
  0x4c   :  { %s178_s3 = sshll.u32 %s10108_s7, 4  ;;  %s199_s1 = sshll.u32 %s10109_s30, 4  ;;  %s179_s3 = int_to_ptr.vmem [resolvable:$true] %s178_s3  ;;  %s200_s1 = int_to_ptr.vmem [resolvable:$true] %s199_s1 }
  0x4d   :  { %s9827_s27 = scalar_lea.vmem %s179_s3, 16  ;;  %s9831_s13 = scalar_lea.vmem %s179_s3, 32 }
  0x4e   :  { %p9828_p11 = scmp.ne.s32.totalorder %s179_s3, %s9827_s27  ;;  %p9832_p12 = scmp.lt.s32.totalorder %s179_s3, %s179_s3 }
  0x4f   :  { %p9833_p13 = scmp.lt.s32.totalorder %s9831_s13, %s9827_s27 }
  0x51   :  { %p9834_p0 = por %p9833_p13, %p9832_p12 }
  0x53   :  { %p9835_p1 = pnand %p9834_p0, %p9828_p11 }
  0x55   :  { %9838 = shalt.err (!%p9835_p1)
}
  0x56   :  { %181 = dma.hbm_to_vmem [thread:$0]  %s11798_s17, 16, %s179_s3, [#allocation21]  }
  0x57   :  { %s9847_s28 = scalar_lea.vmem %s200_s1, 512  ;;  %p9852_p3 = scmp.lt.s32.totalorder %s200_s1, %s200_s1 }
  0x58   :  { %p9848_p2 = scmp.ne.s32.totalorder %s200_s1, %s9847_s28  ;;  %p9853_p4 = scmp.lt.s32.totalorder %s9847_s28, %s9847_s28 }
  0x5a   :  { %p9854_p5 = por %p9853_p4, %p9852_p3 }
  0x5c   :  { %p9855_p6 = pnand %p9854_p5, %p9848_p2 }
  0x5e   :  { %9858 = shalt.err (!%p9855_p6)
}
  0x5f   :  { %205 = dma.hbm_to_vmem [thread:$0]  %s11801_s20, 512, %s200_s1, [#allocation24], %s10104_s2, %s10104_s2, %s10105_s6  }
  0x60   :  { %s10110_s9 = smov [#allocation2]  }
  0x61   :  { %s47_s5 = sshll.u32 %s10110_s9, 4  ;;  %s48_s5 = int_to_ptr.vmem [resolvable:$true] %s47_s5 }
  0x62   :  { %s9867_s10 = scalar_lea.vmem %s48_s5, 256  ;;  %p9872_p8 = scmp.lt.s32.totalorder %s48_s5, %s48_s5 }
  0x63   :  { %p9868_p7 = scmp.ne.s32.totalorder %s48_s5, %s9867_s10  ;;  %p9873_p9 = scmp.lt.s32.totalorder %s9867_s10, %s9867_s10 }
  0x65   :  { %p9874_p10 = por %p9873_p9, %p9872_p8 }
  0x67   :  { %p9875_p11 = pnand %p9874_p10, %p9868_p7 }
  0x69   :  { %9878 = shalt.err (!%p9875_p11)
}
  0x6a   :  { %s10111_s17 = smov 32   ;;  %s10112_s0 = smov 2  }
  0x6b   :  { %s11824_s3 = sld [smem:[#allocation42_spill]]  ;;  %s10113_s20 = smov [#allocation7]  }
  0x6c   :  { %s76_s30 = sshll.u32 %s10113_s20, 4  ;;  %s10114_s1 = smov [#allocation10]   ;;  %s77_s30 = int_to_ptr.vmem [resolvable:$true] %s76_s30 }
  0x6d   :  { %s100_s27 = sshll.u32 %s10114_s1, 4  ;;  %s9887_s13 = scalar_lea.vmem %s77_s30, 16  ;;  %s101_s27 = int_to_ptr.vmem [resolvable:$true] %s100_s27 }
  0x6e   :  { %p9888_p12 = scmp.ne.s32.totalorder %s77_s30, %s9887_s13  ;;  %s9891_s26 = scalar_lea.vmem %s77_s30, 32 }
  0x6f   :  { %p9892_p13 = scmp.lt.s32.totalorder %s77_s30, %s77_s30  ;;  %p9893_p0 = scmp.lt.s32.totalorder %s9891_s26, %s9887_s13 }
  0x71   :  { %53 = dma.hbm_to_vmem [thread:$0]  %s11824_s3, 256, %s48_s5, [#allocation3], %s10111_s17, %s10111_s17, %s10112_s0  }
  0x72   :  { %p9894_p1 = por %p9893_p0, %p9892_p13 }
  0x74   :  { %p9895_p2 = pnand %p9894_p1, %p9888_p12 }
  0x76   :  { %9898 = shalt.err (!%p9895_p2)
}
  0x77   :  { %s11825_s15 = sld [smem:[#allocation47_spill]]  ;;  %s9907_s8 = scalar_lea.vmem %s101_s27, 16 }
  0x78   :  { %p9908_p3 = scmp.ne.s32.totalorder %s101_s27, %s9907_s8  ;;  %s9911_s9 = scalar_lea.vmem %s101_s27, 32 }
  0x79   :  { %p9912_p4 = scmp.lt.s32.totalorder %s101_s27, %s101_s27  ;;  %p9913_p5 = scmp.lt.s32.totalorder %s9911_s9, %s9907_s8 }
  0x7b   :  { %p9914_p6 = por %p9913_p5, %p9912_p4 }
  0x7d   :  { %79 = dma.hbm_to_vmem [thread:$0]  %s11825_s15, 16, %s77_s30, [#allocation6]  }
  0x7e   :  { %p9915_p7 = pnand %p9914_p6, %p9908_p3 }
  0x80   :  { %9918 = shalt.err (!%p9915_p7)
}
  0x81   :  { %s11826_s29 = sld [smem:[#allocation51_spill]]  ;;  %s10115_s7 = smov [#allocation13]  }
  0x82   :  { %s122_s3 = sshll.u32 %s10115_s7, 4  ;;  %s10116_s20 = smov [#allocation16]   ;;  %s123_s3 = int_to_ptr.vmem [resolvable:$true] %s122_s3 }
  0x83   :  { %s143_s1 = sshll.u32 %s10116_s20, 4  ;;  %s9927_s13 = scalar_lea.vmem %s123_s3, 16  ;;  %s144_s1 = int_to_ptr.vmem [resolvable:$true] %s143_s1 }
  0x84   :  { %p9928_p8 = scmp.ne.s32.totalorder %s123_s3, %s9927_s13  ;;  %s9931_s30 = scalar_lea.vmem %s123_s3, 32 }
  0x85   :  { %p9932_p9 = scmp.lt.s32.totalorder %s123_s3, %s123_s3  ;;  %p9933_p10 = scmp.lt.s32.totalorder %s9931_s30, %s9927_s13 }
  0x87   :  { %103 = dma.hbm_to_vmem [thread:$0]  %s11826_s29, 16, %s101_s27, [#allocation9]  }
  0x88   :  { %p9934_p11 = por %p9933_p10, %p9932_p9 }
  0x8a   :  { %p9935_p12 = pnand %p9934_p11, %p9928_p8 }
  0x8c   :  { %9938 = shalt.err (!%p9935_p12)
}
  0x8d   :  { %125 = dma.hbm_to_vmem [thread:$0]  %s11792_s11, 16, %s123_s3, [#allocation12]  }
  0x8e   :  { %s9947_s28 = scalar_lea.vmem %s144_s1, 512  ;;  %p9952_p0 = scmp.lt.s32.totalorder %s144_s1, %s144_s1 }
  0x8f   :  { %p9948_p13 = scmp.ne.s32.totalorder %s144_s1, %s9947_s28  ;;  %p9953_p1 = scmp.lt.s32.totalorder %s9947_s28, %s9947_s28 }
  0x91   :  { %p9954_p2 = por %p9953_p1, %p9952_p0 }
  0x93   :  { %p9955_p3 = pnand %p9954_p2, %p9948_p13 }
  0x95   :  { %9958 = shalt.err (!%p9955_p3)
}
  0x96   :  { %149 = dma.hbm_to_vmem [thread:$0]  %s11795_s14, 512, %s144_s1, [#allocation15], %s10104_s2, %s10104_s2, %s10105_s6  }
  0x97   :  { %s10117_s8 = smov [#allocation19]   ;;  %s10118_s5 = smov [#allocation22]  }
  0x98   :  { %s165_s9 = sshll.u32 %s10117_s8, 4  ;;  %s190_s10 = sshll.u32 %s10118_s5, 4  ;;  %s166_s9 = int_to_ptr.vmem [resolvable:$true] %s165_s9  ;;  %s191_s10 = int_to_ptr.vmem [resolvable:$true] %s190_s10 }
  0x99   :  { %s9967_s11 = scalar_lea.vmem %s166_s9, 512  ;;  %p9972_p5 = scmp.lt.s32.totalorder %s166_s9, %s166_s9 }
  0x9a   :  { %p9968_p4 = scmp.ne.s32.totalorder %s166_s9, %s9967_s11  ;;  %p9973_p6 = scmp.lt.s32.totalorder %s9967_s11, %s9967_s11 }
  0x9c   :  { %p9974_p7 = por %p9973_p6, %p9972_p5 }
  0x9e   :  { %p9975_p8 = pnand %p9974_p7, %p9968_p4 }
  0xa0   :  { %9978 = shalt.err (!%p9975_p8)
}
  0xa1   :  { %171 = dma.hbm_to_vmem [thread:$0]  %s11797_s16, 512, %s166_s9, [#allocation18], %s10104_s2, %s10104_s2, %s10105_s6  }
  0xa2   :  { %s9987_s14 = scalar_lea.vmem %s191_s10, 16  ;;  %s9991_s3 = scalar_lea.vmem %s191_s10, 32 }
  0xa3   :  { %p9988_p9 = scmp.ne.s32.totalorder %s191_s10, %s9987_s14  ;;  %p9992_p10 = scmp.lt.s32.totalorder %s191_s10, %s191_s10 }
  0xa4   :  { %p9993_p11 = scmp.lt.s32.totalorder %s9991_s3, %s9987_s14 }
  0xa6   :  { %p9994_p12 = por %p9993_p11, %p9992_p10 }
  0xa8   :  { %p9995_p13 = pnand %p9994_p12, %p9988_p9 }
  0xaa   :  { %9998 = shalt.err (!%p9995_p13)
}
  0xab   :  { %193 = dma.hbm_to_vmem [thread:$0]  %s11800_s19, 16, %s191_s10, [#allocation21]  }
  0xac   :  { %s10119_s13 = smov [#allocation25]   ;;  %s10120_s26 = smov [#allocation26]  }
  0xad   :  { %s212_s30 = sshll.u32 %s10119_s13, 4  ;;  %s224_s4 = sshll.u32 %s10120_s26, 4  ;;  %s213_s30 = int_to_ptr.vmem [resolvable:$true] %s212_s30  ;;  %s225_s4 = int_to_ptr.vmem [resolvable:$true] %s224_s4 }
  0xae   :  { %s10007_s28 = scalar_lea.vmem %s213_s30, 16  ;;  %s10011_s16 = scalar_lea.vmem %s213_s30, 32 }
  0xaf   :  { %p10008_p0 = scmp.ne.s32.totalorder %s213_s30, %s10007_s28  ;;  %p10012_p1 = scmp.lt.s32.totalorder %s213_s30, %s213_s30 }
  0xb0   :  { %p10013_p2 = scmp.lt.s32.totalorder %s10011_s16, %s10007_s28 }
  0xb2   :  { %p10014_p3 = por %p10013_p2, %p10012_p1 }
  0xb4   :  { %p10015_p4 = pnand %p10014_p3, %p10008_p0 }
  0xb6   :  { %10018 = shalt.err (!%p10015_p4)
}
  0xb7   :  { %215 = dma.hbm_to_vmem [thread:$0]  %s11802_s21, 16, %s213_s30, [#allocation24]  }
  0xb8   :  { %s10027_s27 = scalar_lea.vmem %s225_s4, 16  ;;  %s10031_s19 = scalar_lea.vmem %s225_s4, 32 }
  0xb9   :  { %p10028_p5 = scmp.ne.s32.totalorder %s225_s4, %s10027_s27  ;;  %p10032_p6 = scmp.lt.s32.totalorder %s225_s4, %s225_s4 }
  0xba   :  { %p10033_p7 = scmp.lt.s32.totalorder %s10031_s19, %s10027_s27 }
  0xbc   :  { %p10034_p8 = por %p10033_p7, %p10032_p6 }
  0xbe   :  { %p10035_p9 = pnand %p10034_p8, %p10028_p5 }
  0xc0   :  { %10038 = shalt.err (!%p10035_p9)
}
  0xc1   :  { %227 = dma.hbm_to_vmem [thread:$0]  %s11804_s23, 16, %s225_s4, [#allocation27]  }
  0xc2   :  { %10079 = dma.done.wait [#allocation3], 256  }
  0xc3   :  { %10080 = vsyncadd [#allocation3], 4294967040 }
  0xc4   :  { %10081 = dma.done.wait [#allocation6], 144  }
  0xc5   :  { %10082 = vsyncadd [#allocation6], 4294967152 }
  0xc6   :  { %10083 = dma.done.wait [#allocation9], 32  }
  0xc7   :  { %10084 = vsyncadd [#allocation9], 4294967264 }
  0xc8   :  { %10085 = dma.done.wait [#allocation12], 528  }
  0xc9   :  { %10086 = vsyncadd [#allocation12], 4294966768 }
  0xca   :  { %10087 = dma.done.wait [#allocation15], 528  }
  0xcb   :  { %10088 = vsyncadd [#allocation15], 4294966768 }
  0xcc   :  { %10089 = dma.done.wait [#allocation18], 528  }
  0xcd   :  { %10090 = vsyncadd [#allocation18], 4294966768 }
  0xce   :  { %10091 = dma.done.wait [#allocation21], 32  }
  0xcf   :  { %10092 = vsyncadd [#allocation21], 4294967264 }
  0xd0   :  { %10093 = dma.done.wait [#allocation24], 528  }
  0xd1   :  { %10094 = vsyncadd [#allocation24], 4294966768 }
  0xd2   :  { %10095 = dma.done.wait [#allocation27], 16  }
  0xd3   :  { %10096 = vsyncadd [#allocation27], 4294967280  ;;  %vm332_vm0 = vcmask 1041409   ;;  %vm335_vm1 = vcmask 1042434   ;;  %vm338_vm2 = vcmask 1043459   ;;  %vm341_vm3 = vcmask 1044484  }
  0xd4   :  { %v307_v0 = vld [vmem:[#allocation2] sm:$0x1]  ;;  %v308_v1 = vld [vmem:[#allocation2 + $0x2] sm:$0x1]  ;;  %v309_v2 = vld [vmem:[#allocation2 + $0x4] sm:$0x1] }
  0xd5   :  { %v310_v3 = vld [vmem:[#allocation2 + $0x6] sm:$0x1]  ;;  %v311_v4 = vld [vmem:[#allocation2 + $0x8] sm:$0x1]  ;;  %v312_v5 = vld [vmem:[#allocation2 + $0xa] sm:$0x1] }
  0xd6   :  { %v313_v6 = vld [vmem:[#allocation2 + $0xc] sm:$0x1]  ;;  %v331_v7 = vrot.slane %v308_v1, 7  ;;  %v334_v8 = vrot.slane %v309_v2, 6  ;;  %vm344_vm4 = vcmask 1045509   ;;  %vm347_vm5 = vcmask 1046534  }
  0xd7   :  { %v314_v9 = vld [vmem:[#allocation2 + $0xe] sm:$0x1]  ;;  %v337_v10 = vrot.slane %v310_v3, 5  ;;  %v340_v11 = vrot.slane %v311_v4, 4  ;;  %v343_v12 = vrot.slane %v312_v5, 3  ;;  %v346_v13 = vrot.slane %v313_v6, 2 }
  0xd8   :  { %v333_v14 = vsel %vm332_vm0, %v331_v7, %v307_v0  ;;  %v315_v15 = vld [vmem:[#allocation2 + $0x1] sm:$0x1]  ;;  %v316_v16 = vld [vmem:[#allocation2 + $0x3] sm:$0x1]  ;;  %v317_v17 = vld [vmem:[#allocation2 + $0x5] sm:$0x1]  ;;  %v678_v1 = vlaneseq }
  0xd9   :  { %v336_v18 = vsel %vm335_vm1, %v334_v8, %v333_v14  ;;  %v318_v19 = vld [vmem:[#allocation2 + $0x7] sm:$0x1]  ;;  %v319_v20 = vld [vmem:[#allocation2 + $0x9] sm:$0x1]  ;;  %v320_v21 = vld [vmem:[#allocation2 + $0xb] sm:$0x1] }
  0xda   :  { %v339_v22 = vsel %vm338_vm2, %v337_v10, %v336_v18  ;;  %v349_v23 = vrot.slane %v314_v9, 1  ;;  %v321_v24 = vld [vmem:[#allocation2 + $0xd] sm:$0x1]  ;;  %v361_v25 = vrot.slane %v316_v16, 7  ;;  %v363_v26 = vrot.slane %v317_v17, 6  ;;  %s11827_s9 = sld [smem:[#allocation46_spill]] }
  0xdb   :  { %v342_v27 = vsel %vm341_vm3, %v340_v11, %v339_v22  ;;  %vm350_vm6 = vcmask 1047559   ;;  %v322_v28 = vld [vmem:[#allocation2 + $0xf] sm:$0x1]  ;;  %v365_v29 = vrot.slane %v318_v19, 5  ;;  %v367_v30 = vrot.slane %v319_v20, 4  ;;  %v10371_v5 = vld [vmem:[#allocation5] sm:$0xff] }
  0xdc   :  { %v345_v31 = vsel %vm344_vm4, %v343_v12, %v342_v27  ;;  %vm624_vm7 = vcmask 261120   ;;  %v362_v32 = vsel %vm332_vm0, %v361_v25, %v315_v15  ;;  %v369_v33 = vrot.slane %v320_v21, 3  ;;  %v8516_v18 = vld [vmem:[#allocation7] ss:$0 sm:$0xff]  ;;  %s10123_s3 = smov 88   ;;  %s10124_s20 = smov 96  }
  0xdd   :  { %v348_v34 = vsel %vm347_vm5, %v346_v13, %v345_v31  ;;  %v364_v35 = vsel %vm335_vm1, %v363_v26, %v362_v32  ;;  %v371_v36 = vrot.slane %v321_v24, 2  ;;  %v373_v39 = vrot.slane %v322_v28, 1  ;;  %s10125_s1 = smov 120   ;;  %s10126_s13 = smov 112  }
  0xde   :  { %v10339_v37 = vsel %vm350_vm6, %v349_v23, %v348_v34  ;;  %v366_v38 = vsel %vm338_vm2, %v365_v29, %v364_v35  ;;  %v10368_v3 = vshrl.u32 %v678_v1, 7  ;;  %v10121_v17 = vmov 0.0   ;;  %s10127_s30 = smov 80   ;;  %s10128_s26 = smov 104  }
  0xdf   :  { %v698_v40 = vsel %vm624_vm7, %v10339_v37, 0.0  ;;  %v368_v41 = vsel %vm341_vm3, %v367_v30, %v366_v38  ;;  %8997 = vmatprep.subr.mxu1 %v10121_v17  ;;  %vm10122_vm8 = vmmov 0   ;;  %s10129_s4 = smov 72   ;;  %vm826_vm9 = vcmask 64512   ;;  %s10130_s28 = smov 64  }
  0xe0   :  { %699 = vadd.xlane.f32.xlu0 %v698_v40  ;;  %v370_v42 = vsel %vm344_vm4, %v369_v33, %v368_v41  ;;  %v280_v56 = vld [vmem:[%s11827_s9 + $0x18] sm:$0xff]  ;;  %v279_v57 = vld [vmem:[%s11827_s9 + $0x10] sm:$0xff]  ;;  %v278_v58 = vld [vmem:[%s11827_s9 + $0x8] sm:$0xff]  ;;  %v726_v4 = vsub.s32 0, %v10368_v3  ;;  %v732_v6 = vsub.s32 1, %v10368_v3  ;;  %8999 = vmatprep.mubr.msk.f32.mxu1 %vm10122_vm8, %v10121_v17  ;;  %s10131_s16 = smov 48  }
  0xe1   :  { %v372_v43 = vsel %vm347_vm5, %v371_v36, %v370_v42  ;;  %8986 = vmatprep.subr.mxu0 %v280_v56  ;;  %v277_v59 = vld [vmem:[%s11827_s9] sm:$0xff]  ;;  %s10132_s2 = smov 40   ;;  %s10133_s6 = smov 56   ;;  %vm5626_vm10 = vcmask 130048   ;;  %vm7784_vm11 = vcmask 523264   ;;  %vm8136_vm12 = vcmask 253952  }
  0xe2   :  { %v10348_v44 = vsel %vm350_vm6, %v373_v39, %v372_v43  ;;  %8987 = vmatpush3.msra.mxu0 %v280_v56  ;;  %v727_v7 = vrot.slane %v10371_v5, %v726_v4  ;;  %v733_v10 = vrot.slane %v10371_v5, %v732_v6  ;;  %s11828_s15 = sld [smem:[#allocation48_spill]] }
  0xe3   :  { %v701_v45 = vsel %vm624_vm7, %v10348_v44, 0.0  ;;  %8988 = vmatprep.subr.mxu0 %v279_v57  ;;  %s11829_s7 = sld [smem:[#allocation43_spill]] }
  0xe4   :  { %702 = vadd.xlane.f32.xlu0 %v701_v45  ;;  %8989 = vmatpush3.msra.mxu0 %v279_v57  ;;  %s11831_s14 = sld [smem:[#allocation50_spill]] }
  0xe5   :  { %8990 = vmatprep.subr.mxu0 %v278_v58 }
  0xe6   :  { %8991 = vmatpush3.msra.mxu0 %v278_v58 }
  0xe7   :  { %8992 = vmatprep.subr.mxu0 %v277_v59 }
  0xe8   :  { %8993 = vmatpush3.msra.mxu0 %v277_v59 }
  0xe9   :  { %9007 = vmatprep.subr.mxu0 %v10121_v17 }
 0x169   :  { %v700_v46 = vpop.xlane.xlu0 %699 }
 0x16a   :  { %v704_v47 = vmul.f32 0.03125, %v700_v46 }
 0x16c   :  { %v706_v48 = vsub.f32 %v10339_v37, %v704_v47 }
 0x16d   :  { %v703_v49 = vpop.xlane.xlu0 %702 }
 0x16e   :  { %v705_v50 = vmul.f32 0.03125, %v703_v49  ;;  %v708_v51 = vmul.f32 %v706_v48, %v706_v48 }
 0x170   :  { %v707_v52 = vsub.f32 %v10348_v44, %v705_v50  ;;  %v710_v53 = vsel %vm624_vm7, %v708_v51, 0.0 }
 0x171   :  { %711 = vadd.xlane.f32.xlu1 %v710_v53 }
 0x172   :  { %v709_v54 = vmul.f32 %v707_v52, %v707_v52 }
 0x174   :  { %v713_v55 = vsel %vm624_vm7, %v709_v54, 0.0 }
 0x175   :  { %714 = vadd.xlane.f32.xlu1 %v713_v55 }
 0x1fa   :  { %v712_v60 = vpop.xlane.xlu1 %711 }
 0x1fb   :  { %v716_v61 = vmul.f32 0.03125, %v712_v60 }
 0x1fd   :  { %v718_v62 = vadd.f32 1e-05, %v716_v61 }
 0x1fe   :  { %v715_v63 = vpop.xlane.xlu1 %714 }
 0x1ff   :  { %9534 = vrsqrt.f32 %v718_v62  ;;  %v717_v0 = vmul.f32 0.03125, %v715_v63 }
 0x201   :  { %v719_v2 = vadd.f32 1e-05, %v717_v0 }
 0x203   :  { %9536 = vrsqrt.f32 %v719_v2 }
 0x20c   :  { %v9535_v8 = vpop.eup %9534 }
 0x20d   :  { %v722_v9 = vmul.f32 %v9535_v8, %v706_v48 }
 0x20f   :  { %v728_v11 = vmul.f32 %v727_v7, %v722_v9 }
 0x210   :  { %v9537_v12 = vpop.eup %9536 }
 0x211   :  { %v723_v13 = vmul.f32 %v9537_v12, %v707_v52  ;;  %v734_v14 = vadd.f32 %v733_v10, %v728_v11 }
 0x213   :  { %v729_v15 = vmul.f32 %v727_v7, %v723_v13  ;;  %8994 = vmatprep.mubr.msk.f32.mxu0 %vm624_vm7, %v734_v14 }
 0x215   :  { %v735_v16 = vadd.f32 %v733_v10, %v729_v15 }
 0x217   :  { %8995 = vmatmul.mubr.msk.f32.vlgmr.msra.gmra.mxu0 %vm624_vm7, %v735_v16 }
 0x218   :  { %9009 = vmatprep.mubr.msk.f32.mxu0 %vm10122_vm8, %v10121_v17 }
 0x2d7   :  { %v8996_v19 = vpop.f32.mrf.mxu0 }
 0x2d8   :  { %v10384_v20 = vadd.f32 %v8996_v19, %v8516_v18 }
 0x2d9   :  { %v814_v21 = vpop.f32.mrf.mxu0 }
 0x2da   :  { %v10386_v22 = vadd.f32 %v8516_v18, %v814_v21 }
 0x2dc   :  { %903 = vrot.lane.b32.xlu1 %v10386_v22, %s10123_s3  ;;  %824 = vrot.lane.b32.xlu0 %v10386_v22, %s10124_s20 }
 0x2e0   :  { %901 = vrot.lane.b32.xlu1 %v10386_v22, %s10125_s1  ;;  %979 = vrot.lane.b32.xlu0 %v10386_v22, %s10126_s13 }
 0x2e4   :  { %981 = vrot.lane.b32.xlu1 %v10386_v22, %s10127_s30  ;;  %1057 = vrot.lane.b32.xlu0 %v10386_v22, %s10128_s26 }
 0x2e8   :  { %1059 = vrot.lane.b32.xlu1 %v10386_v22, %s10129_s4 }
 0x34e   :  { %v904_v23 = vpop.permute.xlu1 %903  ;;  %v825_v24 = vpop.permute.xlu0 %824 }
 0x34f   :  { %8998 = vmatpush3.xpose.msk.msra.mxu1 %vm826_vm9, %v825_v24 }
 0x350   :  { %9002 = vmatprep.subr.mxu1 %v10121_v17 }
 0x352   :  { %v902_v25 = vpop.permute.xlu1 %901  ;;  %9000 = vmatmul.mubr.msk.f32.vlgmr.msra.gmra.mxu1 %vm826_vm9, %v10386_v22  ;;  %v980_v27 = vpop.permute.xlu0 %979 }
 0x353   :  { %9003 = vmatpush3.xpose.msk.msra.mxu1 %vm826_vm9, %v904_v23  ;;  %9004 = vmatprep.mubr.msk.f32.mxu1 %vm10122_vm8, %v10121_v17 }
 0x354   :  { %9012 = vmatprep.subr.mxu1 %v10121_v17 }
 0x356   :  { %v982_v26 = vpop.permute.xlu1 %981  ;;  %9005 = vmatmul.mubr.msk.f32.vlgmr.msra.gmra.mxu1 %vm826_vm9, %v902_v25  ;;  %v1058_v29 = vpop.permute.xlu0 %1057 }
 0x357   :  { %9008 = vmatpush3.xpose.msk.msra.mxu0 %vm826_vm9, %v982_v26  ;;  %9014 = vmatprep.mubr.msk.f32.mxu1 %vm10122_vm8, %v10121_v17 }
 0x358   :  { %9017 = vmatprep.subr.mxu0 %v10121_v17 }
 0x35a   :  { %v1060_v28 = vpop.permute.xlu1 %1059  ;;  %9010 = vmatmul.mubr.msk.f32.vlgmr.msra.gmra.mxu0 %vm826_vm9, %v980_v27 }
 0x35b   :  { %9013 = vmatpush3.xpose.msk.msra.mxu1 %vm826_vm9, %v1060_v28  ;;  %9019 = vmatprep.mubr.msk.f32.mxu0 %vm10122_vm8, %v10121_v17 }
 0x35c   :  { %9022 = vmatprep.subr.mxu1 %v10121_v17 }
 0x35e   :  { %9015 = vmatmul.mubr.msk.f32.vlgmr.msra.gmra.mxu1 %vm826_vm9, %v1058_v29  ;;  %v282_v29 = vld [vmem:[%s11828_s15] sm:$0xff] }
 0x35f   :  { %9024 = vmatprep.mubr.msk.f32.mxu1 %vm10122_vm8, %v10121_v17  ;;  %9023 = vmatpush3.msra.mxu1 %v282_v29 }
 0x360   :  { %9032 = vmatprep.subr.mxu1 %v10121_v17 }
 0x412   :  { %v897_v30 = vpop.f32.mrf.mxu1 }
 0x413   :  { %v1135_v31 = vmul.f32 0.35355338, %v897_v30  ;;  %v10487_v30 = vld [vmem:[%s11828_s15 + $0x8] sm:$0xff] }
 0x414   :  { %v9001_v32 = vpop.f32.mrf.mxu1 }
 0x415   :  { %v1139_v33 = vsel %vm826_vm9, %v1135_v31, -inf }
 0x416   :  { %1140 = vmax.xlane.f32.xlu1 %v1139_v33  ;;  %v975_v34 = vpop.f32.mrf.mxu1  ;;  %v10497_v33 = vld [vmem:[%s11828_s15 + $0x10] sm:$0xff] }
 0x417   :  { %v1136_v35 = vmul.f32 0.35355338, %v975_v34 }
 0x418   :  { %v9006_v36 = vpop.f32.mrf.mxu1 }
 0x419   :  { %v1142_v38 = vsel %vm826_vm9, %v1136_v35, -inf  ;;  %v10507_v36 = vld [vmem:[%s11828_s15 + $0x18] sm:$0xff]  ;;  %s11830_s15 = sld [smem:[#allocation44_spill]] }
 0x41a   :  { %1143 = vmax.xlane.f32.xlu0 %v1142_v38  ;;  %v1053_v39 = vpop.f32.mrf.mxu0 }
 0x41b   :  { %v1137_v40 = vmul.f32 0.35355338, %v1053_v39 }
 0x41c   :  { %v9011_v41 = vpop.f32.mrf.mxu0 }
 0x41d   :  { %v1145_v42 = vsel %vm826_vm9, %v1137_v40, -inf }
 0x41e   :  { %1146 = vmax.xlane.f32.xlu0 %v1145_v42  ;;  %v1131_v43 = vpop.f32.mrf.mxu1 }
 0x41f   :  { %v1138_v45 = vmul.f32 0.35355338, %v1131_v43 }
 0x420   :  { %v9016_v46 = vpop.f32.mrf.mxu1 }
 0x421   :  { %v1148_v47 = vsel %vm826_vm9, %v1138_v45, -inf }
 0x422   :  { %1149 = vmax.xlane.f32.xlu0 %v1148_v47 }
 0x427   :  { %1183 = vrot.lane.b32.xlu1 %v10386_v22, %s10130_s28 }
 0x49f   :  { %v1141_v48 = vpop.xlane.xlu1 %1140 }
 0x4a0   :  { %v1151_v49 = vsub.f32 %v1135_v31, %v1141_v48 }
 0x4a2   :  { %v1155_v50 = vmul.f32 1.442695, %v1151_v49 }
 0x4a3   :  { %v1184_v51 = vpop.permute.xlu1 %1183  ;;  %v1144_v52 = vpop.xlane.xlu0 %1143 }
 0x4a4   :  { %9538 = vpow2.f32 %v1155_v50  ;;  %v1152_v53 = vsub.f32 %v1136_v35, %v1144_v52  ;;  %9018 = vmatpush3.msra.mxu0 %v1184_v51 }
 0x4a5   :  { %9027 = vmatprep.subr.mxu0 %v10121_v17 }
 0x4a6   :  { %v1157_v54 = vmul.f32 1.442695, %v1152_v53 }
 0x4a7   :  { %v1147_v55 = vpop.xlane.xlu0 %1146 }
 0x4a8   :  { %9540 = vpow2.f32 %v1157_v54  ;;  %v1153_v56 = vsub.f32 %v1137_v40, %v1147_v55  ;;  %v10530_v54 = vld [vmem:[#allocation8] ss:$0 sm:$0xff] }
 0x4aa   :  { %v1159_v57 = vmul.f32 1.442695, %v1153_v56 }
 0x4ab   :  { %v1150_v58 = vpop.xlane.xlu0 %1149 }
 0x4ac   :  { %9542 = vpow2.f32 %v1159_v57  ;;  %v1154_v59 = vsub.f32 %v1138_v45, %v1150_v58 }
 0x4ae   :  { %v1161_v60 = vmul.f32 1.442695, %v1154_v59 }
 0x4b0   :  { %9544 = vpow2.f32 %v1161_v60 }
 0x4b1   :  { %v9539_v61 = vpop.eup %9538 }
 0x4b2   :  { %v1163_v62 = vsel %vm826_vm9, %v9539_v61, 0.0 }
 0x4b3   :  { %1164 = vadd.xlane.f32.xlu1 %v1163_v62 }
 0x4b5   :  { %v9541_v63 = vpop.eup %9540 }
 0x4b6   :  { %v1166_v0 = vsel %vm826_vm9, %v9541_v63, 0.0 }
 0x4b7   :  { %1167 = vadd.xlane.f32.xlu0 %v1166_v0 }
 0x4b9   :  { %v9543_v1 = vpop.eup %9542 }
 0x4ba   :  { %v1169_v2 = vsel %vm826_vm9, %v9543_v1, 0.0 }
 0x4bb   :  { %1170 = vadd.xlane.f32.xlu1 %v1169_v2 }
 0x4bd   :  { %v9545_v4 = vpop.eup %9544 }
 0x4be   :  { %v1172_v6 = vsel %vm826_vm9, %v9545_v4, 0.0 }
 0x4bf   :  { %1173 = vadd.xlane.f32.xlu0 %v1172_v6 }
 0x4cc   :  { %1489 = vrot.lane.b32.xlu1 %v10386_v22, %s10131_s16 }
 0x4d0   :  { %1639 = vrot.lane.b32.xlu1 %v10386_v22, %s10132_s2 }
 0x4d4   :  { %1790 = vrot.lane.b32.xlu1 %v10384_v20, %s10124_s20 }
 0x4d5   :  { %1339 = vrot.lane.b32.xlu0 %v10386_v22, %s10133_s6 }
 0x4d8   :  { %1866 = vrot.lane.b32.xlu1 %v10384_v20, %s10125_s1 }
 0x4d9   :  { %1868 = vrot.lane.b32.xlu0 %v10384_v20, %s10123_s3 }
 0x4dc   :  { %1944 = vrot.lane.b32.xlu1 %v10384_v20, %s10126_s13 }
 0x4dd   :  { %1946 = vrot.lane.b32.xlu0 %v10384_v20, %s10127_s30 }
 0x4e0   :  { %2022 = vrot.lane.b32.xlu1 %v10384_v20, %s10128_s26 }
 0x4e1   :  { %2024 = vrot.lane.b32.xlu0 %v10384_v20, %s10129_s4 }
 0x53c   :  { %v1165_v7 = vpop.xlane.xlu1 %1164 }
 0x53d   :  { %9546 = vrcp.f32 %v1165_v7 }
 0x540   :  { %v1168_v8 = vpop.xlane.xlu0 %1167 }
 0x541   :  { %9548 = vrcp.f32 %v1168_v8 }
 0x544   :  { %v1171_v9 = vpop.xlane.xlu1 %1170 }
 0x545   :  { %9550 = vrcp.f32 %v1171_v9 }
 0x548   :  { %v1490_v10 = vpop.permute.xlu1 %1489  ;;  %v1174_v11 = vpop.xlane.xlu0 %1173 }
 0x549   :  { %9552 = vrcp.f32 %v1174_v11 }
 0x54a   :  { %v9547_v12 = vpop.eup %9546 }
 0x54b   :  { %v1176_v13 = vmul.f32 %v9547_v12, %v9539_v61 }
 0x54c   :  { %v1340_v14 = vpop.permute.xlu0 %1339  ;;  %v1640_v16 = vpop.permute.xlu1 %1639 }
 0x54d   :  { %9020 = vmatmul.mubr.msk.f32.vlgmr.msra.gmra.mxu0 %vm826_vm9, %v1176_v13 }
 0x54e   :  { %v9549_v15 = vpop.eup %9548  ;;  %9028 = vmatpush3.msra.mxu0 %v1340_v14  ;;  %9029 = vmatprep.mubr.msk.f32.mxu0 %vm10122_vm8, %v10121_v17 }
 0x54f   :  { %9037 = vmatprep.subr.mxu0 %v10121_v17  ;;  %v1178_v18 = vmul.f32 %v9549_v15, %v9541_v63 }
 0x550   :  { %v1791_v22 = vpop.permute.xlu1 %1790  ;;  %v1869_v24 = vpop.permute.xlu0 %1868 }
 0x551   :  { %9030 = vmatmul.mubr.msk.f32.vlgmr.msra.gmra.mxu0 %vm826_vm9, %v1178_v18 }
 0x552   :  { %v9551_v19 = vpop.eup %9550  ;;  %9038 = vmatpush3.msra.mxu0 %v1490_v10  ;;  %9039 = vmatprep.mubr.msk.f32.mxu0 %vm10122_vm8, %v10121_v17 }
 0x553   :  { %9047 = vmatprep.subr.mxu0 %v10121_v17  ;;  %v1180_v21 = vmul.f32 %v9551_v19, %v9543_v1 }
 0x554   :  { %v1867_v26 = vpop.permute.xlu1 %1866  ;;  %v1947_v27 = vpop.permute.xlu0 %1946 }
 0x555   :  { %9040 = vmatmul.mubr.msk.f32.vlgmr.msra.gmra.mxu0 %vm826_vm9, %v1180_v21 }
 0x556   :  { %v9553_v23 = vpop.eup %9552  ;;  %9048 = vmatpush3.msra.mxu0 %v1640_v16  ;;  %9049 = vmatprep.mubr.msk.f32.mxu0 %vm10122_vm8, %v10121_v17 }
 0x557   :  { %9057 = vmatprep.subr.mxu0 %v10121_v17  ;;  %v1182_v25 = vmul.f32 %v9553_v23, %v9545_v4 }
 0x558   :  { %v1945_v28 = vpop.permute.xlu1 %1944  ;;  %v2025_v43 = vpop.permute.xlu0 %2024 }
 0x559   :  { %9050 = vmatmul.mubr.msk.f32.vlgmr.msra.gmra.mxu0 %vm826_vm9, %v1182_v25  ;;  %v377_v25 = vld [vmem:[%s11829_s7 + $0x2] sm:$0x1] }
 0x55a   :  { %9058 = vmatpush3.xpose.msk.msra.mxu0 %vm826_vm9, %v1791_v22  ;;  %9059 = vmatprep.mubr.msk.f32.mxu0 %vm10122_vm8, %v10121_v17 }
 0x55b   :  { %9067 = vmatprep.subr.mxu0 %v10121_v17 }
 0x55c   :  { %v2023_v48 = vpop.permute.xlu1 %2022 }
 0x55d   :  { %9060 = vmatmul.mubr.msk.f32.vlgmr.msra.gmra.mxu0 %vm826_vm9, %v10384_v20 }
 0x55e   :  { %9068 = vmatpush3.xpose.msk.msra.mxu0 %vm826_vm9, %v1947_v27  ;;  %9069 = vmatprep.mubr.msk.f32.mxu0 %vm10122_vm8, %v10121_v17  ;;  %v379_v27 = vld [vmem:[%s11829_s7 + $0x6] sm:$0x1] }
 0x55f   :  { %9077 = vmatprep.subr.mxu0 %v10121_v17 }
 0x561   :  { %9070 = vmatmul.mubr.msk.f32.vlgmr.msra.gmra.mxu0 %vm826_vm9, %v1945_v28  ;;  %v380_v28 = vld [vmem:[%s11829_s7 + $0x8] sm:$0x1] }
 0x562   :  { %9079 = vmatprep.mubr.msk.f32.mxu0 %vm10122_vm8, %v10121_v17 }
 0x60d   :  { %v1255_v31 = vpop.f32.mrf.mxu0 }
 0x60e   :  { %9025 = vmatmul.mubr.msk.f32.vlgmr.msra.gmra.mxu1 %vm826_vm9, %v1255_v31  ;;  %v382_v31 = vld [vmem:[%s11829_s7 + $0xc] sm:$0x1] }
 0x60f   :  { %v9021_v32 = vpop.f32.mrf.mxu0  ;;  %9033 = vmatpush3.msra.mxu1 %v10487_v30  ;;  %9034 = vmatprep.mubr.msk.f32.mxu1 %vm10122_vm8, %v10121_v17 }
 0x610   :  { %9042 = vmatprep.subr.mxu1 %v10121_v17  ;;  %v424_v32 = vrot.slane %v377_v25, 7  ;;  %v403_v25 = vld [vmem:[%s11829_s7 + $0x17] sm:$0x1] }
 0x611   :  { %v1411_v34 = vpop.f32.mrf.mxu0 }
 0x612   :  { %9035 = vmatmul.mubr.msk.f32.vlgmr.msra.gmra.mxu1 %vm826_vm9, %v1411_v34 }
 0x613   :  { %v9031_v35 = vpop.f32.mrf.mxu0  ;;  %9043 = vmatpush3.msra.mxu1 %v10497_v33  ;;  %9044 = vmatprep.mubr.msk.f32.mxu1 %vm10122_vm8, %v10121_v17 }
 0x614   :  { %9052 = vmatprep.subr.mxu1 %v10121_v17  ;;  %v383_v35 = vld [vmem:[%s11829_s7 + $0xe] sm:$0x1] }
 0x615   :  { %v1561_v38 = vpop.f32.mrf.mxu0 }
 0x616   :  { %9045 = vmatmul.mubr.msk.f32.vlgmr.msra.gmra.mxu1 %vm826_vm9, %v1561_v38  ;;  %v428_v38 = vrot.slane %v379_v27, 5  ;;  %v404_v27 = vld [vmem:[%s11829_s7 + $0x19] sm:$0x1] }
 0x617   :  { %v9041_v39 = vpop.f32.mrf.mxu0  ;;  %9053 = vmatpush3.msra.mxu1 %v10507_v36  ;;  %9054 = vmatprep.mubr.msk.f32.mxu1 %vm10122_vm8, %v10121_v17 }
 0x618   :  { %9062 = vmatprep.subr.mxu1 %v10121_v17  ;;  %v430_v39 = vrot.slane %v380_v28, 4 }
 0x619   :  { %v1711_v40 = vpop.f32.mrf.mxu0 }
 0x61a   :  { %9055 = vmatmul.mubr.msk.f32.vlgmr.msra.gmra.mxu1 %vm826_vm9, %v1711_v40 }
 0x61b   :  { %9063 = vmatpush3.xpose.msk.msra.mxu1 %vm826_vm9, %v1869_v24  ;;  %v9051_v41 = vpop.f32.mrf.mxu0  ;;  %9064 = vmatprep.mubr.msk.f32.mxu1 %vm10122_vm8, %v10121_v17  ;;  %v376_v24 = vld [vmem:[%s11829_s7] sm:$0x1] }
 0x61c   :  { %9072 = vmatprep.subr.mxu1 %v10121_v17  ;;  %v434_v41 = vrot.slane %v382_v31, 2  ;;  %v405_v31 = vld [vmem:[%s11829_s7 + $0x1b] sm:$0x1] }
 0x61d   :  { %v1862_v42 = vpop.f32.mrf.mxu0 }
 0x61e   :  { %v2100_v45 = vmul.f32 0.35355338, %v1862_v42  ;;  %9065 = vmatmul.mubr.msk.f32.vlgmr.msra.gmra.mxu1 %vm826_vm9, %v1867_v26  ;;  %v378_v26 = vld [vmem:[%s11829_s7 + $0x4] sm:$0x1]  ;;  %v425_v42 = vsel %vm332_vm0, %v424_v32, %v376_v24  ;;  %v400_v24 = vld [vmem:[%s11829_s7 + $0x11] sm:$0x1] }
 0x61f   :  { %9073 = vmatpush3.xpose.msk.msra.mxu1 %vm826_vm9, %v2025_v43  ;;  %v9061_v46 = vpop.f32.mrf.mxu0  ;;  %9074 = vmatprep.mubr.msk.f32.mxu1 %vm10122_vm8, %v10121_v17  ;;  %v426_v34 = vrot.slane %v378_v26, 6  ;;  %v392_v43 = vld [vmem:[%s11829_s7 + $0x1] sm:$0x1] }
 0x620   :  { %v2104_v47 = vsel %vm826_vm9, %v2100_v45, -inf  ;;  %9082 = vmatprep.subr.mxu1 %v10121_v17  ;;  %v394_v46 = vld [vmem:[%s11829_s7 + $0x5] sm:$0x1] }
 0x621   :  { %2105 = vmax.xlane.f32.xlu0 %v2104_v47  ;;  %v2018_v49 = vpop.f32.mrf.mxu0  ;;  %v427_v47 = vsel %vm335_vm1, %v426_v34, %v425_v42  ;;  %v490_v34 = vrot.slane %v404_v27, 4 }
 0x622   :  { %v2102_v50 = vmul.f32 0.35355338, %v2018_v49  ;;  %9075 = vmatmul.mubr.msk.f32.vlgmr.msra.gmra.mxu1 %vm826_vm9, %v2023_v48  ;;  %v395_v48 = vld [vmem:[%s11829_s7 + $0x7] sm:$0x1]  ;;  %v396_v49 = vld [vmem:[%s11829_s7 + $0x9] sm:$0x1] }
 0x623   :  { %v9071_v51 = vpop.f32.mrf.mxu0  ;;  %9083 = vmatpush3.msra.mxu1 %v282_v29  ;;  %9084 = vmatprep.mubr.msk.f32.mxu1 %vm10122_vm8, %v10121_v17  ;;  %v381_v29 = vld [vmem:[%s11829_s7 + $0xa] sm:$0x1] }
 0x624   :  { %v2110_v52 = vsel %vm826_vm9, %v2102_v50, -inf  ;;  %9092 = vmatprep.subr.mxu1 %v10121_v17  ;;  %v432_v40 = vrot.slane %v381_v29, 3  ;;  %v429_v51 = vsel %vm338_vm2, %v428_v38, %v427_v47  ;;  %v488_v29 = vrot.slane %v403_v25, 5  ;;  %v407_v38 = vld [vmem:[%s11829_s7 + $0x1f] sm:$0x1] }
 0x625   :  { %2111 = vmax.xlane.f32.xlu0 %v2110_v52  ;;  %v436_v52 = vrot.slane %v383_v35, 1  ;;  %v406_v35 = vld [vmem:[%s11829_s7 + $0x1d] sm:$0x1]  ;;  %v391_v25 = vld [vmem:[%s11829_s7 + $0x1e] sm:$0x1] }
 0x626   :  { %v494_v42 = vrot.slane %v406_v35, 2 }
 0x6aa   :  { %v2106_v53 = vpop.xlane.xlu0 %2105 }
 0x6ab   :  { %v2116_v57 = vsub.f32 %v2100_v45, %v2106_v53  ;;  %v393_v45 = vld [vmem:[%s11829_s7 + $0x3] sm:$0x1]  ;;  %v398_v53 = vld [vmem:[%s11829_s7 + $0xd] sm:$0x1] }
 0x6ad   :  { %v2120_v63 = vmul.f32 1.442695, %v2116_v57  ;;  %v431_v57 = vsel %vm341_vm3, %v430_v39, %v429_v51 }
 0x6ae   :  { %v2112_v59 = vpop.xlane.xlu0 %2111 }
 0x6af   :  { %v2118_v0 = vsub.f32 %v2102_v50, %v2112_v59  ;;  %9554 = vpow2.f32 %v2120_v63  ;;  %v397_v50 = vld [vmem:[%s11829_s7 + $0xb] sm:$0x1]  ;;  %v474_v59 = vrot.slane %v395_v48, 5 }
 0x6b0   :  { %v478_v63 = vrot.slane %v397_v50, 3 }
 0x6b1   :  { %v2124_v6 = vmul.f32 1.442695, %v2118_v0 }
 0x6b3   :  { %9556 = vpow2.f32 %v2124_v6 }
 0x6bc   :  { %v10543_v19 = vpop.eup %9554 }
 0x6bd   :  { %v2128_v21 = vsel %vm826_vm9, %v10543_v19, 0.0 }
 0x6c0   :  { %v10547_v22 = vpop.eup %9556 }
 0x6c1   :  { %v2134_v23 = vsel %vm826_vm9, %v10547_v22, 0.0 }
 0x6ce   :  { %v1328_v55 = vpop.f32.mrf.mxu1 }
 0x6cf   :  { %v1338_v58 = vadd.f32 %v10530_v54, %v1328_v55  ;;  %v470_v55 = vrot.slane %v393_v45, 7 }
 0x6d0   :  { %v9026_v56 = vpop.f32.mrf.mxu1 }
 0x6d1   :  { %v472_v56 = vrot.slane %v394_v46, 6 }
 0x6d2   :  { %v1484_v60 = vpop.f32.mrf.mxu1 }
 0x6d3   :  { %v1488_v61 = vadd.f32 %v1484_v60, %v1338_v58  ;;  %v399_v58 = vld [vmem:[%s11829_s7 + $0xf] sm:$0x1]  ;;  %v476_v60 = vrot.slane %v396_v49, 4 }
 0x6d4   :  { %v9036_v62 = vpop.f32.mrf.mxu1 }
 0x6d5   :  { %v471_v62 = vsel %vm332_vm0, %v470_v55, %v392_v43  ;;  %v496_v43 = vrot.slane %v407_v38, 1 }
 0x6d6   :  { %v1634_v1 = vpop.f32.mrf.mxu1 }
 0x6d7   :  { %v1638_v2 = vadd.f32 %v1634_v1, %v1488_v61  ;;  %v433_v61 = vsel %vm344_vm4, %v432_v40, %v431_v57  ;;  %v473_v1 = vsel %vm335_vm1, %v472_v56, %v471_v62  ;;  %v492_v40 = vrot.slane %v405_v31, 3 }
 0x6d8   :  { %v9046_v4 = vpop.f32.mrf.mxu1  ;;  %v435_v0 = vsel %vm347_vm5, %v434_v41, %v433_v61  ;;  %v475_v6 = vsel %vm338_vm2, %v474_v59, %v473_v1 }
 0x6d9   :  { %v10614_v4 = vsel %vm350_vm6, %v436_v52, %v435_v0  ;;  %v385_v0 = vld [vmem:[%s11829_s7 + $0x12] sm:$0x1] }
 0x6da   :  { %v1784_v7 = vpop.f32.mrf.mxu1  ;;  %v438_v1 = vrot.slane %v385_v0, 7 }
 0x6db   :  { %v10533_v8 = vadd.f32 %v1784_v7, %v1638_v2  ;;  %v480_v2 = vrot.slane %v398_v53, 2  ;;  %v482_v7 = vrot.slane %v399_v58, 1 }
 0x6dc   :  { %v9056_v9 = vpop.f32.mrf.mxu1 }
 0x6dd   :  { %v477_v9 = vsel %vm341_vm3, %v476_v60, %v475_v6  ;;  %v387_v6 = vld [vmem:[%s11829_s7 + $0x16] sm:$0x1] }
 0x6de   :  { %v1940_v10 = vpop.f32.mrf.mxu1 }
 0x6df   :  { %v10535_v11 = vmul.f32 0.35355338, %v1940_v10  ;;  %v625_v10 = vsel %vm624_vm7, %v10614_v4, 0.0 }
 0x6e0   :  { %v9066_v12 = vpop.f32.mrf.mxu1 }
 0x6e1   :  { %v2107_v13 = vsel %vm826_vm9, %v10535_v11, -inf  ;;  %v479_v12 = vsel %vm344_vm4, %v478_v63, %v477_v9  ;;  %v388_v9 = vld [vmem:[%s11829_s7 + $0x18] sm:$0x1] }
 0x6e2   :  { %2108 = vmax.xlane.f32.xlu1 %v2107_v13  ;;  %v2096_v14 = vpop.f32.mrf.mxu1  ;;  %v481_v13 = vsel %vm347_vm5, %v480_v2, %v479_v12  ;;  %v384_v2 = vld [vmem:[%s11829_s7 + $0x10] sm:$0x1] }
 0x6e3   :  { %v10539_v15 = vmul.f32 0.35355338, %v2096_v14  ;;  %v10623_v14 = vsel %vm350_vm6, %v482_v7, %v481_v13  ;;  %v389_v13 = vld [vmem:[%s11829_s7 + $0x1a] sm:$0x1] }
 0x6e4   :  { %v9076_v16 = vpop.f32.mrf.mxu1 }
 0x6e5   :  { %v2113_v18 = vsel %vm826_vm9, %v10539_v15, -inf  ;;  %v631_v16 = vsel %vm624_vm7, %v10623_v14, 0.0 }
 0x6e6   :  { %2114 = vmax.xlane.f32.xlu0 %v2113_v18  ;;  %v401_v18 = vld [vmem:[%s11829_s7 + $0x13] sm:$0x1] }
 0x6ea   :  { %2129 = vadd.xlane.f32.xlu0 %v2128_v21  ;;  %v402_v21 = vld [vmem:[%s11829_s7 + $0x15] sm:$0x1] }
 0x6eb   :  { %v486_v26 = vrot.slane %v402_v21, 6  ;;  %v390_v21 = vld [vmem:[%s11829_s7 + $0x1c] sm:$0x1] }
 0x6ee   :  { %2135 = vadd.xlane.f32.xlu0 %v2134_v23  ;;  %v484_v23 = vrot.slane %v401_v18, 7 }
 0x6f0   :  { %v485_v28 = vsel %vm332_vm0, %v484_v23, %v400_v24  ;;  %v446_v23 = vrot.slane %v389_v13, 3  ;;  %v503_v13 = vld [vmem:[%s11830_s15 + $0x6] sm:$0x1] }
 0x6f1   :  { %v487_v32 = vsel %vm335_vm1, %v486_v26, %v485_v28  ;;  %v448_v26 = vrot.slane %v390_v21, 2  ;;  %v450_v28 = vrot.slane %v391_v25, 1 }
 0x6f2   :  { %v489_v39 = vsel %vm338_vm2, %v488_v29, %v487_v32 }
 0x6f3   :  { %2298 = vrot.lane.b32.xlu1 %v10384_v20, %s10133_s6  ;;  %v491_v41 = vsel %vm341_vm3, %v490_v34, %v489_v39 }
 0x6f4   :  { %v493_v45 = vsel %vm344_vm4, %v492_v40, %v491_v41 }
 0x6f5   :  { %v495_v46 = vsel %vm347_vm5, %v494_v42, %v493_v45 }
 0x6f6   :  { %v10658_v47 = vsel %vm350_vm6, %v496_v43, %v495_v46 }
 0x6f7   :  { %2448 = vrot.lane.b32.xlu1 %v10384_v20, %s10131_s16  ;;  %v634_v48 = vsel %vm624_vm7, %v10658_v47, 0.0 }
 0x704   :  { %2148 = vrot.lane.b32.xlu0 %v10384_v20, %s10130_s28 }
 0x723   :  { %626 = vadd.xlane.f32.xlu0 %v625_v10  ;;  %v442_v10 = vrot.slane %v387_v6, 5 }
 0x727   :  { %632 = vadd.xlane.f32.xlu0 %v631_v16  ;;  %v444_v16 = vrot.slane %v388_v9, 4  ;;  %v501_v9 = vld [vmem:[%s11830_s15 + $0x2] sm:$0x1] }
 0x72b   :  { %635 = vadd.xlane.f32.xlu0 %v634_v48 }
 0x76b   :  { %v2109_v49 = vpop.xlane.xlu1 %2108 }
 0x76c   :  { %v2117_v50 = vsub.f32 %v10535_v11, %v2109_v49 }
 0x76e   :  { %v2122_v51 = vmul.f32 1.442695, %v2117_v50 }
 0x76f   :  { %v2115_v52 = vpop.xlane.xlu0 %2114  ;;  %v2299_v63 = vpop.permute.xlu1 %2298 }
 0x770   :  { %9558 = vpow2.f32 %v2122_v51  ;;  %v2119_v53 = vsub.f32 %v10539_v15, %v2115_v52 }
 0x772   :  { %v2126_v55 = vmul.f32 1.442695, %v2119_v53 }
 0x773   :  { %v2130_v56 = vpop.xlane.xlu0 %2129  ;;  %v2449_v48 = vpop.permute.xlu1 %2448 }
 0x774   :  { %9560 = vpow2.f32 %v2126_v55 }
 0x775   :  { %9562 = vrcp.f32 %v2130_v56 }
 0x777   :  { %v2136_v57 = vpop.xlane.xlu0 %2135 }
 0x77b   :  { %v2149_v58 = vpop.permute.xlu0 %2148 }
 0x77c   :  { %9078 = vmatpush3.msra.mxu0 %v2149_v58 }
 0x77d   :  { %v9559_v59 = vpop.eup %9558  ;;  %9087 = vmatprep.subr.mxu0 %v10121_v17 }
 0x77e   :  { %v2131_v60 = vsel %vm826_vm9, %v9559_v59, 0.0 }
 0x77f   :  { %2132 = vadd.xlane.f32.xlu1 %v2131_v60 }
 0x781   :  { %v10666_v61 = vpop.eup %9560 }
 0x782   :  { %v9563_v11 = vpop.eup %9562  ;;  %v2137_v62 = vsel %vm826_vm9, %v10666_v61, 0.0 }
 0x783   :  { %2138 = vadd.xlane.f32.xlu1 %v2137_v62  ;;  %v2141_v15 = vmul.f32 %v9563_v11, %v10543_v19  ;;  %v386_v19 = vld [vmem:[%s11829_s7 + $0x14] sm:$0x1] }
 0x784   :  { %v440_v7 = vrot.slane %v386_v19, 6 }
 0x785   :  { %9080 = vmatmul.mubr.msk.f32.vlgmr.msra.gmra.mxu0 %vm826_vm9, %v2141_v15 }
 0x786   :  { %9088 = vmatpush3.msra.mxu0 %v2299_v63  ;;  %9089 = vmatprep.mubr.msk.f32.mxu0 %vm10122_vm8, %v10121_v17 }
 0x787   :  { %9097 = vmatprep.subr.mxu0 %v10121_v17 }
 0x794   :  { %2598 = vrot.lane.b32.xlu1 %v10384_v20, %s10132_s2  ;;  %v439_v20 = vsel %vm332_vm0, %v438_v1, %v384_v2 }
 0x795   :  { %v441_v12 = vsel %vm335_vm1, %v440_v7, %v439_v20 }
 0x796   :  { %v443_v18 = vsel %vm338_vm2, %v442_v10, %v441_v12  ;;  %v548_v10 = vrot.slane %v501_v9, 7  ;;  %v500_v12 = vld [vmem:[%s11830_s15] sm:$0x1]  ;;  %v519_v9 = vld [vmem:[%s11830_s15 + $0x7] sm:$0x1] }
 0x797   :  { %v445_v24 = vsel %vm341_vm3, %v444_v16, %v443_v18  ;;  %v680_v18 = vsub.s32 2, %v10368_v3 }
 0x798   :  { %v447_v27 = vsel %vm344_vm4, %v446_v23, %v445_v24  ;;  %v290_v23 = vld [vmem:[%s11831_s14 + $0x18] sm:$0xff]  ;;  %v289_v24 = vld [vmem:[%s11831_s14 + $0x10] sm:$0xff]  ;;  %v549_v25 = vsel %vm332_vm0, %v548_v10, %v500_v12 }
 0x799   :  { %v449_v29 = vsel %vm347_vm5, %v448_v26, %v447_v27  ;;  %v552_v26 = vrot.slane %v503_v13, 5  ;;  %v688_v27 = vsub.s32 3, %v10368_v3  ;;  %v511_v12 = vld [vmem:[%s11830_s15 + $0x16] sm:$0x1] }
 0x79a   :  { %v10708_v31 = vsel %vm350_vm6, %v450_v28, %v449_v29  ;;  %v288_v28 = vld [vmem:[%s11831_s14 + $0x8] sm:$0xff] }
 0x79b   :  { %v628_v32 = vsel %vm624_vm7, %v10708_v31, 0.0  ;;  %v504_v29 = vld [vmem:[%s11830_s15 + $0x8] sm:$0x1] }
 0x7ac   :  { %v627_v34 = vpop.xlane.xlu0 %626 }
 0x7ad   :  { %v638_v35 = vmul.f32 0.03125, %v627_v34 }
 0x7af   :  { %v10713_v38 = vsub.f32 %v10614_v4, %v638_v35 }
 0x7b0   :  { %v633_v39 = vpop.xlane.xlu0 %632 }
 0x7b1   :  { %v640_v40 = vmul.f32 0.03125, %v633_v39  ;;  %v646_v42 = vmul.f32 %v10713_v38, %v10713_v38  ;;  %v10784_v39 = vrot.slane %v10371_v5, %v680_v18 }
 0x7b3   :  { %v10716_v41 = vsub.f32 %v10623_v14, %v640_v40  ;;  %v650_v43 = vsel %vm624_vm7, %v646_v42, 0.0  ;;  %v506_v40 = vld [vmem:[%s11830_s15 + $0xc] sm:$0x1]  ;;  %v507_v42 = vld [vmem:[%s11830_s15 + $0xe] sm:$0x1] }
 0x7b4   :  { %651 = vadd.xlane.f32.xlu0 %v650_v43 }
 0x7b5   :  { %v648_v45 = vmul.f32 %v10716_v41, %v10716_v41 }
 0x7b7   :  { %v656_v46 = vsel %vm624_vm7, %v648_v45, 0.0  ;;  %v554_v45 = vrot.slane %v504_v29, 4  ;;  %v512_v29 = vld [vmem:[%s11830_s15 + $0x18] sm:$0x1] }
 0x7b8   :  { %629 = vadd.xlane.f32.xlu1 %v628_v32  ;;  %657 = vadd.xlane.f32.xlu0 %v656_v46  ;;  %v505_v32 = vld [vmem:[%s11830_s15 + $0xa] sm:$0x1] }
 0x7b9   :  { %v556_v46 = vrot.slane %v505_v32, 3  ;;  %v566_v32 = vrot.slane %v511_v12, 5 }
 0x808   :  { %v2133_v49 = vpop.xlane.xlu1 %2132 }
 0x809   :  { %9564 = vrcp.f32 %v2133_v49  ;;  %v560_v49 = vrot.slane %v507_v42, 1 }
 0x80a   :  { %9566 = vrcp.f32 %v2136_v57 }
 0x80c   :  { %v2139_v50 = vpop.xlane.xlu1 %2138 }
 0x80d   :  { %9568 = vrcp.f32 %v2139_v50 }
 0x810   :  { %v2599_v58 = vpop.permute.xlu1 %2598 }
 0x816   :  { %v9565_v51 = vpop.eup %9564 }
 0x817   :  { %v2143_v52 = vmul.f32 %v9565_v51, %v9559_v59  ;;  %v9567_v53 = vpop.eup %9566  ;;  %v636_v59 = vpop.xlane.xlu0 %635  ;;  %v287_v51 = vld [vmem:[%s11831_s14] sm:$0xff] }
 0x818   :  { %v2145_v55 = vmul.f32 %v9567_v53, %v10547_v22  ;;  %v641_v60 = vmul.f32 0.03125, %v636_v59 }
 0x819   :  { %9090 = vmatmul.mubr.msk.f32.vlgmr.msra.gmra.mxu0 %vm826_vm9, %v2143_v52 }
 0x81a   :  { %9098 = vmatpush3.msra.mxu0 %v2449_v48  ;;  %9099 = vmatprep.mubr.msk.f32.mxu0 %vm10122_vm8, %v10121_v17  ;;  %v9569_v56 = vpop.eup %9568  ;;  %v10735_v15 = vsub.f32 %v10658_v47, %v641_v60  ;;  %v10794_v48 = vrot.slane %v10371_v5, %v688_v27  ;;  %v598_v27 = vrot.slane %v519_v9, 5 }
 0x81b   :  { %9107 = vmatprep.subr.mxu0 %v10121_v17  ;;  %v2147_v57 = vmul.f32 %v9569_v56, %v10666_v61 }
 0x81c   :  { %v649_v61 = vmul.f32 %v10735_v15, %v10735_v15 }
 0x81d   :  { %9100 = vmatmul.mubr.msk.f32.vlgmr.msra.gmra.mxu0 %vm826_vm9, %v2145_v55 }
 0x81e   :  { %9108 = vmatpush3.msra.mxu0 %v2599_v58  ;;  %9109 = vmatprep.mubr.msk.f32.mxu0 %vm10122_vm8, %v10121_v17  ;;  %v659_v2 = vsel %vm624_vm7, %v649_v61, 0.0 }
 0x81f   :  { %9117 = vmatprep.subr.mxu0 %v290_v23 }
 0x821   :  { %9110 = vmatmul.mubr.msk.f32.vlgmr.msra.gmra.mxu0 %vm826_vm9, %v2147_v57 }
 0x822   :  { %9118 = vmatpush3.msra.mxu0 %v290_v23  ;;  %v526_v23 = vld [vmem:[%s11830_s15 + $0x15] sm:$0x1] }
 0x823   :  { %9119 = vmatprep.subr.mxu0 %v289_v24 }
 0x824   :  { %9120 = vmatpush3.msra.mxu0 %v289_v24 }
 0x825   :  { %9121 = vmatprep.subr.mxu0 %v288_v28 }
 0x826   :  { %9122 = vmatpush3.msra.mxu0 %v288_v28  ;;  %v524_v28 = vld [vmem:[%s11830_s15 + $0x11] sm:$0x1] }
 0x827   :  { %9123 = vmatprep.subr.mxu0 %v287_v51 }
 0x828   :  { %9124 = vmatpush3.msra.mxu0 %v287_v51 }
 0x83d   :  { %v652_v6 = vpop.xlane.xlu0 %651 }
 0x83e   :  { %v662_v7 = vmul.f32 0.03125, %v652_v6 }
 0x840   :  { %v666_v20 = vadd.f32 1e-05, %v662_v7  ;;  %v508_v7 = vld [vmem:[%s11830_s15 + $0x10] sm:$0x1] }
 0x841   :  { %v630_v11 = vpop.xlane.xlu1 %629  ;;  %v658_v57 = vpop.xlane.xlu0 %657 }
 0x842   :  { %v639_v62 = vmul.f32 0.03125, %v630_v11  ;;  %9570 = vrsqrt.f32 %v666_v20  ;;  %v664_v59 = vmul.f32 0.03125, %v658_v57  ;;  %v517_v11 = vld [vmem:[%s11830_s15 + $0x3] sm:$0x1]  ;;  %v525_v20 = vld [vmem:[%s11830_s15 + $0x13] sm:$0x1] }
 0x843   :  { %v608_v24 = vrot.slane %v525_v20, 7  ;;  %v528_v57 = vld [vmem:[%s11830_s15 + $0x19] sm:$0x1]  ;;  %v523_v20 = vld [vmem:[%s11830_s15 + $0xf] sm:$0x1] }
 0x844   :  { %v10738_v22 = vsub.f32 %v10708_v31, %v639_v62  ;;  %v668_v60 = vadd.f32 1e-05, %v664_v59  ;;  %v509_v62 = vld [vmem:[%s11830_s15 + $0x12] sm:$0x1] }
 0x845   :  { %v2220_v63 = vpop.f32.mrf.mxu0 }
 0x846   :  { %9085 = vmatmul.mubr.msk.f32.vlgmr.msra.gmra.mxu1 %vm826_vm9, %v2220_v63  ;;  %v647_v0 = vmul.f32 %v10738_v22, %v10738_v22  ;;  %9572 = vrsqrt.f32 %v668_v60  ;;  %v518_v63 = vld [vmem:[%s11830_s15 + $0x5] sm:$0x1]  ;;  %v522_v60 = vld [vmem:[%s11830_s15 + $0xd] sm:$0x1] }
 0x847   :  { %v9081_v19 = vpop.f32.mrf.mxu0  ;;  %9093 = vmatpush3.msra.mxu1 %v10487_v30  ;;  %9094 = vmatprep.mubr.msk.f32.mxu1 %vm10122_vm8, %v10121_v17  ;;  %v502_v30 = vld [vmem:[%s11830_s15 + $0x4] sm:$0x1]  ;;  %v604_v9 = vrot.slane %v522_v60, 2 }
 0x848   :  { %v653_v1 = vsel %vm624_vm7, %v647_v0, 0.0  ;;  %9102 = vmatprep.subr.mxu1 %v10121_v17  ;;  %v550_v16 = vrot.slane %v502_v30, 6  ;;  %v594_v0 = vrot.slane %v517_v11, 7  ;;  %v510_v19 = vld [vmem:[%s11830_s15 + $0x14] sm:$0x1]  ;;  %v596_v30 = vrot.slane %v518_v63, 6 }
 0x849   :  { %654 = vadd.xlane.f32.xlu1 %v653_v1  ;;  %v562_v1 = vrot.slane %v509_v62, 7  ;;  %v564_v13 = vrot.slane %v510_v19, 6  ;;  %v514_v63 = vld [vmem:[%s11830_s15 + $0x1c] sm:$0x1] }
 0x84a   :  { %v551_v34 = vsel %vm335_vm1, %v550_v16, %v549_v25 }
 0x84b   :  { %v553_v43 = vsel %vm338_vm2, %v552_v26, %v551_v34  ;;  %v520_v26 = vld [vmem:[%s11830_s15 + $0x9] sm:$0x1] }
 0x84c   :  { %v555_v52 = vsel %vm341_vm3, %v554_v45, %v553_v43  ;;  %v527_v43 = vld [vmem:[%s11830_s15 + $0x17] sm:$0x1]  ;;  %v610_v45 = vrot.slane %v526_v23, 6  ;;  %v606_v23 = vrot.slane %v523_v20, 1 }
 0x84d   :  { %660 = vadd.xlane.f32.xlu1 %v659_v2  ;;  %v557_v53 = vsel %vm344_vm4, %v556_v46, %v555_v52  ;;  %v516_v2 = vld [vmem:[%s11830_s15 + $0x1] sm:$0x1]  ;;  %v521_v46 = vld [vmem:[%s11830_s15 + $0xb] sm:$0x1]  ;;  %v513_v52 = vld [vmem:[%s11830_s15 + $0x1a] sm:$0x1] }
 0x84e   :  { %v595_v16 = vsel %vm332_vm0, %v594_v0, %v516_v2  ;;  %v612_v59 = vrot.slane %v527_v43, 5  ;;  %v602_v11 = vrot.slane %v521_v46, 3  ;;  %v570_v0 = vrot.slane %v513_v52, 3 }
 0x84f   :  { %v9571_v21 = vpop.eup %9570  ;;  %v597_v34 = vsel %vm335_vm1, %v596_v30, %v595_v16  ;;  %v530_v16 = vld [vmem:[%s11830_s15 + $0x1d] sm:$0x1] }
 0x850   :  { %v674_v35 = vmul.f32 %v9571_v21, %v10713_v38  ;;  %v558_v38 = vrot.slane %v506_v40, 2  ;;  %v563_v21 = vsel %vm332_vm0, %v562_v1, %v508_v7  ;;  %v614_v7 = vrot.slane %v528_v57, 4 }
 0x851   :  { %v565_v42 = vsel %vm335_vm1, %v564_v13, %v563_v21 }
 0x852   :  { %v682_v50 = vmul.f32 %v10784_v39, %v674_v35  ;;  %v559_v5 = vsel %vm347_vm5, %v558_v38, %v557_v53  ;;  %v600_v38 = vrot.slane %v520_v26, 4  ;;  %v568_v53 = vrot.slane %v512_v29, 4 }
 0x853   :  { %v561_v56 = vsel %vm350_vm6, %v560_v49, %v559_v5  ;;  %v609_v49 = vsel %vm332_vm0, %v608_v24, %v524_v28  ;;  %v599_v5 = vsel %vm338_vm2, %v598_v27, %v597_v34  ;;  %v618_v34 = vrot.slane %v530_v16, 2 }
 0x854   :  { %v10803_v55 = vadd.f32 %v10794_v48, %v682_v50  ;;  %v9573_v50 = vpop.eup %9572  ;;  %v611_v62 = vsel %vm335_vm1, %v610_v45, %v609_v49 }
 0x855   :  { %v676_v19 = vmul.f32 %v9573_v50, %v10716_v41  ;;  %v613_v41 = vsel %vm338_vm2, %v612_v59, %v611_v62 }
 0x856   :  { %v10808_v58 = vadd.f32 %v10803_v55, %v561_v56  ;;  %v567_v56 = vsel %vm338_vm2, %v566_v32, %v565_v42  ;;  %v615_v24 = vsel %vm341_vm3, %v614_v7, %v613_v41  ;;  %v531_v32 = vld [vmem:[%s11830_s15 + $0x1f] sm:$0x1] }
 0x857   :  { %v569_v2 = vsel %vm341_vm3, %v568_v53, %v567_v56  ;;  %v684_v13 = vmul.f32 %v10784_v39, %v676_v19 }
 0x858   :  { %9125 = vmatprep.mubr.msk.f32.mxu0 %vm624_vm7, %v10808_v58  ;;  %v571_v12 = vsel %vm344_vm4, %v570_v0, %v569_v2  ;;  %v10952_v2 = vld [vmem:[#allocation10] ss:$0 sm:$0xff] }
 0x8d2   :  { %v655_v61 = vpop.xlane.xlu1 %654 }
 0x8d3   :  { %v663_v6 = vmul.f32 0.03125, %v655_v61  ;;  %v601_v61 = vsel %vm341_vm3, %v600_v38, %v599_v5 }
 0x8d5   :  { %v667_v10 = vadd.f32 1e-05, %v663_v6  ;;  %v529_v6 = vld [vmem:[%s11830_s15 + $0x1b] sm:$0x1] }
 0x8d6   :  { %v661_v18 = vpop.xlane.xlu1 %660 }
 0x8d7   :  { %9574 = vrsqrt.f32 %v667_v10  ;;  %v665_v25 = vmul.f32 0.03125, %v661_v18  ;;  %v603_v10 = vsel %vm344_vm4, %v602_v11, %v601_v61  ;;  %v616_v18 = vrot.slane %v529_v6, 3 }
 0x8d8   :  { %v605_v27 = vsel %vm347_vm5, %v604_v9, %v603_v10 }
 0x8d9   :  { %v669_v35 = vadd.f32 1e-05, %v665_v25  ;;  %v2370_v40 = vpop.f32.mrf.mxu0  ;;  %v607_v43 = vsel %vm350_vm6, %v606_v23, %v605_v27 }
 0x8da   :  { %9095 = vmatmul.mubr.msk.f32.vlgmr.msra.gmra.mxu1 %vm826_vm9, %v2370_v40  ;;  %v617_v40 = vsel %vm344_vm4, %v616_v18, %v615_v24 }
 0x8db   :  { %9576 = vrsqrt.f32 %v669_v35  ;;  %v9091_v51 = vpop.f32.mrf.mxu0  ;;  %9103 = vmatpush3.msra.mxu1 %v10497_v33  ;;  %9104 = vmatprep.mubr.msk.f32.mxu1 %vm10122_vm8, %v10121_v17  ;;  %v10914_v35 = vadd.f32 %v10794_v48, %v684_v13  ;;  %v619_v49 = vsel %vm347_vm5, %v618_v34, %v617_v40 }
 0x8dc   :  { %9112 = vmatprep.subr.mxu1 %v10121_v17 }
 0x8dd   :  { %v2520_v33 = vpop.f32.mrf.mxu0  ;;  %v10926_v51 = vadd.f32 %v10914_v35, %v607_v43 }
 0x8de   :  { %9105 = vmatmul.mubr.msk.f32.vlgmr.msra.gmra.mxu1 %vm826_vm9, %v2520_v33 }
 0x8df   :  { %v9101_v1 = vpop.f32.mrf.mxu0  ;;  %9113 = vmatpush3.msra.mxu1 %v10507_v36  ;;  %9114 = vmatprep.mubr.msk.f32.mxu1 %vm10122_vm8, %v10121_v17  ;;  %v515_v36 = vld [vmem:[%s11830_s15 + $0x1e] sm:$0x1]  ;;  %v572_v17 = vrot.slane %v514_v63, 2 }
 0x8e0   :  { %v574_v26 = vrot.slane %v515_v36, 1 }
 0x8e1   :  { %v2670_v30 = vpop.f32.mrf.mxu0  ;;  %v573_v29 = vsel %vm347_vm5, %v572_v17, %v571_v12 }
 0x8e2   :  { %9115 = vmatmul.mubr.msk.f32.vlgmr.msra.gmra.mxu1 %vm826_vm9, %v2670_v30  ;;  %v575_v46 = vsel %vm350_vm6, %v574_v26, %v573_v29 }
 0x8e3   :  { %v9111_v21 = vpop.f32.mrf.mxu0 }
 0x8e4   :  { %v9575_v25 = vpop.eup %9574 }
 0x8e5   :  { %v675_v28 = vmul.f32 %v9575_v25, %v10738_v22  ;;  %v620_v22 = vrot.slane %v531_v32, 1 }
 0x8e7   :  { %v683_v42 = vmul.f32 %v10784_v39, %v675_v28  ;;  %v621_v5 = vsel %vm350_vm6, %v620_v22, %v619_v49 }
 0x8e8   :  { %v9577_v45 = vpop.eup %9576 }
 0x8e9   :  { %v10921_v38 = vadd.f32 %v10794_v48, %v683_v42  ;;  %v677_v50 = vmul.f32 %v9577_v45, %v10735_v15 }
 0x8eb   :  { %v10929_v52 = vadd.f32 %v10921_v38, %v575_v46  ;;  %v685_v53 = vmul.f32 %v10784_v39, %v677_v50 }
 0x8ed   :  { %9126 = vmatmul.mubr.msk.f32.vlgmr.msra.gmra.mxu0 %vm624_vm7, %v10929_v52  ;;  %v10936_v56 = vadd.f32 %v10794_v48, %v685_v53 }
 0x8ee   :  { %9128 = vmatprep.mubr.msk.f32.mxu0 %vm624_vm7, %v10926_v51 }
 0x8ef   :  { %v10941_v15 = vadd.f32 %v10936_v56, %v621_v5 }
 0x8f1   :  { %9129 = vmatmul.mubr.msk.f32.gmra.mxu0 %vm624_vm7, %v10941_v15 }
 0x8f2   :  { %9131 = vmatprep.mubr.msk.f32.mxu0 %vm624_vm7, %v10533_v8 }
 0x906   :  { %v2293_v39 = vpop.f32.mrf.mxu1 }
 0x907   :  { %v2297_v60 = vadd.f32 %v10530_v54, %v2293_v39 }
 0x908   :  { %v9086_v57 = vpop.f32.mrf.mxu1 }
 0x99a   :  { %v2443_v59 = vpop.f32.mrf.mxu1 }
 0x99b   :  { %v2447_v11 = vadd.f32 %v2443_v59, %v2297_v60 }
 0x99c   :  { %v9096_v33 = vpop.f32.mrf.mxu1 }
 0x99e   :  { %v2593_v48 = vpop.f32.mrf.mxu1 }
 0x99f   :  { %v2597_v63 = vadd.f32 %v2593_v48, %v2447_v11 }
 0x9a0   :  { %v9106_v62 = vpop.f32.mrf.mxu1 }
 0x9a2   :  { %v2743_v0 = vpop.f32.mrf.mxu1 }
 0x9a3   :  { %v10948_v61 = vadd.f32 %v2743_v0, %v2597_v63 }
 0x9a4   :  { %v9116_v19 = vpop.f32.mrf.mxu1 }
 0x9a5   :  { %9132 = vmatmul.mubr.msk.f32.gmra.mxu0 %vm624_vm7, %v10948_v61 }
 0x9ad   :  { %v9127_v1 = vpop.f32.mrf.mxu0 }
 0x9ae   :  { %v2844_v20 = vadd.f32 %v9127_v1, %v10952_v2 }
 0x9af   :  { %v2838_v6 = vpop.f32.mrf.mxu0 }
 0x9b0   :  { %v2839_v7 = vadd.f32 %v10952_v2, %v2838_v6 }
 0x9b1   :  { %v10959_v54 = vpop.f32.mrf.mxu0 }
 0x9b2   :  { %2953 = vrot.lane.b32.xlu1 %v2839_v7, %s10125_s1  ;;  %9136 = vmatprep.mubr.msk.f32.mxu1 %vm826_vm9, %v2839_v7 }
 0x9b3   :  { %v10961_v9 = vpop.f32.mrf.mxu0 }
 0x9b6   :  { %2955 = vrot.lane.b32.xlu1 %v2844_v20, %s10125_s1 }
 0xa24   :  { %v2954_v17 = vpop.permute.xlu1 %2953 }
 0xa28   :  { %v2956_v10 = vpop.permute.xlu1 %2955 }
 0xa65   :  { %v10963_v41 = vpop.f32.mrf.mxu0 }
 0xa67   :  { %v2858_v30 = vpop.f32.mrf.mxu0 }
 0xa68   :  { %v10966_v36 = vadd.f32 %v10952_v2, %v2858_v30 }
 0xa6a   :  { %2868 = vrot.lane.b32.xlu0 %v10966_v36, %s10124_s20  ;;  %2957 = vrot.lane.b32.xlu1 %v10966_v36, %s10123_s3 }
 0xa6e   :  { %3044 = vrot.lane.b32.xlu0 %v10966_v36, %s10127_s30  ;;  %3040 = vrot.lane.b32.xlu1 %v2839_v7, %s10126_s13 }
 0xa72   :  { %3042 = vrot.lane.b32.xlu0 %v2844_v20, %s10126_s13  ;;  %3131 = vrot.lane.b32.xlu1 %v10966_v36, %s10129_s4 }
 0xa76   :  { %3127 = vrot.lane.b32.xlu0 %v2839_v7, %s10128_s26  ;;  %3129 = vrot.lane.b32.xlu1 %v2844_v20, %s10128_s26 }
 0xadc   :  { %v2869_v12 = vpop.permute.xlu0 %2868  ;;  %v2958_v13 = vpop.permute.xlu1 %2957 }
 0xadd   :  { %9134 = vmatprep.subr.msk.mxu1 %vm826_vm9, %v2869_v12 }
 0xade   :  { %9135 = vmatpush3.xpose.msk.msra.mxu1 %vm826_vm9, %v2869_v12 }
 0xadf   :  { %9139 = vmatprep.subr.msk.mxu1 %vm826_vm9, %v2958_v13 }
 0xae0   :  { %v3045_v16 = vpop.permute.xlu0 %3044  ;;  %v3041_v18 = vpop.permute.xlu1 %3040 }
 0xae1   :  { %9137 = vmatmul.mubr.msk.f32.vlgmr.msra.gmra.mxu1 %vm826_vm9, %v2844_v20 }
 0xae2   :  { %9140 = vmatpush3.xpose.msk.msra.mxu1 %vm826_vm9, %v2958_v13  ;;  %9141 = vmatprep.mubr.msk.f32.mxu1 %vm826_vm9, %v2954_v17 }
 0xae3   :  { %9144 = vmatprep.subr.msk.mxu1 %vm826_vm9, %v3045_v16 }
 0xae4   :  { %v3043_v21 = vpop.permute.xlu0 %3042  ;;  %v3132_v23 = vpop.permute.xlu1 %3131 }
 0xae5   :  { %9142 = vmatmul.mubr.msk.f32.vlgmr.msra.gmra.mxu1 %vm826_vm9, %v2956_v10 }
 0xae6   :  { %9145 = vmatpush3.xpose.msk.msra.mxu1 %vm826_vm9, %v3045_v16  ;;  %9146 = vmatprep.mubr.msk.f32.mxu1 %vm826_vm9, %v3041_v18 }
 0xae7   :  { %9149 = vmatprep.subr.msk.mxu1 %vm826_vm9, %v3132_v23 }
 0xae8   :  { %v3128_v24 = vpop.permute.xlu0 %3127  ;;  %v3130_v25 = vpop.permute.xlu1 %3129 }
 0xae9   :  { %9147 = vmatmul.mubr.msk.f32.vlgmr.msra.gmra.mxu1 %vm826_vm9, %v3043_v21 }
 0xaea   :  { %9150 = vmatpush3.xpose.msk.msra.mxu1 %vm826_vm9, %v3132_v23  ;;  %9151 = vmatprep.mubr.msk.f32.mxu1 %vm826_vm9, %v3128_v24 }
 0xaed   :  { %9152 = vmatmul.mubr.msk.f32.vlgmr.msra.gmra.mxu1 %vm826_vm9, %v3130_v25 }
 0xba1   :  { %v9138_v26 = vpop.f32.mrf.mxu1 }
 0xba2   :  { %v3215_v27 = vmul.f32 0.35355338, %v9138_v26 }
 0xba3   :  { %v2944_v28 = vpop.f32.mrf.mxu1 }
 0xba4   :  { %v3214_v29 = vmul.f32 0.35355338, %v2944_v28  ;;  %v3225_v32 = vsel %vm826_vm9, %v3215_v27, -inf }
 0xba5   :  { %3226 = vmax.xlane.f32.xlu1 %v3225_v32  ;;  %v9143_v34 = vpop.f32.mrf.mxu1 }
 0xba6   :  { %v3217_v40 = vmul.f32 0.35355338, %v9143_v34  ;;  %v3222_v42 = vsel %vm826_vm9, %v3214_v29, -inf }
 0xba7   :  { %3223 = vmax.xlane.f32.xlu0 %v3222_v42  ;;  %v3031_v43 = vpop.f32.mrf.mxu1 }
 0xba8   :  { %v3216_v46 = vmul.f32 0.35355338, %v3031_v43  ;;  %v3231_v49 = vsel %vm826_vm9, %v3217_v40, -inf }
 0xba9   :  { %v9148_v45 = vpop.f32.mrf.mxu1 }
 0xbaa   :  { %v3219_v22 = vmul.f32 0.35355338, %v9148_v45  ;;  %v3228_v59 = vsel %vm826_vm9, %v3216_v46, -inf }
 0xbab   :  { %3232 = vmax.xlane.f32.xlu0 %v3231_v49  ;;  %v3118_v50 = vpop.f32.mrf.mxu1 }
 0xbac   :  { %v3237_v53 = vsel %vm826_vm9, %v3219_v22, -inf  ;;  %v3218_v39 = vmul.f32 0.35355338, %v3118_v50 }
 0xbad   :  { %3238 = vmax.xlane.f32.xlu1 %v3237_v53  ;;  %v9153_v5 = vpop.f32.mrf.mxu1 }
 0xbae   :  { %v3221_v57 = vmul.f32 0.35355338, %v9153_v5  ;;  %v3234_v11 = vsel %vm826_vm9, %v3218_v39, -inf }
 0xbaf   :  { %3229 = vmax.xlane.f32.xlu0 %v3228_v59  ;;  %v3205_v33 = vpop.f32.mrf.mxu1 }
 0xbb0   :  { %v3243_v60 = vsel %vm826_vm9, %v3221_v57, -inf  ;;  %v3220_v48 = vmul.f32 0.35355338, %v3205_v33 }
 0xbb1   :  { %3244 = vmax.xlane.f32.xlu1 %v3243_v60 }
 0xbb2   :  { %v3240_v62 = vsel %vm826_vm9, %v3220_v48, -inf }
 0xbb3   :  { %3235 = vmax.xlane.f32.xlu0 %v3234_v11  ;;  %v11042_v11 = vadd.f32 %v10963_v41, %v10952_v2 }
 0xbb7   :  { %3241 = vmax.xlane.f32.xlu0 %v3240_v62  ;;  %v11050_v62 = vadd.f32 %v10959_v54, %v10952_v2 }
 0xc2e   :  { %v3227_v63 = vpop.xlane.xlu1 %3226 }
 0xc2f   :  { %v3247_v0 = vsub.f32 %v3215_v27, %v3227_v63  ;;  %v11054_v63 = vadd.f32 %v10952_v2, %v10961_v9 }
 0xc30   :  { %v3224_v19 = vpop.xlane.xlu0 %3223 }
 0xc31   :  { %v3256_v1 = vmul.f32 1.442695, %v3247_v0  ;;  %v3246_v6 = vsub.f32 %v3214_v29, %v3224_v19 }
 0xc33   :  { %9578 = vpow2.f32 %v3256_v1  ;;  %v3254_v7 = vmul.f32 1.442695, %v3246_v6 }
 0xc34   :  { %v3233_v20 = vpop.xlane.xlu0 %3232 }
 0xc35   :  { %9580 = vpow2.f32 %v3254_v7  ;;  %v3249_v30 = vsub.f32 %v3217_v40, %v3233_v20 }
 0xc36   :  { %v3239_v17 = vpop.xlane.xlu1 %3238 }
 0xc37   :  { %v3260_v10 = vmul.f32 1.442695, %v3249_v30  ;;  %v3251_v12 = vsub.f32 %v3219_v22, %v3239_v17 }
 0xc38   :  { %v3230_v13 = vpop.xlane.xlu0 %3229 }
 0xc39   :  { %9582 = vpow2.f32 %v3260_v10  ;;  %v3264_v16 = vmul.f32 1.442695, %v3251_v12  ;;  %v3248_v18 = vsub.f32 %v3216_v46, %v3230_v13 }
 0xc3a   :  { %v3245_v21 = vpop.xlane.xlu1 %3244 }
 0xc3b   :  { %9584 = vpow2.f32 %v3264_v16  ;;  %v3258_v23 = vmul.f32 1.442695, %v3248_v18  ;;  %v3253_v24 = vsub.f32 %v3221_v57, %v3245_v21 }
 0xc3c   :  { %v3236_v25 = vpop.xlane.xlu0 %3235 }
 0xc3d   :  { %9586 = vpow2.f32 %v3258_v23  ;;  %v3268_v26 = vmul.f32 1.442695, %v3253_v24  ;;  %v3250_v27 = vsub.f32 %v3218_v39, %v3236_v25 }
 0xc3f   :  { %9588 = vpow2.f32 %v3268_v26  ;;  %v3262_v28 = vmul.f32 1.442695, %v3250_v27 }
 0xc40   :  { %v11003_v29 = vpop.eup %9578  ;;  %v3242_v32 = vpop.xlane.xlu0 %3241 }
 0xc41   :  { %9590 = vpow2.f32 %v3262_v28  ;;  %v3252_v34 = vsub.f32 %v3220_v48, %v3242_v32  ;;  %v3273_v40 = vsel %vm826_vm9, %v11003_v29, 0.0 }
 0xc42   :  { %v9581_v42 = vpop.eup %9580  ;;  %3274 = vadd.xlane.f32.xlu1 %v3273_v40 }
 0xc43   :  { %v3266_v43 = vmul.f32 1.442695, %v3252_v34  ;;  %v3270_v45 = vsel %vm826_vm9, %v9581_v42, 0.0 }
 0xc44   :  { %3271 = vadd.xlane.f32.xlu0 %v3270_v45 }
 0xc45   :  { %9592 = vpow2.f32 %v3266_v43 }
 0xc46   :  { %v11008_v46 = vpop.eup %9582 }
 0xc47   :  { %v3279_v22 = vsel %vm826_vm9, %v11008_v46, 0.0 }
 0xc48   :  { %v11012_v49 = vpop.eup %9584  ;;  %3280 = vadd.xlane.f32.xlu1 %v3279_v22 }
 0xc49   :  { %v3285_v53 = vsel %vm826_vm9, %v11012_v49, 0.0 }
 0xc4a   :  { %v11014_v50 = vpop.eup %9586 }
 0xc4b   :  { %v3276_v5 = vsel %vm826_vm9, %v11014_v50, 0.0 }
 0xc4c   :  { %v11020_v39 = vpop.eup %9588  ;;  %3286 = vadd.xlane.f32.xlu1 %v3285_v53  ;;  %3277 = vadd.xlane.f32.xlu0 %v3276_v5  ;;  %v11097_v53 = vld [vmem:[#allocation11 + $0x8] sm:$0xff] }
 0xc4d   :  { %v3291_v59 = vsel %vm826_vm9, %v11020_v39, 0.0 }
 0xc4e   :  { %v11022_v57 = vpop.eup %9590 }
 0xc4f   :  { %v3282_v33 = vsel %vm826_vm9, %v11022_v57, 0.0 }
 0xc50   :  { %3292 = vadd.xlane.f32.xlu1 %v3291_v59  ;;  %3283 = vadd.xlane.f32.xlu0 %v3282_v33 }
 0xc52   :  { %v11028_v60 = vpop.eup %9592 }
 0xc53   :  { %v3288_v48 = vsel %vm826_vm9, %v11028_v60, 0.0 }
 0xc54   :  { %3289 = vadd.xlane.f32.xlu0 %v3288_v48 }
 0xc61   :  { %3483 = vrot.lane.b32.xlu1 %v10966_v36, %s10133_s6 }
 0xc65   :  { %3650 = vrot.lane.b32.xlu1 %v10966_v36, %s10131_s16 }
 0xc69   :  { %3817 = vrot.lane.b32.xlu1 %v10966_v36, %s10132_s2 }
 0xc6a   :  { %3310 = vrot.lane.b32.xlu0 %v10966_v36, %s10130_s28 }
 0xc6d   :  { %4074 = vrot.lane.b32.xlu1 %v11042_v11, %s10123_s3 }
 0xc6e   :  { %3985 = vrot.lane.b32.xlu0 %v11042_v11, %s10124_s20 }
 0xc71   :  { %4072 = vrot.lane.b32.xlu1 %v11050_v62, %s10125_s1 }
 0xc72   :  { %4070 = vrot.lane.b32.xlu0 %v11054_v63, %s10125_s1 }
 0xc75   :  { %4157 = vrot.lane.b32.xlu1 %v11054_v63, %s10126_s13 }
 0xc76   :  { %4161 = vrot.lane.b32.xlu0 %v11042_v11, %s10127_s30 }
 0xc79   :  { %4248 = vrot.lane.b32.xlu1 %v11042_v11, %s10129_s4 }
 0xc7a   :  { %4159 = vrot.lane.b32.xlu0 %v11050_v62, %s10126_s13 }
 0xc7d   :  { %4246 = vrot.lane.b32.xlu1 %v11050_v62, %s10128_s26 }
 0xc7e   :  { %4244 = vrot.lane.b32.xlu0 %v11054_v63, %s10128_s26 }
 0xccb   :  { %v3275_v2 = vpop.xlane.xlu1 %3274 }
 0xccd   :  { %v3272_v54 = vpop.xlane.xlu0 %3271 }
 0xcce   :  { %9594 = vrcp.f32 %v3272_v54 }
 0xccf   :  { %9596 = vrcp.f32 %v3275_v2 }
 0xcd1   :  { %v3281_v9 = vpop.xlane.xlu1 %3280 }
 0xcd2   :  { %9598 = vrcp.f32 %v3281_v9 }
 0xcd5   :  { %v3287_v41 = vpop.xlane.xlu1 %3286  ;;  %v3278_v36 = vpop.xlane.xlu0 %3277 }
 0xcd6   :  { %9600 = vrcp.f32 %v3278_v36 }
 0xcd7   :  { %9602 = vrcp.f32 %v3287_v41 }
 0xcd9   :  { %v3293_v0 = vpop.xlane.xlu1 %3292  ;;  %v3284_v19 = vpop.xlane.xlu0 %3283 }
 0xcda   :  { %9604 = vrcp.f32 %v3284_v19 }
 0xcdb   :  { %v9595_v1 = vpop.eup %9594  ;;  %9606 = vrcp.f32 %v3293_v0 }
 0xcdc   :  { %v3295_v6 = vmul.f32 %v9595_v1, %v9581_v42  ;;  %v9597_v30 = vpop.eup %9596 }
 0xcdd   :  { %v3484_v7 = vpop.permute.xlu1 %3483  ;;  %v3290_v20 = vpop.xlane.xlu0 %3289  ;;  %v3297_v12 = vmul.f32 %v9597_v30, %v11003_v29 }
 0xcde   :  { %9608 = vrcp.f32 %v3290_v20  ;;  %9156 = vmatprep.mubr.msk.f32.mxu0 %vm826_vm9, %v3295_v6 }
 0xcdf   :  { %v9599_v13 = vpop.eup %9598 }
 0xce0   :  { %v3301_v24 = vmul.f32 %v9599_v13, %v11008_v46 }
 0xce1   :  { %v3651_v17 = vpop.permute.xlu1 %3650  ;;  %v3311_v10 = vpop.permute.xlu0 %3310 }
 0xce2   :  { %9154 = vmatprep.subr.mxu0 %v3311_v10 }
 0xce3   :  { %9155 = vmatpush3.msra.mxu0 %v3311_v10  ;;  %v9601_v16 = vpop.eup %9600 }
 0xce4   :  { %9157 = vmatmul.mubr.msk.f32.vlgmr.msra.gmra.mxu0 %vm826_vm9, %v3297_v12  ;;  %9164 = vmatprep.subr.mxu0 %v3484_v7  ;;  %v3299_v23 = vmul.f32 %v9601_v16, %v11014_v50  ;;  %v9603_v25 = vpop.eup %9602  ;;  %v292_v50 = vld [vmem:[#allocation11] sm:$0xff] }
 0xce5   :  { %v3818_v18 = vpop.permute.xlu1 %3817  ;;  %9165 = vmatpush3.msra.mxu0 %v3484_v7  ;;  %v3986_v21 = vpop.permute.xlu0 %3985  ;;  %v3305_v32 = vmul.f32 %v9603_v25, %v11012_v49  ;;  %9159 = vmatprep.subr.mxu1 %v292_v50  ;;  %v11129_v12 = vld [vmem:[#allocation13] ss:$0 sm:$0xff] }
 0xce6   :  { %9174 = vmatprep.subr.mxu0 %v3651_v17  ;;  %9166 = vmatprep.mubr.msk.f32.mxu0 %vm826_vm9, %v3299_v23 }
 0xce7   :  { %v9605_v26 = vpop.eup %9604  ;;  %9160 = vmatpush3.msra.mxu1 %v292_v50 }
 0xce8   :  { %9167 = vmatmul.mubr.msk.f32.vlgmr.msra.gmra.mxu0 %vm826_vm9, %v3301_v24  ;;  %v3303_v28 = vmul.f32 %v9605_v26, %v11022_v57  ;;  %v9607_v29 = vpop.eup %9606  ;;  %9169 = vmatprep.subr.mxu1 %v11097_v53  ;;  %v11101_v57 = vld [vmem:[#allocation11 + $0x10] sm:$0xff] }
 0xce9   :  { %9175 = vmatpush3.msra.mxu0 %v3651_v17  ;;  %v4075_v27 = vpop.permute.xlu1 %4074  ;;  %v4071_v40 = vpop.permute.xlu0 %4070  ;;  %v3309_v45 = vmul.f32 %v9607_v29, %v11020_v39 }
 0xcea   :  { %9184 = vmatprep.subr.mxu0 %v3818_v18  ;;  %9176 = vmatprep.mubr.msk.f32.mxu0 %vm826_vm9, %v3303_v28 }
 0xceb   :  { %v9609_v34 = vpop.eup %9608 }
 0xcec   :  { %9177 = vmatmul.mubr.msk.f32.vlgmr.msra.gmra.mxu0 %vm826_vm9, %v3305_v32  ;;  %v3307_v42 = vmul.f32 %v9609_v34, %v11028_v60  ;;  %v11107_v60 = vld [vmem:[#allocation11 + $0x18] sm:$0xff] }
 0xced   :  { %9185 = vmatpush3.msra.mxu0 %v3818_v18  ;;  %v4073_v43 = vpop.permute.xlu1 %4072  ;;  %v4162_v46 = vpop.permute.xlu0 %4161 }
 0xcee   :  { %9194 = vmatprep.subr.msk.mxu0 %vm826_vm9, %v3986_v21  ;;  %9186 = vmatprep.mubr.msk.f32.mxu0 %vm826_vm9, %v3307_v42 }
 0xcf0   :  { %9187 = vmatmul.mubr.msk.f32.vlgmr.msra.gmra.mxu0 %vm826_vm9, %v3309_v45 }
 0xcf1   :  { %9195 = vmatpush3.xpose.msk.msra.mxu0 %vm826_vm9, %v3986_v21  ;;  %9196 = vmatprep.mubr.msk.f32.mxu0 %vm826_vm9, %v11054_v63  ;;  %v4158_v22 = vpop.permute.xlu1 %4157  ;;  %v4160_v49 = vpop.permute.xlu0 %4159 }
 0xcf2   :  { %9204 = vmatprep.subr.msk.mxu0 %vm826_vm9, %v4162_v46 }
 0xcf4   :  { %9197 = vmatmul.mubr.msk.f32.vlgmr.msra.gmra.mxu0 %vm826_vm9, %v11050_v62 }
 0xcf5   :  { %9205 = vmatpush3.xpose.msk.msra.mxu0 %vm826_vm9, %v4162_v46  ;;  %9206 = vmatprep.mubr.msk.f32.mxu0 %vm826_vm9, %v4158_v22  ;;  %v4249_v9 = vpop.permute.xlu1 %4248  ;;  %v4245_v1 = vpop.permute.xlu0 %4244 }
 0xcf8   :  { %9207 = vmatmul.mubr.msk.f32.vlgmr.msra.gmra.mxu0 %vm826_vm9, %v4160_v49 }
 0xcf9   :  { %v4247_v30 = vpop.permute.xlu1 %4246 }
 0xda4   :  { %v9158_v5 = vpop.f32.mrf.mxu0 }
 0xda6   :  { %v3385_v39 = vpop.f32.mrf.mxu0 }
 0xda7   :  { %9161 = vmatprep.mubr.msk.f32.mxu1 %vm826_vm9, %v3385_v39 }
 0xda8   :  { %9162 = vmatmul.mubr.msk.f32.vlgmr.msra.gmra.mxu1 %vm826_vm9, %v9158_v5  ;;  %v9168_v59 = vpop.f32.mrf.mxu0 }
 0xda9   :  { %9170 = vmatpush3.msra.mxu1 %v11097_v53 }
 0xdaa   :  { %v3558_v33 = vpop.f32.mrf.mxu0  ;;  %9179 = vmatprep.subr.mxu1 %v11101_v57 }
 0xdab   :  { %9171 = vmatprep.mubr.msk.f32.mxu1 %vm826_vm9, %v3558_v33 }
 0xdac   :  { %9172 = vmatmul.mubr.msk.f32.vlgmr.msra.gmra.mxu1 %vm826_vm9, %v9168_v59  ;;  %v9178_v48 = vpop.f32.mrf.mxu0 }
 0xdad   :  { %9180 = vmatpush3.msra.mxu1 %v11101_v57 }
 0xdae   :  { %v3725_v62 = vpop.f32.mrf.mxu0  ;;  %9189 = vmatprep.subr.mxu1 %v11107_v60 }
 0xdaf   :  { %9181 = vmatprep.mubr.msk.f32.mxu1 %vm826_vm9, %v3725_v62 }
 0xdb0   :  { %9182 = vmatmul.mubr.msk.f32.vlgmr.msra.gmra.mxu1 %vm826_vm9, %v9178_v48  ;;  %v9188_v63 = vpop.f32.mrf.mxu0 }
 0xdb1   :  { %9190 = vmatpush3.msra.mxu1 %v11107_v60 }
 0xdb2   :  { %9199 = vmatprep.subr.msk.mxu1 %vm826_vm9, %v4075_v27  ;;  %v3892_v2 = vpop.f32.mrf.mxu0 }
 0xdb3   :  { %9191 = vmatprep.mubr.msk.f32.mxu1 %vm826_vm9, %v3892_v2 }
 0xdb4   :  { %9192 = vmatmul.mubr.msk.f32.vlgmr.msra.gmra.mxu1 %vm826_vm9, %v9188_v63  ;;  %v9198_v54 = vpop.f32.mrf.mxu0 }
 0xdb5   :  { %v4332_v41 = vmul.f32 0.35355338, %v9198_v54  ;;  %9200 = vmatpush3.xpose.msk.msra.mxu1 %vm826_vm9, %v4075_v27  ;;  %9201 = vmatprep.mubr.msk.f32.mxu1 %vm826_vm9, %v4071_v40 }
 0xdb6   :  { %9209 = vmatprep.subr.msk.mxu1 %vm826_vm9, %v4249_v9  ;;  %v4061_v36 = vpop.f32.mrf.mxu0 }
 0xdb7   :  { %v4331_v0 = vmul.f32 0.35355338, %v4061_v36  ;;  %v4342_v19 = vsel %vm826_vm9, %v4332_v41, -inf }
 0xdb8   :  { %4343 = vmax.xlane.f32.xlu1 %v4342_v19  ;;  %9202 = vmatmul.mubr.msk.f32.vlgmr.msra.gmra.mxu1 %vm826_vm9, %v4073_v43  ;;  %v9208_v6 = vpop.f32.mrf.mxu0 }
 0xdb9   :  { %v4336_v7 = vmul.f32 0.35355338, %v9208_v6  ;;  %9210 = vmatpush3.xpose.msk.msra.mxu1 %vm826_vm9, %v4249_v9  ;;  %9211 = vmatprep.mubr.msk.f32.mxu1 %vm826_vm9, %v4245_v1  ;;  %v4339_v20 = vsel %vm826_vm9, %v4331_v0, -inf }
 0xdba   :  { %4340 = vmax.xlane.f32.xlu0 %v4339_v20  ;;  %9219 = vmatprep.subr.mxu1 %v292_v50  ;;  %v4235_v54 = vpop.f32.mrf.mxu0 }
 0xdbb   :  { %v4354_v17 = vsel %vm826_vm9, %v4336_v7, -inf  ;;  %v4335_v36 = vmul.f32 0.35355338, %v4235_v54 }
 0xdbc   :  { %4355 = vmax.xlane.f32.xlu1 %v4354_v17  ;;  %9212 = vmatmul.mubr.msk.f32.vlgmr.msra.gmra.mxu1 %vm826_vm9, %v4247_v30 }
 0xdbd   :  { %9220 = vmatpush3.msra.mxu1 %v292_v50  ;;  %v4351_v20 = vsel %vm826_vm9, %v4335_v36, -inf }
 0xdbe   :  { %9229 = vmatprep.subr.mxu1 %v11097_v53 }
 0xe41   :  { %v4344_v10 = vpop.xlane.xlu1 %4343 }
 0xe42   :  { %v4364_v18 = vsub.f32 %v4332_v41, %v4344_v10 }
 0xe43   :  { %v4341_v34 = vpop.xlane.xlu0 %4340 }
 0xe44   :  { %v4373_v28 = vmul.f32 1.442695, %v4364_v18  ;;  %v4363_v45 = vsub.f32 %v4331_v0, %v4341_v34 }
 0xe45   :  { %v4356_v23 = vpop.xlane.xlu1 %4355 }
 0xe46   :  { %v4368_v29 = vsub.f32 %v4336_v7, %v4356_v23  ;;  %9610 = vpow2.f32 %v4373_v28  ;;  %v4371_v39 = vmul.f32 1.442695, %v4363_v45 }
 0xe48   :  { %v4381_v46 = vmul.f32 1.442695, %v4368_v29 }
 0xe4a   :  { %9612 = vpow2.f32 %v4381_v46 }
 0xe4b   :  { %9614 = vpow2.f32 %v4371_v39 }
 0xe53   :  { %v11140_v1 = vpop.eup %9610 }
 0xe54   :  { %v4390_v30 = vsel %vm826_vm9, %v11140_v1, 0.0 }
 0xe57   :  { %v11145_v17 = vpop.eup %9612 }
 0xe58   :  { %v4402_v10 = vsel %vm826_vm9, %v11145_v17, 0.0 }
 0xe68   :  { %v9163_v13 = vpop.f32.mrf.mxu1 }
 0xe69   :  { %v3482_v21 = vadd.f32 %v9163_v13, %v11129_v12 }
 0xe6a   :  { %v3466_v16 = vpop.f32.mrf.mxu1 }
 0xe6b   :  { %v3481_v25 = vadd.f32 %v11129_v12, %v3466_v16  ;;  %v9615_v16 = vpop.eup %9614 }
 0xe6c   :  { %v9173_v24 = vpop.f32.mrf.mxu1  ;;  %v4387_v18 = vsel %vm826_vm9, %v9615_v16, 0.0 }
 0xe6d   :  { %v3649_v26 = vadd.f32 %v9173_v24, %v3482_v21 }
 0xe6e   :  { %v3639_v27 = vpop.f32.mrf.mxu1 }
 0xe6f   :  { %v3648_v32 = vadd.f32 %v3639_v27, %v3481_v25 }
 0xe70   :  { %v9183_v40 = vpop.f32.mrf.mxu1 }
 0xe71   :  { %v3816_v42 = vadd.f32 %v9183_v40, %v3649_v26 }
 0xe72   :  { %v3806_v43 = vpop.f32.mrf.mxu1 }
 0xe73   :  { %v3815_v22 = vadd.f32 %v3806_v43, %v3648_v32 }
 0xe74   :  { %v9193_v49 = vpop.f32.mrf.mxu1 }
 0xe75   :  { %v11133_v50 = vadd.f32 %v9193_v49, %v3816_v42 }
 0xe76   :  { %v3973_v5 = vpop.f32.mrf.mxu1 }
 0xe77   :  { %v11135_v59 = vadd.f32 %v3973_v5, %v3815_v22 }
 0xe78   :  { %v9203_v33 = vpop.f32.mrf.mxu1 }
 0xe79   :  { %v4334_v48 = vmul.f32 0.35355338, %v9203_v33 }
 0xe7a   :  { %v4148_v62 = vpop.f32.mrf.mxu1 }
 0xe7b   :  { %v4333_v63 = vmul.f32 0.35355338, %v4148_v62  ;;  %v4348_v2 = vsel %vm826_vm9, %v4334_v48, -inf }
 0xe7c   :  { %4349 = vmax.xlane.f32.xlu0 %v4348_v2  ;;  %v9213_v9 = vpop.f32.mrf.mxu1 }
 0xe7d   :  { %v4338_v41 = vmul.f32 0.35355338, %v9213_v9  ;;  %v4345_v0 = vsel %vm826_vm9, %v4333_v63, -inf }
 0xe7e   :  { %v4322_v6 = vpop.f32.mrf.mxu1 }
 0xe7f   :  { %v4360_v19 = vsel %vm826_vm9, %v4338_v41, -inf  ;;  %v4337_v7 = vmul.f32 0.35355338, %v4322_v6 }
 0xe80   :  { %4346 = vmax.xlane.f32.xlu0 %v4345_v0  ;;  %4361 = vmax.xlane.f32.xlu1 %v4360_v19 }
 0xe81   :  { %v4357_v13 = vsel %vm826_vm9, %v4337_v7, -inf }
 0xe84   :  { %4352 = vmax.xlane.f32.xlu0 %v4351_v20  ;;  %4391 = vadd.xlane.f32.xlu1 %v4390_v30 }
 0xe88   :  { %4403 = vadd.xlane.f32.xlu1 %v4402_v10  ;;  %4358 = vmax.xlane.f32.xlu0 %v4357_v13 }
 0xe8c   :  { %4388 = vadd.xlane.f32.xlu0 %v4387_v18 }
 0xf05   :  { %v4350_v21 = vpop.xlane.xlu0 %4349 }
 0xf06   :  { %v4366_v23 = vsub.f32 %v4334_v48, %v4350_v21 }
 0xf08   :  { %v4377_v24 = vmul.f32 1.442695, %v4366_v23 }
 0xf09   :  { %v4362_v25 = vpop.xlane.xlu1 %4361  ;;  %v4347_v26 = vpop.xlane.xlu0 %4346 }
 0xf0a   :  { %9616 = vpow2.f32 %v4377_v24  ;;  %v4370_v27 = vsub.f32 %v4338_v41, %v4362_v25  ;;  %v4365_v29 = vsub.f32 %v4333_v63, %v4347_v26 }
 0xf0c   :  { %v4385_v28 = vmul.f32 1.442695, %v4370_v27  ;;  %v4375_v40 = vmul.f32 1.442695, %v4365_v29 }
 0xf0d   :  { %v4353_v32 = vpop.xlane.xlu0 %4352  ;;  %v4392_v0 = vpop.xlane.xlu1 %4391 }
 0xf0e   :  { %9618 = vpow2.f32 %v4385_v28  ;;  %v4367_v34 = vsub.f32 %v4335_v36, %v4353_v32 }
 0xf10   :  { %v4379_v42 = vmul.f32 1.442695, %v4367_v34 }
 0xf11   :  { %v4359_v43 = vpop.xlane.xlu0 %4358  ;;  %v4404_v19 = vpop.xlane.xlu1 %4403 }
 0xf12   :  { %9620 = vpow2.f32 %v4379_v42  ;;  %v4369_v45 = vsub.f32 %v4337_v7, %v4359_v43  ;;  %v300_v43 = vld [vmem:[%s11793_s12 + $0x18] sm:$0xff] }
 0xf13   :  { %9622 = vpow2.f32 %v4375_v40 }
 0xf14   :  { %v4383_v46 = vmul.f32 1.442695, %v4369_v45 }
 0xf15   :  { %v4389_v22 = vpop.xlane.xlu0 %4388 }
 0xf16   :  { %9624 = vrcp.f32 %v4389_v22  ;;  %v298_v22 = vld [vmem:[%s11793_s12 + $0x8] sm:$0xff] }
 0xf17   :  { %v9617_v49 = vpop.eup %9616  ;;  %9626 = vpow2.f32 %v4383_v46  ;;  %v5095_v46 = vadd.f32 %v11135_v59, %v10808_v58  ;;  %v5096_v59 = vadd.f32 %v11133_v50, %v10929_v52 }
 0xf18   :  { %v4396_v5 = vsel %vm826_vm9, %v9617_v49, 0.0  ;;  %9628 = vrcp.f32 %v4392_v0 }
 0xf19   :  { %4397 = vadd.xlane.f32.xlu1 %v4396_v5 }
 0xf1b   :  { %v11152_v39 = vpop.eup %9618 }
 0xf1c   :  { %v4408_v33 = vsel %vm826_vm9, %v11152_v39, 0.0 }
 0xf1d   :  { %4409 = vadd.xlane.f32.xlu1 %v4408_v33 }
 0xf1f   :  { %v9621_v48 = vpop.eup %9620 }
 0xf20   :  { %v4399_v62 = vsel %vm826_vm9, %v9621_v48, 0.0  ;;  %v9623_v63 = vpop.eup %9622 }
 0xf21   :  { %4400 = vadd.xlane.f32.xlu0 %v4399_v62  ;;  %v4393_v54 = vsel %vm826_vm9, %v9623_v63, 0.0 }
 0xf23   :  { %v9625_v2 = vpop.eup %9624 }
 0xf24   :  { %v9627_v9 = vpop.eup %9626  ;;  %v4412_v41 = vmul.f32 %v9625_v2, %v9615_v16 }
 0xf25   :  { %4394 = vadd.xlane.f32.xlu0 %v4393_v54  ;;  %v4405_v36 = vsel %vm826_vm9, %v9627_v9, 0.0  ;;  %v9629_v13 = vpop.eup %9628  ;;  %v11209_v54 = vld [vmem:[#allocation14] ss:$0 sm:$0xff] }
 0xf26   :  { %9216 = vmatprep.mubr.msk.f32.mxu0 %vm826_vm9, %v4412_v41 }
 0xf29   :  { %4406 = vadd.xlane.f32.xlu0 %v4405_v36 }
 0xf2e   :  { %4594 = vrot.lane.b32.xlu1 %v11042_v11, %s10133_s6 }
 0xf32   :  { %4761 = vrot.lane.b32.xlu1 %v11042_v11, %s10131_s16 }
 0xf36   :  { %4928 = vrot.lane.b32.xlu1 %v11042_v11, %s10132_s2 }
 0xf3f   :  { %4427 = vrot.lane.b32.xlu0 %v11042_v11, %s10130_s28  ;;  %v4414_v11 = vmul.f32 %v9629_v13, %v11140_v1 }
 0xfa2   :  { %v4398_v6 = vpop.xlane.xlu1 %4397 }
 0xfa3   :  { %9630 = vrcp.f32 %v4398_v6 }
 0xfa6   :  { %v4410_v20 = vpop.xlane.xlu1 %4409 }
 0xfaa   :  { %v4401_v7 = vpop.xlane.xlu0 %4400  ;;  %v4595_v16 = vpop.permute.xlu1 %4594 }
 0xfab   :  { %9632 = vrcp.f32 %v4401_v7 }
 0xfae   :  { %v4395_v30 = vpop.xlane.xlu0 %4394  ;;  %v4762_v23 = vpop.permute.xlu1 %4761 }
 0xfaf   :  { %9634 = vrcp.f32 %v4395_v30 }
 0xfb0   :  { %9636 = vrcp.f32 %v4404_v19  ;;  %v9631_v21 = vpop.eup %9630 }
 0xfb1   :  { %v4418_v27 = vmul.f32 %v9631_v21, %v9617_v49  ;;  %v297_v49 = vld [vmem:[%s11793_s12] sm:$0xff] }
 0xfb2   :  { %v4407_v10 = vpop.xlane.xlu0 %4406  ;;  %v4929_v1 = vpop.permute.xlu1 %4928 }
 0xfb3   :  { %9638 = vrcp.f32 %v4407_v10 }
 0xfb4   :  { %9640 = vrcp.f32 %v4410_v20 }
 0xfb6   :  { %v4428_v18 = vpop.permute.xlu0 %4427 }
 0xfb7   :  { %9214 = vmatprep.subr.mxu0 %v4428_v18 }
 0xfb8   :  { %9215 = vmatpush3.msra.mxu0 %v4428_v18  ;;  %v9633_v24 = vpop.eup %9632 }
 0xfb9   :  { %9217 = vmatmul.mubr.msk.f32.vlgmr.msra.gmra.mxu0 %vm826_vm9, %v4414_v11  ;;  %9224 = vmatprep.subr.mxu0 %v4595_v16  ;;  %v4420_v29 = vmul.f32 %v9633_v24, %v9621_v48 }
 0xfba   :  { %9225 = vmatpush3.msra.mxu0 %v4595_v16 }
 0xfbb   :  { %9234 = vmatprep.subr.mxu0 %v4762_v23 }
 0xfbc   :  { %v9635_v25 = vpop.eup %9634 }
 0xfbd   :  { %v4416_v26 = vmul.f32 %v9635_v25, %v9623_v63  ;;  %v9637_v28 = vpop.eup %9636 }
 0xfbe   :  { %v4422_v34 = vmul.f32 %v9637_v28, %v11145_v17  ;;  %v299_v17 = vld [vmem:[%s11793_s12 + $0x10] sm:$0xff] }
 0xfbf   :  { %9226 = vmatprep.mubr.msk.f32.mxu0 %vm826_vm9, %v4416_v26 }
 0xfc0   :  { %v9639_v32 = vpop.eup %9638  ;;  %9227 = vmatmul.mubr.msk.f32.vlgmr.msra.gmra.mxu0 %vm826_vm9, %v4418_v27 }
 0xfc1   :  { %9235 = vmatpush3.msra.mxu0 %v4762_v23  ;;  %9236 = vmatprep.mubr.msk.f32.mxu0 %vm826_vm9, %v4420_v29  ;;  %v9641_v40 = vpop.eup %9640  ;;  %v4424_v42 = vmul.f32 %v9639_v32, %v9627_v9 }
 0xfc2   :  { %9244 = vmatprep.subr.mxu0 %v4929_v1  ;;  %v4426_v45 = vmul.f32 %v9641_v40, %v11152_v39 }
 0xfc4   :  { %9237 = vmatmul.mubr.msk.f32.vlgmr.msra.gmra.mxu0 %vm826_vm9, %v4422_v34 }
 0xfc5   :  { %9245 = vmatpush3.msra.mxu0 %v4929_v1  ;;  %9246 = vmatprep.mubr.msk.f32.mxu0 %vm826_vm9, %v4424_v42 }
 0xfc6   :  { %9254 = vmatprep.subr.mxu0 %v300_v43 }
 0xfc8   :  { %9247 = vmatmul.mubr.msk.f32.vlgmr.msra.gmra.mxu0 %vm826_vm9, %v4426_v45 }
 0xfc9   :  { %9255 = vmatpush3.msra.mxu0 %v300_v43  ;;  %9262 = vmatprep.mubr.msk.f32.mxu0 %vm624_vm7, %v5095_v46 }
 0xfca   :  { %9256 = vmatprep.subr.mxu0 %v299_v17 }
 0xfcb   :  { %9257 = vmatpush3.msra.mxu0 %v299_v17 }
 0xfcc   :  { %9258 = vmatprep.subr.mxu0 %v298_v22 }
 0xfcd   :  { %9259 = vmatpush3.msra.mxu0 %v298_v22 }
 0xfce   :  { %9260 = vmatprep.subr.mxu0 %v297_v49 }
 0xfcf   :  { %9261 = vmatpush3.msra.mxu0 %v297_v49 }
 0xfd0   :  { %9263 = vmatmul.mubr.msk.f32.vlgmr.msra.gmra.mxu0 %vm624_vm7, %v5096_v59 }
0x1079   :  { %v9218_v5 = vpop.f32.mrf.mxu0 }
0x107b   :  { %v4502_v39 = vpop.f32.mrf.mxu0 }
0x107c   :  { %9221 = vmatprep.mubr.msk.f32.mxu1 %vm826_vm9, %v4502_v39 }
0x107d   :  { %9222 = vmatmul.mubr.msk.f32.vlgmr.msra.gmra.mxu1 %vm826_vm9, %v9218_v5 }
0x107e   :  { %9230 = vmatpush3.msra.mxu1 %v11097_v53 }
0x107f   :  { %9239 = vmatprep.subr.mxu1 %v11101_v57 }
0x1080   :  { %v9228_v33 = vpop.f32.mrf.mxu0 }
0x1082   :  { %v4669_v48 = vpop.f32.mrf.mxu0 }
0x1083   :  { %9231 = vmatprep.mubr.msk.f32.mxu1 %vm826_vm9, %v4669_v48 }
0x1084   :  { %9232 = vmatmul.mubr.msk.f32.vlgmr.msra.gmra.mxu1 %vm826_vm9, %v9228_v33  ;;  %v9238_v50 = vpop.f32.mrf.mxu0 }
0x1085   :  { %9240 = vmatpush3.msra.mxu1 %v11101_v57 }
0x1086   :  { %v4836_v62 = vpop.f32.mrf.mxu0  ;;  %9249 = vmatprep.subr.mxu1 %v11107_v60 }
0x1087   :  { %9241 = vmatprep.mubr.msk.f32.mxu1 %vm826_vm9, %v4836_v62 }
0x1088   :  { %9242 = vmatmul.mubr.msk.f32.vlgmr.msra.gmra.mxu1 %vm826_vm9, %v9238_v50  ;;  %v9248_v63 = vpop.f32.mrf.mxu0 }
0x1089   :  { %9250 = vmatpush3.msra.mxu1 %v11107_v60 }
0x108a   :  { %v5003_v53 = vpop.f32.mrf.mxu0 }
0x108b   :  { %9251 = vmatprep.mubr.msk.f32.mxu1 %vm826_vm9, %v5003_v53 }
0x108c   :  { %9252 = vmatmul.mubr.msk.f32.vlgmr.msra.gmra.mxu1 %vm826_vm9, %v9248_v63 }
0x1090   :  { %v9264_v2 = vpop.f32.mrf.mxu0 }
0x1092   :  { %v5195_v9 = vpop.f32.mrf.mxu0 }
0x1093   :  { %v5196_v57 = vadd.f32 %v11209_v54, %v5195_v9 }
0x1095   :  { %9284 = vmatprep.mubr.msk.f32.mxu1 %vm826_vm9, %v5196_v57 }
0x113d   :  { %v9223_v41 = vpop.f32.mrf.mxu1 }
0x113e   :  { %v4593_v6 = vadd.f32 %v9223_v41, %v11129_v12 }
0x113f   :  { %v4583_v36 = vpop.f32.mrf.mxu1 }
0x1140   :  { %v4592_v7 = vadd.f32 %v11129_v12, %v4583_v36 }
0x1144   :  { %v9233_v0 = vpop.f32.mrf.mxu1 }
0x1145   :  { %v4760_v20 = vadd.f32 %v9233_v0, %v4593_v6 }
0x1146   :  { %v4750_v19 = vpop.f32.mrf.mxu1 }
0x1147   :  { %v4759_v10 = vadd.f32 %v4750_v19, %v4592_v7 }
0x1148   :  { %v9243_v60 = vpop.f32.mrf.mxu1 }
0x1149   :  { %v4927_v13 = vadd.f32 %v9243_v60, %v4760_v20 }
0x114a   :  { %v4917_v30 = vpop.f32.mrf.mxu1 }
0x114b   :  { %v4926_v18 = vadd.f32 %v4917_v30, %v4759_v10 }
0x114c   :  { %v9253_v16 = vpop.f32.mrf.mxu1 }
0x114d   :  { %v5094_v11 = vadd.f32 %v9253_v16, %v4927_v13 }
0x114e   :  { %v5084_v21 = vpop.f32.mrf.mxu1 }
0x114f   :  { %v5093_v23 = vadd.f32 %v5084_v21, %v4926_v18  ;;  %v5098_v25 = vadd.f32 %v5094_v11, %v10941_v15 }
0x1151   :  { %v5097_v24 = vadd.f32 %v5093_v23, %v10926_v51 }
0x1153   :  { %9265 = vmatprep.mubr.msk.f32.mxu0 %vm624_vm7, %v5097_v24 }
0x1154   :  { %9266 = vmatmul.mubr.msk.f32.gmra.mxu0 %vm624_vm7, %v5098_v25 }
0x1155   :  { %9268 = vmatprep.mubr.msk.f32.mxu0 %vm624_vm7, %v10808_v58 }
0x1158   :  { %9269 = vmatmul.mubr.msk.f32.gmra.mxu0 %vm624_vm7, %v10929_v52 }
0x1159   :  { %9271 = vmatprep.mubr.msk.f32.mxu0 %vm624_vm7, %v10926_v51 }
0x115c   :  { %9272 = vmatmul.mubr.msk.f32.gmra.mxu0 %vm624_vm7, %v10941_v15 }
0x115d   :  { %9274 = vmatprep.mubr.msk.f32.mxu0 %vm624_vm7, %v10803_v55  ;;  %v5201_v55 = vadd.f32 %v9264_v2, %v11209_v54 }
0x1160   :  { %9275 = vmatmul.mubr.msk.f32.gmra.mxu0 %vm624_vm7, %v10921_v38 }
0x1161   :  { %9277 = vmatprep.mubr.msk.f32.mxu0 %vm624_vm7, %v10914_v35 }
0x1164   :  { %9278 = vmatmul.mubr.msk.f32.gmra.mxu0 %vm624_vm7, %v10936_v56 }
0x1214   :  { %v11235_v58 = vpop.f32.mrf.mxu0 }
0x1216   :  { %v11237_v52 = vpop.f32.mrf.mxu0 }
0x1218   :  { %v9270_v51 = vpop.f32.mrf.mxu0 }
0x1219   :  { %v5221_v12 = vadd.f32 %v9270_v51, %v11209_v54 }
0x121a   :  { %v5215_v15 = vpop.f32.mrf.mxu0 }
0x121b   :  { %v5216_v26 = vadd.f32 %v11209_v54, %v5215_v15  ;;  %5258 = vrot.lane.b32.xlu0 %v5221_v12, %s10124_s20 }
0x121c   :  { %v11279_v17 = vpop.f32.mrf.mxu0 }
0x121d   :  { %5256 = vrot.lane.b32.xlu1 %v5216_v26, %s10124_s20 }
0x121e   :  { %v11281_v22 = vpop.f32.mrf.mxu0 }
0x121f   :  { %5351 = vrot.lane.b32.xlu0 %v5221_v12, %s10123_s3 }
0x1220   :  { %v9276_v48 = vpop.f32.mrf.mxu0 }
0x1221   :  { %5442 = vrot.lane.b32.xlu1 %v5221_v12, %s10127_s30  ;;  %v11301_v24 = vadd.f32 %v9276_v48, %v11209_v54 }
0x1222   :  { %v5235_v62 = vpop.f32.mrf.mxu0 }
0x1223   :  { %5345 = vrot.lane.b32.xlu0 %v5196_v57, %s10125_s1  ;;  %v11296_v23 = vadd.f32 %v11209_v54, %v5235_v62 }
0x1224   :  { %v11286_v41 = vpop.f32.mrf.mxu0 }
0x1225   :  { %5349 = vrot.lane.b32.xlu1 %v5216_v26, %s10123_s3 }
0x1226   :  { %v11289_v0 = vpop.f32.mrf.mxu0 }
0x1227   :  { %5347 = vrot.lane.b32.xlu0 %v5201_v55, %s10125_s1 }
0x1229   :  { %5436 = vrot.lane.b32.xlu1 %v5196_v57, %s10126_s13 }
0x122b   :  { %5533 = vrot.lane.b32.xlu0 %v5221_v12, %s10129_s4 }
0x122d   :  { %5440 = vrot.lane.b32.xlu1 %v5216_v26, %s10127_s30 }
0x122f   :  { %5438 = vrot.lane.b32.xlu0 %v5201_v55, %s10126_s13 }
0x1231   :  { %5531 = vrot.lane.b32.xlu1 %v5216_v26, %s10129_s4 }
0x1233   :  { %5527 = vrot.lane.b32.xlu0 %v5196_v57, %s10128_s26 }
0x1235   :  { %5529 = vrot.lane.b32.xlu1 %v5201_v55, %s10128_s26 }
0x128d   :  { %v5259_v35 = vpop.permute.xlu0 %5258 }
0x128e   :  { %9280 = vmatprep.subr.msk.mxu1 %vm826_vm9, %v5259_v35 }
0x128f   :  { %9281 = vmatpush3.xpose.msk.msra.mxu1 %vm826_vm9, %v5259_v35  ;;  %v5257_v38 = vpop.permute.xlu1 %5256 }
0x1290   :  { %9282 = vmatprep.subr.msk.mxu1 %vm826_vm9, %v5257_v38 }
0x1291   :  { %v5352_v56 = vpop.permute.xlu0 %5351 }
0x1293   :  { %9283 = vmatpush3.xpose.msk.msra.mxu1 %vm826_vm9, %v5257_v38  ;;  %v5443_v27 = vpop.permute.xlu1 %5442 }
0x1294   :  { %9287 = vmatprep.subr.msk.mxu1 %vm826_vm9, %v5352_v56 }
0x1295   :  { %v5346_v28 = vpop.permute.xlu0 %5345 }
0x1296   :  { %9285 = vmatmul.mubr.msk.f32.vlgmr.msra.gmra.mxu1 %vm826_vm9, %v5201_v55 }
0x1297   :  { %9288 = vmatpush3.xpose.msk.msra.mxu1 %vm826_vm9, %v5352_v56  ;;  %9291 = vmatprep.mubr.msk.f32.mxu1 %vm826_vm9, %v5346_v28  ;;  %v5350_v29 = vpop.permute.xlu1 %5349 }
0x1298   :  { %9289 = vmatprep.subr.msk.mxu1 %vm826_vm9, %v5350_v29 }
0x1299   :  { %v5348_v32 = vpop.permute.xlu0 %5347 }
0x129b   :  { %9290 = vmatpush3.xpose.msk.msra.mxu1 %vm826_vm9, %v5350_v29  ;;  %v5437_v1 = vpop.permute.xlu1 %5436 }
0x129c   :  { %9294 = vmatprep.subr.msk.mxu1 %vm826_vm9, %v5443_v27 }
0x129d   :  { %v5534_v34 = vpop.permute.xlu0 %5533 }
0x129e   :  { %9292 = vmatmul.mubr.msk.f32.vlgmr.msra.gmra.mxu1 %vm826_vm9, %v5348_v32  ;;  %9301 = vmatprep.subr.msk.mxu0 %vm826_vm9, %v5534_v34 }
0x129f   :  { %9295 = vmatpush3.xpose.msk.msra.mxu1 %vm826_vm9, %v5443_v27  ;;  %9298 = vmatprep.mubr.msk.f32.mxu1 %vm826_vm9, %v5437_v1  ;;  %v5441_v40 = vpop.permute.xlu1 %5440 }
0x12a0   :  { %9302 = vmatpush3.xpose.msk.msra.mxu0 %vm826_vm9, %v5534_v34  ;;  %9296 = vmatprep.subr.msk.mxu1 %vm826_vm9, %v5441_v40 }
0x12a1   :  { %v5439_v42 = vpop.permute.xlu0 %5438 }
0x12a3   :  { %9297 = vmatpush3.xpose.msk.msra.mxu1 %vm826_vm9, %v5441_v40  ;;  %v5532_v43 = vpop.permute.xlu1 %5531 }
0x12a4   :  { %9303 = vmatprep.subr.msk.mxu0 %vm826_vm9, %v5532_v43 }
0x12a5   :  { %v5528_v45 = vpop.permute.xlu0 %5527  ;;  %9304 = vmatpush3.xpose.msk.msra.mxu0 %vm826_vm9, %v5532_v43 }
0x12a6   :  { %9299 = vmatmul.mubr.msk.f32.vlgmr.msra.gmra.mxu1 %vm826_vm9, %v5439_v42  ;;  %9305 = vmatprep.mubr.msk.f32.mxu0 %vm826_vm9, %v5528_v45 }
0x12a7   :  { %v5530_v46 = vpop.permute.xlu1 %5529 }
0x12a8   :  { %9306 = vmatmul.mubr.msk.f32.vlgmr.msra.gmra.mxu0 %vm826_vm9, %v5530_v46 }
0x1356   :  { %v9286_v49 = vpop.f32.mrf.mxu1 }
0x1357   :  { %v5619_v59 = vmul.f32 0.35355338, %v9286_v49 }
0x1358   :  { %v5336_v5 = vpop.f32.mrf.mxu1 }
0x1359   :  { %v5618_v39 = vmul.f32 0.35355338, %v5336_v5  ;;  %v5630_v33 = vsel %vm5626_vm10, %v5619_v59, -inf }
0x135a   :  { %5631 = vmax.xlane.f32.xlu1 %v5630_v33 }
0x135b   :  { %v5627_v50 = vsel %vm5626_vm10, %v5618_v39, -inf }
0x135c   :  { %5628 = vmax.xlane.f32.xlu0 %v5627_v50 }
0x135e   :  { %v9293_v63 = vpop.f32.mrf.mxu1 }
0x135f   :  { %v5621_v53 = vmul.f32 0.35355338, %v9293_v63 }
0x1360   :  { %v5427_v2 = vpop.f32.mrf.mxu1 }
0x1361   :  { %v5620_v9 = vmul.f32 0.35355338, %v5427_v2  ;;  %v5636_v57 = vsel %vm5626_vm10, %v5621_v53, -inf }
0x1362   :  { %5637 = vmax.xlane.f32.xlu0 %v5636_v57 }
0x1363   :  { %v5633_v36 = vsel %vm5626_vm10, %v5620_v9, -inf }
0x1366   :  { %5634 = vmax.xlane.f32.xlu0 %v5633_v36  ;;  %v9300_v19 = vpop.f32.mrf.mxu1 }
0x1367   :  { %v5623_v6 = vmul.f32 0.35355338, %v9300_v19 }
0x1368   :  { %v5518_v60 = vpop.f32.mrf.mxu1  ;;  %v9307_v7 = vpop.f32.mrf.mxu0 }
0x1369   :  { %v5622_v20 = vmul.f32 0.35355338, %v5518_v60  ;;  %v5625_v30 = vmul.f32 0.35355338, %v9307_v7  ;;  %v5642_v10 = vsel %vm5626_vm10, %v5623_v6, -inf }
0x136a   :  { %5643 = vmax.xlane.f32.xlu1 %v5642_v10  ;;  %v5609_v13 = vpop.f32.mrf.mxu0 }
0x136b   :  { %v5624_v16 = vmul.f32 0.35355338, %v5609_v13  ;;  %v5639_v18 = vsel %vm5626_vm10, %v5622_v20, -inf  ;;  %v5648_v11 = vsel %vm5626_vm10, %v5625_v30, -inf }
0x136c   :  { %5640 = vmax.xlane.f32.xlu0 %v5639_v18 }
0x136d   :  { %v5645_v21 = vsel %vm5626_vm10, %v5624_v16, -inf }
0x136e   :  { %5649 = vmax.xlane.f32.xlu1 %v5648_v11 }
0x1370   :  { %5646 = vmax.xlane.f32.xlu0 %v5645_v21  ;;  %v5226_v21 = vadd.f32 %v11209_v54, %v11281_v22 }
0x137f   :  { %5717 = vrot.lane.b32.xlu1 %v11296_v23, %s10130_s28 }
0x1383   :  { %5895 = vrot.lane.b32.xlu1 %v11301_v24, %s10133_s6 }
0x1386   :  { %5719 = vrot.lane.b32.xlu0 %v11301_v24, %s10130_s28 }
0x1387   :  { %5893 = vrot.lane.b32.xlu1 %v11296_v23, %s10133_s6 }
0x138a   :  { %6065 = vrot.lane.b32.xlu0 %v11301_v24, %s10131_s16 }
0x138b   :  { %6063 = vrot.lane.b32.xlu1 %v11296_v23, %s10131_s16 }
0x13e3   :  { %v5632_v25 = vpop.xlane.xlu1 %5631 }
0x13e4   :  { %v5652_v51 = vsub.f32 %v5619_v59, %v5632_v25  ;;  %v5231_v25 = vadd.f32 %v11279_v17, %v11209_v54  ;;  %v11369_v17 = vadd.f32 %v11235_v58, %v11209_v54 }
0x13e5   :  { %v5629_v12 = vpop.xlane.xlu0 %5628 }
0x13e6   :  { %v5661_v15 = vmul.f32 1.442695, %v5652_v51  ;;  %v5651_v26 = vsub.f32 %v5618_v39, %v5629_v12  ;;  %v11357_v51 = vadd.f32 %v11209_v54, %v11237_v52 }
0x13e8   :  { %9642 = vpow2.f32 %v5661_v15  ;;  %v5659_v55 = vmul.f32 1.442695, %v5651_v26 }
0x13ea   :  { %9644 = vpow2.f32 %v5659_v55 }
0x13eb   :  { %v5638_v35 = vpop.xlane.xlu0 %5637 }
0x13ec   :  { %v5654_v28 = vsub.f32 %v5621_v53, %v5638_v35 }
0x13ee   :  { %v5665_v45 = vmul.f32 1.442695, %v5654_v28 }
0x13ef   :  { %v5635_v38 = vpop.xlane.xlu0 %5634 }
0x13f0   :  { %v5653_v40 = vsub.f32 %v5620_v9, %v5635_v38 }
0x13f2   :  { %v5663_v33 = vmul.f32 1.442695, %v5653_v40 }
0x13f3   :  { %v5644_v56 = vpop.xlane.xlu1 %5643 }
0x13f4   :  { %v5656_v49 = vsub.f32 %v5623_v6, %v5644_v56 }
0x13f5   :  { %v11313_v27 = vpop.eup %9642  ;;  %v5641_v29 = vpop.xlane.xlu0 %5640 }
0x13f6   :  { %v5678_v32 = vsel %vm5626_vm10, %v11313_v27, 0.0  ;;  %v5655_v48 = vsub.f32 %v5622_v20, %v5641_v29  ;;  %v5669_v63 = vmul.f32 1.442695, %v5656_v49 }
0x13f7   :  { %v11317_v1 = vpop.eup %9644  ;;  %5679 = vadd.xlane.f32.xlu1 %v5678_v32  ;;  %v5650_v34 = vpop.xlane.xlu1 %5649 }
0x13f8   :  { %v5658_v42 = vsub.f32 %v5625_v30, %v5650_v34  ;;  %v5675_v43 = vsel %vm5626_vm10, %v11317_v1, 0.0  ;;  %v5667_v2 = vmul.f32 1.442695, %v5655_v48 }
0x13f9   :  { %5676 = vadd.xlane.f32.xlu0 %v5675_v43  ;;  %v5647_v46 = vpop.xlane.xlu0 %5646 }
0x13fa   :  { %v5673_v59 = vmul.f32 1.442695, %v5658_v42  ;;  %v5657_v5 = vsub.f32 %v5624_v16, %v5647_v46 }
0x13fb   :  { %v5718_v39 = vpop.permute.xlu1 %5717 }
0x13fc   :  { %9646 = vpow2.f32 %v5673_v59  ;;  %v5671_v50 = vmul.f32 1.442695, %v5657_v5 }
0x13fd   :  { %9648 = vpow2.f32 %v5665_v45  ;;  %v5720_v62 = vpop.permute.xlu0 %5719 }
0x13fe   :  { %9650 = vpow2.f32 %v5671_v50  ;;  %9308 = vmatprep.subr.mxu1 %v5720_v62 }
0x13ff   :  { %9309 = vmatpush3.msra.mxu1 %v5720_v62  ;;  %v5896_v53 = vpop.permute.xlu1 %5895  ;;  %9652 = vpow2.f32 %v5663_v33 }
0x1400   :  { %9310 = vmatprep.subr.mxu1 %v5718_v39  ;;  %9320 = vmatprep.subr.mxu0 %v5896_v53  ;;  %9654 = vpow2.f32 %v5669_v63 }
0x1401   :  { %9311 = vmatpush3.msra.mxu1 %v5718_v39  ;;  %9321 = vmatpush3.msra.mxu0 %v5896_v53  ;;  %9656 = vpow2.f32 %v5667_v2  ;;  %v11321_v57 = vpop.permute.xlu0 %6065 }
0x1403   :  { %v5894_v9 = vpop.permute.xlu1 %5893 }
0x1404   :  { %9322 = vmatprep.subr.mxu0 %v5894_v9 }
0x1405   :  { %9323 = vmatpush3.msra.mxu0 %v5894_v9 }
0x1406   :  { %9332 = vmatprep.subr.mxu0 %v11321_v57 }
0x1407   :  { %v6064_v52 = vpop.permute.xlu1 %6063 }
0x1409   :  { %v11324_v36 = vpop.eup %9646 }
0x140a   :  { %v11326_v19 = vpop.eup %9648  ;;  %v5696_v6 = vsel %vm5626_vm10, %v11324_v36, 0.0 }
0x140b   :  { %v11330_v60 = vpop.eup %9650  ;;  %5697 = vadd.xlane.f32.xlu1 %v5696_v6  ;;  %v5684_v30 = vsel %vm5626_vm10, %v11326_v19, 0.0  ;;  %v302_v6 = vld [vmem:[#allocation16] sm:$0xff] }
0x140c   :  { %v5693_v7 = vsel %vm5626_vm10, %v11330_v60, 0.0  ;;  %v9653_v20 = vpop.eup %9652  ;;  %9315 = vmatprep.subr.mxu1 %v302_v6 }
0x140d   :  { %5694 = vadd.xlane.f32.xlu0 %v5693_v7  ;;  %v11336_v10 = vpop.eup %9654  ;;  %v5681_v13 = vsel %vm5626_vm10, %v9653_v20, 0.0 }
0x140e   :  { %v11339_v16 = vpop.eup %9656  ;;  %v5690_v18 = vsel %vm5626_vm10, %v11336_v10, 0.0 }
0x140f   :  { %5685 = vadd.xlane.f32.xlu1 %v5684_v30  ;;  %v5687_v11 = vsel %vm5626_vm10, %v11339_v16, 0.0  ;;  %v11419_v30 = vld [vmem:[#allocation16 + $0x10] sm:$0xff] }
0x1411   :  { %5682 = vadd.xlane.f32.xlu0 %v5681_v13 }
0x1413   :  { %5691 = vadd.xlane.f32.xlu1 %v5690_v18 }
0x1415   :  { %5688 = vadd.xlane.f32.xlu0 %v5687_v11 }
0x1424   :  { %6233 = vrot.lane.b32.xlu1 %v11296_v23, %s10132_s2 }
0x1428   :  { %6405 = vrot.lane.b32.xlu1 %v5226_v21, %s10124_s20 }
0x142b   :  { %6235 = vrot.lane.b32.xlu0 %v11301_v24, %s10132_s2 }
0x142c   :  { %6498 = vrot.lane.b32.xlu1 %v5226_v21, %s10123_s3 }
0x142f   :  { %6407 = vrot.lane.b32.xlu0 %v5231_v25, %s10124_s20 }
0x1430   :  { %6494 = vrot.lane.b32.xlu1 %v11357_v51, %s10125_s1 }
0x1433   :  { %6500 = vrot.lane.b32.xlu0 %v5231_v25, %s10123_s3 }
0x1434   :  { %6589 = vrot.lane.b32.xlu1 %v5226_v21, %s10127_s30 }
0x1437   :  { %6591 = vrot.lane.b32.xlu0 %v5231_v25, %s10127_s30 }
0x1438   :  { %6585 = vrot.lane.b32.xlu1 %v11357_v51, %s10126_s13 }
0x143b   :  { %6496 = vrot.lane.b32.xlu0 %v11369_v17, %s10125_s1 }
0x143c   :  { %6680 = vrot.lane.b32.xlu1 %v5226_v21, %s10129_s4 }
0x143f   :  { %6682 = vrot.lane.b32.xlu0 %v5231_v25, %s10129_s4 }
0x1440   :  { %6678 = vrot.lane.b32.xlu1 %v11369_v17, %s10128_s26 }
0x1443   :  { %6587 = vrot.lane.b32.xlu0 %v11369_v17, %s10126_s13 }
0x1447   :  { %6676 = vrot.lane.b32.xlu0 %v11357_v51, %s10128_s26 }
0x1480   :  { %v5680_v22 = vpop.xlane.xlu1 %5679 }
0x1481   :  { %9658 = vrcp.f32 %v5680_v22 }
0x1482   :  { %v5677_v58 = vpop.xlane.xlu0 %5676 }
0x1483   :  { %9660 = vrcp.f32 %v5677_v58 }
0x148e   :  { %v9659_v23 = vpop.eup %9658 }
0x148f   :  { %v5702_v15 = vmul.f32 %v9659_v23, %v11313_v27 }
0x1490   :  { %v9661_v24 = vpop.eup %9660 }
0x1491   :  { %v5700_v12 = vmul.f32 %v9661_v24, %v11317_v1 }
0x1493   :  { %9312 = vmatprep.mubr.msk.f32.mxu1 %vm5626_vm10, %v5700_v12 }
0x1494   :  { %9313 = vmatmul.mubr.msk.f32.vlgmr.msra.gmra.mxu1 %vm5626_vm10, %v5702_v15  ;;  %v5698_v26 = vpop.xlane.xlu1 %5697 }
0x1495   :  { %9316 = vmatpush3.msra.mxu1 %v302_v6 }
0x1496   :  { %v5695_v55 = vpop.xlane.xlu0 %5694 }
0x1498   :  { %v5686_v35 = vpop.xlane.xlu1 %5685 }
0x1499   :  { %9662 = vrcp.f32 %v5686_v35 }
0x149a   :  { %v5683_v38 = vpop.xlane.xlu0 %5682 }
0x149b   :  { %9664 = vrcp.f32 %v5683_v38 }
0x149c   :  { %v5692_v56 = vpop.xlane.xlu1 %5691  ;;  %9666 = vrcp.f32 %v5695_v55 }
0x149d   :  { %9668 = vrcp.f32 %v5692_v56  ;;  %v11455_v56 = vld [vmem:[#allocation17] ss:$0 sm:$0xff] }
0x149e   :  { %v5689_v28 = vpop.xlane.xlu0 %5688 }
0x149f   :  { %9670 = vrcp.f32 %v5689_v28 }
0x14a0   :  { %v6234_v29 = vpop.permute.xlu1 %6233  ;;  %9672 = vrcp.f32 %v5698_v26 }
0x14a2   :  { %v6236_v32 = vpop.permute.xlu0 %6235 }
0x14a4   :  { %v6406_v1 = vpop.permute.xlu1 %6405 }
0x14a6   :  { %v6408_v27 = vpop.permute.xlu0 %6407  ;;  %v9663_v34 = vpop.eup %9662 }
0x14a7   :  { %v5706_v46 = vmul.f32 %v9663_v34, %v11326_v19 }
0x14a8   :  { %v9665_v40 = vpop.eup %9664  ;;  %v11385_v45 = vpop.permute.xlu1 %6498 }
0x14a9   :  { %v5704_v42 = vmul.f32 %v9665_v40, %v9653_v20  ;;  %v9667_v43 = vpop.eup %9666 }
0x14aa   :  { %v9669_v49 = vpop.eup %9668  ;;  %v11388_v59 = vpop.permute.xlu0 %6500  ;;  %v5712_v50 = vmul.f32 %v9667_v43, %v11330_v60  ;;  %v11415_v60 = vld [vmem:[#allocation16 + $0x8] sm:$0xff] }
0x14ab   :  { %9324 = vmatprep.mubr.msk.f32.mxu0 %vm5626_vm10, %v5704_v42  ;;  %v5710_v33 = vmul.f32 %v9669_v49, %v11336_v10  ;;  %9327 = vmatprep.subr.mxu1 %v11415_v60 }
0x14ac   :  { %v9671_v5 = vpop.eup %9670  ;;  %9325 = vmatmul.mubr.msk.f32.vlgmr.msra.gmra.mxu0 %vm5626_vm10, %v5706_v46  ;;  %v6495_v62 = vpop.permute.xlu1 %6494 }
0x14ad   :  { %9333 = vmatpush3.msra.mxu0 %v11321_v57  ;;  %v5708_v39 = vmul.f32 %v9671_v5, %v11339_v16  ;;  %v9673_v48 = vpop.eup %9672  ;;  %v11425_v16 = vld [vmem:[#allocation16 + $0x18] sm:$0xff] }
0x14ae   :  { %9334 = vmatprep.subr.mxu0 %v6064_v52  ;;  %v6592_v63 = vpop.permute.xlu0 %6591  ;;  %v5714_v53 = vmul.f32 %v9673_v48, %v11324_v36 }
0x14af   :  { %9335 = vmatpush3.msra.mxu0 %v6064_v52  ;;  %9336 = vmatprep.mubr.msk.f32.mxu0 %vm5626_vm10, %v5708_v39 }
0x14b0   :  { %9344 = vmatprep.subr.mxu0 %v6236_v32  ;;  %9337 = vmatmul.mubr.msk.f32.vlgmr.msra.gmra.mxu0 %vm5626_vm10, %v5710_v33  ;;  %v6590_v2 = vpop.permute.xlu1 %6589 }
0x14b1   :  { %9345 = vmatpush3.msra.mxu0 %v6236_v32  ;;  %9348 = vmatprep.mubr.msk.f32.mxu0 %vm5626_vm10, %v5712_v50 }
0x14b2   :  { %9346 = vmatprep.subr.mxu0 %v6234_v29  ;;  %v6497_v9 = vpop.permute.xlu0 %6496 }
0x14b3   :  { %9347 = vmatpush3.msra.mxu0 %v6234_v29 }
0x14b4   :  { %9356 = vmatprep.subr.msk.mxu0 %vm826_vm9, %v6408_v27  ;;  %9349 = vmatmul.mubr.msk.f32.vlgmr.msra.gmra.mxu0 %vm5626_vm10, %v5714_v53  ;;  %v6586_v57 = vpop.permute.xlu1 %6585 }
0x14b5   :  { %9357 = vmatpush3.xpose.msk.msra.mxu0 %vm826_vm9, %v6408_v27  ;;  %9360 = vmatprep.mubr.msk.f32.mxu0 %vm826_vm9, %v11357_v51 }
0x14b6   :  { %9358 = vmatprep.subr.msk.mxu0 %vm826_vm9, %v6406_v1  ;;  %v6683_v36 = vpop.permute.xlu0 %6682 }
0x14b8   :  { %v6681_v24 = vpop.permute.xlu1 %6680 }
0x14b9   :  { %9359 = vmatpush3.xpose.msk.msra.mxu0 %vm826_vm9, %v6406_v1 }
0x14ba   :  { %9370 = vmatprep.subr.msk.mxu0 %vm826_vm9, %v6592_v63  ;;  %v6588_v19 = vpop.permute.xlu0 %6587 }
0x14bc   :  { %9361 = vmatmul.mubr.msk.f32.vlgmr.msra.gmra.mxu0 %vm826_vm9, %v11369_v17  ;;  %v6679_v55 = vpop.permute.xlu1 %6678 }
0x14bd   :  { %9371 = vmatpush3.xpose.msk.msra.mxu0 %vm826_vm9, %v6592_v63  ;;  %9374 = vmatprep.mubr.msk.f32.mxu0 %vm826_vm9, %v6586_v57 }
0x14be   :  { %9372 = vmatprep.subr.msk.mxu0 %vm826_vm9, %v6590_v2  ;;  %v6677_v23 = vpop.permute.xlu0 %6676 }
0x14c1   :  { %9373 = vmatpush3.xpose.msk.msra.mxu0 %vm826_vm9, %v6590_v2 }
0x14c4   :  { %9375 = vmatmul.mubr.msk.f32.vlgmr.msra.gmra.mxu0 %vm826_vm9, %v6588_v19 }
0x1554   :  { %v9314_v7 = vpop.f32.mrf.mxu1 }
0x1556   :  { %v5795_v20 = vpop.f32.mrf.mxu1 }
0x1557   :  { %9317 = vmatprep.mubr.msk.f32.mxu1 %vm826_vm9, %v5795_v20 }
0x1558   :  { %9318 = vmatmul.mubr.msk.f32.vlgmr.msra.gmra.mxu1 %vm826_vm9, %v9314_v7 }
0x1559   :  { %9328 = vmatpush3.msra.mxu1 %v11415_v60 }
0x155a   :  { %9339 = vmatprep.subr.mxu1 %v11419_v30 }
0x156c   :  { %v9326_v10 = vpop.f32.mrf.mxu0 }
0x156e   :  { %v5971_v13 = vpop.f32.mrf.mxu0 }
0x156f   :  { %9329 = vmatprep.mubr.msk.f32.mxu1 %vm826_vm9, %v5971_v13 }
0x1570   :  { %9330 = vmatmul.mubr.msk.f32.vlgmr.msra.gmra.mxu1 %vm826_vm9, %v9326_v10  ;;  %v9338_v18 = vpop.f32.mrf.mxu0 }
0x1571   :  { %9340 = vmatpush3.msra.mxu1 %v11419_v30 }
0x1572   :  { %v6141_v11 = vpop.f32.mrf.mxu0  ;;  %9351 = vmatprep.subr.mxu1 %v11425_v16 }
0x1573   :  { %9341 = vmatprep.mubr.msk.f32.mxu1 %vm826_vm9, %v6141_v11 }
0x1574   :  { %9342 = vmatmul.mubr.msk.f32.vlgmr.msra.gmra.mxu1 %vm826_vm9, %v9338_v18  ;;  %v9350_v21 = vpop.f32.mrf.mxu0 }
0x1575   :  { %9352 = vmatpush3.msra.mxu1 %v11425_v16 }
0x1576   :  { %9363 = vmatprep.subr.msk.mxu1 %vm826_vm9, %v11388_v59  ;;  %v6311_v25 = vpop.f32.mrf.mxu0 }
0x1577   :  { %9353 = vmatprep.mubr.msk.f32.mxu1 %vm826_vm9, %v6311_v25 }
0x1578   :  { %9354 = vmatmul.mubr.msk.f32.vlgmr.msra.gmra.mxu1 %vm826_vm9, %v9350_v21 }
0x1579   :  { %9364 = vmatpush3.xpose.msk.msra.mxu1 %vm826_vm9, %v11388_v59  ;;  %9367 = vmatprep.mubr.msk.f32.mxu1 %vm826_vm9, %v6495_v62 }
0x157a   :  { %9365 = vmatprep.subr.msk.mxu1 %vm826_vm9, %v11385_v45 }
0x157c   :  { %v9362_v51 = vpop.f32.mrf.mxu0 }
0x157d   :  { %v6768_v17 = vmul.f32 0.35355338, %v9362_v51  ;;  %9366 = vmatpush3.xpose.msk.msra.mxu1 %vm826_vm9, %v11385_v45 }
0x157e   :  { %v6485_v52 = vpop.f32.mrf.mxu0  ;;  %9377 = vmatprep.subr.msk.mxu1 %vm826_vm9, %v6683_v36 }
0x157f   :  { %v6767_v22 = vmul.f32 0.35355338, %v6485_v52  ;;  %v6778_v58 = vsel %vm5626_vm10, %v6768_v17, -inf }
0x1580   :  { %9368 = vmatmul.mubr.msk.f32.vlgmr.msra.gmra.mxu1 %vm826_vm9, %v6497_v9  ;;  %6779 = vmax.xlane.f32.xlu1 %v6778_v58 }
0x1581   :  { %9378 = vmatpush3.xpose.msk.msra.mxu1 %vm826_vm9, %v6683_v36  ;;  %9381 = vmatprep.mubr.msk.f32.mxu1 %vm826_vm9, %v6677_v23  ;;  %v6775_v12 = vsel %vm5626_vm10, %v6767_v22, -inf }
0x1582   :  { %9379 = vmatprep.subr.msk.mxu1 %vm826_vm9, %v6681_v24  ;;  %6776 = vmax.xlane.f32.xlu0 %v6775_v12 }
0x1584   :  { %v9376_v15 = vpop.f32.mrf.mxu0 }
0x1585   :  { %v6772_v26 = vmul.f32 0.35355338, %v9376_v15  ;;  %9380 = vmatpush3.xpose.msk.msra.mxu1 %vm826_vm9, %v6681_v24 }
0x1586   :  { %9391 = vmatprep.subr.mxu1 %v302_v6  ;;  %v6667_v10 = vpop.f32.mrf.mxu0 }
0x1587   :  { %v6790_v35 = vsel %vm5626_vm10, %v6772_v26, -inf  ;;  %v6771_v13 = vmul.f32 0.35355338, %v6667_v10 }
0x1588   :  { %9382 = vmatmul.mubr.msk.f32.vlgmr.msra.gmra.mxu1 %vm826_vm9, %v6679_v55  ;;  %6791 = vmax.xlane.f32.xlu1 %v6790_v35  ;;  %v5246_v55 = vadd.f32 %v11209_v54, %v11289_v0  ;;  %v5251_v35 = vadd.f32 %v11286_v41, %v11209_v54 }
0x1589   :  { %9392 = vmatpush3.msra.mxu1 %v302_v6  ;;  %v6787_v52 = vsel %vm5626_vm10, %v6771_v13, -inf }
0x158a   :  { %9403 = vmatprep.subr.mxu1 %v11415_v60 }
0x1609   :  { %v6780_v42 = vpop.xlane.xlu1 %6779 }
0x160a   :  { %v6800_v49 = vsub.f32 %v6768_v17, %v6780_v42 }
0x160b   :  { %v6777_v59 = vpop.xlane.xlu0 %6776 }
0x160c   :  { %v6799_v50 = vsub.f32 %v6767_v22, %v6777_v59  ;;  %v6809_v63 = vmul.f32 1.442695, %v6800_v49 }
0x160e   :  { %v6807_v9 = vmul.f32 1.442695, %v6799_v50  ;;  %9674 = vpow2.f32 %v6809_v63 }
0x1610   :  { %9676 = vpow2.f32 %v6807_v9 }
0x1611   :  { %v6792_v39 = vpop.xlane.xlu1 %6791 }
0x1612   :  { %v6804_v53 = vsub.f32 %v6772_v26, %v6792_v39 }
0x1614   :  { %v6817_v57 = vmul.f32 1.442695, %v6804_v53 }
0x1616   :  { %9678 = vpow2.f32 %v6817_v57 }
0x1618   :  { %v9319_v38 = vpop.f32.mrf.mxu1 }
0x1619   :  { %v5892_v29 = vadd.f32 %v9319_v38, %v11455_v56 }
0x161a   :  { %v5876_v28 = vpop.f32.mrf.mxu1 }
0x161b   :  { %v5891_v1 = vadd.f32 %v11455_v56, %v5876_v28  ;;  %v11470_v22 = vpop.eup %9674 }
0x161c   :  { %v6826_v23 = vsel %vm5626_vm10, %v11470_v22, 0.0 }
0x161d   :  { %v9677_v58 = vpop.eup %9676 }
0x161e   :  { %v6823_v26 = vsel %vm5626_vm10, %v9677_v58, 0.0 }
0x1623   :  { %v11475_v12 = vpop.eup %9678 }
0x1624   :  { %v6838_v15 = vsel %vm5626_vm10, %v11475_v12, 0.0 }
0x1630   :  { %v9331_v32 = vpop.f32.mrf.mxu1 }
0x1631   :  { %v6062_v27 = vadd.f32 %v9331_v32, %v5892_v29 }
0x1632   :  { %v6052_v34 = vpop.f32.mrf.mxu1 }
0x1633   :  { %v6061_v40 = vadd.f32 %v6052_v34, %v5891_v1 }
0x1634   :  { %v9343_v43 = vpop.f32.mrf.mxu1 }
0x1635   :  { %v6232_v45 = vadd.f32 %v9343_v43, %v6062_v27 }
0x1636   :  { %v6222_v46 = vpop.f32.mrf.mxu1 }
0x1637   :  { %v6231_v5 = vadd.f32 %v6222_v46, %v6061_v40 }
0x1638   :  { %v9355_v33 = vpop.f32.mrf.mxu1 }
0x1639   :  { %v11459_v48 = vadd.f32 %v9355_v33, %v6232_v45 }
0x163a   :  { %v6392_v62 = vpop.f32.mrf.mxu1 }
0x163b   :  { %v11461_v2 = vadd.f32 %v6392_v62, %v6231_v5  ;;  %v11507_v9 = vadd.f32 %v11459_v48, %v10708_v31 }
0x163d   :  { %v7554_v57 = vsel %vm624_vm7, %v11507_v9, 0.0  ;;  %v11519_v31 = vadd.f32 %v11461_v2, %v10614_v4 }
0x163f   :  { %v7551_v48 = vsel %vm624_vm7, %v11519_v31, 0.0 }
0x1640   :  { %v9369_v36 = vpop.f32.mrf.mxu1 }
0x1641   :  { %v6770_v19 = vmul.f32 0.35355338, %v9369_v36 }
0x1642   :  { %v6576_v6 = vpop.f32.mrf.mxu1 }
0x1643   :  { %v11463_v7 = vmul.f32 0.35355338, %v6576_v6  ;;  %v6784_v20 = vsel %vm5626_vm10, %v6770_v19, -inf }
0x1644   :  { %6785 = vmax.xlane.f32.xlu0 %v6784_v20 }
0x1645   :  { %v6781_v18 = vsel %vm5626_vm10, %v11463_v7, -inf }
0x1648   :  { %v9383_v11 = vpop.f32.mrf.mxu1  ;;  %6782 = vmax.xlane.f32.xlu0 %v6781_v18 }
0x1649   :  { %v6774_v21 = vmul.f32 0.35355338, %v9383_v11 }
0x164a   :  { %v6758_v25 = vpop.f32.mrf.mxu1 }
0x164b   :  { %v6773_v51 = vmul.f32 0.35355338, %v6758_v25  ;;  %v6796_v17 = vsel %vm5626_vm10, %v6774_v21, -inf }
0x164c   :  { %6797 = vmax.xlane.f32.xlu1 %v6796_v17  ;;  %6788 = vmax.xlane.f32.xlu0 %v6787_v52 }
0x164d   :  { %v6793_v24 = vsel %vm5626_vm10, %v6773_v51, -inf }
0x1650   :  { %6827 = vadd.xlane.f32.xlu1 %v6826_v23  ;;  %6794 = vmax.xlane.f32.xlu0 %v6793_v24 }
0x1654   :  { %6839 = vadd.xlane.f32.xlu1 %v6838_v15  ;;  %6824 = vadd.xlane.f32.xlu0 %v6823_v26 }
0x1665   :  { %6865 = vrot.lane.b32.xlu1 %v5246_v55, %s10130_s28 }
0x1669   :  { %7037 = vrot.lane.b32.xlu1 %v5251_v35, %s10133_s6 }
0x166d   :  { %7035 = vrot.lane.b32.xlu1 %v5246_v55, %s10133_s6 }
0x1671   :  { %7205 = vrot.lane.b32.xlu1 %v5246_v55, %s10131_s16 }
0x16cd   :  { %v6786_v38 = vpop.xlane.xlu0 %6785 }
0x16ce   :  { %v6802_v28 = vsub.f32 %v6770_v19, %v6786_v38 }
0x16d0   :  { %v6813_v29 = vmul.f32 1.442695, %v6802_v28 }
0x16d1   :  { %v6783_v32 = vpop.xlane.xlu0 %6782 }
0x16d2   :  { %9680 = vpow2.f32 %v6813_v29  ;;  %v6801_v50 = vsub.f32 %v11463_v7, %v6783_v32 }
0x16d4   :  { %v6811_v62 = vmul.f32 1.442695, %v6801_v50 }
0x16d5   :  { %v6798_v1 = vpop.xlane.xlu1 %6797  ;;  %v6789_v27 = vpop.xlane.xlu0 %6788 }
0x16d6   :  { %v6806_v34 = vsub.f32 %v6774_v21, %v6798_v1  ;;  %v6803_v0 = vsub.f32 %v6771_v13, %v6789_v27 }
0x16d8   :  { %v6821_v40 = vmul.f32 1.442695, %v6806_v34  ;;  %v6815_v42 = vmul.f32 1.442695, %v6803_v0 }
0x16d9   :  { %v6795_v43 = vpop.xlane.xlu0 %6794  ;;  %v6828_v20 = vpop.xlane.xlu1 %6827 }
0x16da   :  { %9682 = vpow2.f32 %v6821_v40  ;;  %v6805_v63 = vsub.f32 %v6773_v51, %v6795_v43 }
0x16db   :  { %9684 = vpow2.f32 %v6815_v42 }
0x16dc   :  { %v6819_v53 = vmul.f32 1.442695, %v6805_v63 }
0x16dd   :  { %v6825_v54 = vpop.xlane.xlu0 %6824  ;;  %v6840_v10 = vpop.xlane.xlu1 %6839 }
0x16de   :  { %9686 = vrcp.f32 %v6825_v54 }
0x16df   :  { %v11488_v41 = vpop.eup %9680  ;;  %9688 = vpow2.f32 %v6811_v62 }
0x16e0   :  { %v6832_v45 = vsel %vm5626_vm10, %v11488_v41, 0.0  ;;  %9690 = vpow2.f32 %v6819_v53 }
0x16e1   :  { %6833 = vadd.xlane.f32.xlu1 %v6832_v45  ;;  %9692 = vrcp.f32 %v6828_v20  ;;  %v6866_v13 = vpop.permute.xlu1 %6865 }
0x16e5   :  { %v7038_v21 = vpop.permute.xlu1 %7037 }
0x16e7   :  { %v11492_v46 = vpop.eup %9682 }
0x16e8   :  { %v11494_v49 = vpop.eup %9684  ;;  %v6844_v59 = vsel %vm5626_vm10, %v11492_v46, 0.0 }
0x16e9   :  { %6845 = vadd.xlane.f32.xlu1 %v6844_v59  ;;  %v6835_v5 = vsel %vm5626_vm10, %v11494_v49, 0.0  ;;  %v7036_v4 = vpop.permute.xlu1 %7035 }
0x16ea   :  { %6836 = vadd.xlane.f32.xlu0 %v6835_v5 }
0x16eb   :  { %v9687_v39 = vpop.eup %9686 }
0x16ec   :  { %v6848_v33 = vmul.f32 %v9687_v39, %v9677_v58  ;;  %v9689_v36 = vpop.eup %9688 }
0x16ed   :  { %v6829_v19 = vsel %vm5626_vm10, %v9689_v36, 0.0  ;;  %v11512_v6 = vpop.eup %9690  ;;  %v7206_v17 = vpop.permute.xlu1 %7205 }
0x16ee   :  { %9388 = vmatprep.mubr.msk.f32.mxu0 %vm5626_vm10, %v6848_v33  ;;  %v6841_v7 = vsel %vm5626_vm10, %v11512_v6, 0.0  ;;  %v9693_v11 = vpop.eup %9692 }
0x16ef   :  { %v6850_v51 = vmul.f32 %v9693_v11, %v11470_v22 }
0x16fa   :  { %7375 = vrot.lane.b32.xlu1 %v5246_v55, %s10132_s2 }
0x1700   :  { %6867 = vrot.lane.b32.xlu0 %v5251_v35, %s10130_s28 }
0x1704   :  { %7207 = vrot.lane.b32.xlu0 %v5251_v35, %s10131_s16 }
0x171e   :  { %7555 = vadd.xlane.f32.xlu1 %v7554_v57 }
0x1723   :  { %6830 = vadd.xlane.f32.xlu0 %v6829_v19 }
0x1727   :  { %6842 = vadd.xlane.f32.xlu0 %v6841_v7 }
0x173d   :  { %7377 = vrot.lane.b32.xlu0 %v5251_v35, %s10132_s2 }
0x175c   :  { %7552 = vadd.xlane.f32.xlu0 %v7551_v48 }
0x176a   :  { %v6834_v52 = vpop.xlane.xlu1 %6833 }
0x176b   :  { %9694 = vrcp.f32 %v6834_v52 }
0x1772   :  { %v6846_v58 = vpop.xlane.xlu1 %6845 }
0x1773   :  { %v6837_v18 = vpop.xlane.xlu0 %6836 }
0x1774   :  { %9696 = vrcp.f32 %v6837_v18 }
0x1776   :  { %v7376_v23 = vpop.permute.xlu1 %7375 }
0x1777   :  { %v6868_v25 = vpop.permute.xlu0 %6867 }
0x1778   :  { %9384 = vmatprep.subr.mxu0 %v6868_v25  ;;  %v9695_v28 = vpop.eup %9694 }
0x1779   :  { %9385 = vmatpush3.msra.mxu0 %v6868_v25  ;;  %v6854_v27 = vmul.f32 %v9695_v28, %v11488_v41 }
0x177a   :  { %9386 = vmatprep.subr.mxu0 %v6866_v13 }
0x177b   :  { %9387 = vmatpush3.msra.mxu0 %v6866_v13  ;;  %v7208_v2 = vpop.permute.xlu0 %7207 }
0x177c   :  { %9389 = vmatmul.mubr.msk.f32.vlgmr.msra.gmra.mxu0 %vm5626_vm10, %v6850_v51  ;;  %9396 = vmatprep.subr.mxu0 %v7038_v21 }
0x177d   :  { %9397 = vmatpush3.msra.mxu0 %v7038_v21 }
0x177e   :  { %9398 = vmatprep.subr.mxu0 %v7036_v4 }
0x177f   :  { %9399 = vmatpush3.msra.mxu0 %v7036_v4 }
0x1780   :  { %9408 = vmatprep.subr.mxu0 %v7208_v2 }
0x1781   :  { %v9697_v29 = vpop.eup %9696 }
0x1782   :  { %v6856_v0 = vmul.f32 %v9697_v29, %v11494_v49 }
0x17a7   :  { %v7556_v24 = vpop.xlane.xlu1 %7555 }
0x17a8   :  { %v7564_v15 = vmul.f32 0.03125, %v7556_v24 }
0x17aa   :  { %v11526_v26 = vsub.f32 %v11507_v9, %v7564_v15 }
0x17ac   :  { %v6831_v22 = vpop.xlane.xlu0 %6830  ;;  %v7572_v55 = vmul.f32 %v11526_v26, %v11526_v26 }
0x17ad   :  { %9698 = vrcp.f32 %v6831_v22 }
0x17ae   :  { %v7578_v35 = vsel %vm624_vm7, %v7572_v55, 0.0  ;;  %9700 = vrcp.f32 %v6840_v10 }
0x17af   :  { %7579 = vadd.xlane.f32.xlu1 %v7578_v35 }
0x17b0   :  { %v6843_v38 = vpop.xlane.xlu0 %6842 }
0x17b1   :  { %9702 = vrcp.f32 %v6843_v38 }
0x17b2   :  { %9704 = vrcp.f32 %v6846_v58  ;;  %v7660_v58 = vld [vmem:[#allocation19 + $0x18] sm:$0xff] }
0x17b4   :  { %v7378_v54 = vpop.permute.xlu0 %7377 }
0x17ba   :  { %v9699_v32 = vpop.eup %9698 }
0x17bb   :  { %v6852_v1 = vmul.f32 %v9699_v32, %v9689_v36  ;;  %v9701_v34 = vpop.eup %9700 }
0x17bc   :  { %v6858_v42 = vmul.f32 %v9701_v34, %v11475_v12 }
0x17bd   :  { %9400 = vmatprep.mubr.msk.f32.mxu0 %vm5626_vm10, %v6852_v1  ;;  %v11576_v1 = vadd.f32 %v10533_v8, %v10339_v37 }
0x17be   :  { %v9703_v40 = vpop.eup %9702  ;;  %9401 = vmatmul.mubr.msk.f32.vlgmr.msra.gmra.mxu0 %vm5626_vm10, %v6854_v27 }
0x17bf   :  { %9409 = vmatpush3.msra.mxu0 %v7208_v2  ;;  %9412 = vmatprep.mubr.msk.f32.mxu0 %vm5626_vm10, %v6856_v0  ;;  %v9705_v43 = vpop.eup %9704  ;;  %v6860_v45 = vmul.f32 %v9703_v40, %v11512_v6  ;;  %v7619_v37 = vsel %vm624_vm7, %v11576_v1, 0.0 }
0x17c0   :  { %9410 = vmatprep.subr.mxu0 %v7206_v17  ;;  %v6862_v41 = vmul.f32 %v9705_v43, %v11492_v46  ;;  %v11586_v43 = vadd.f32 %v10948_v61, %v10348_v44  ;;  %v11595_v44 = vld [vmem:[#allocation5] sm:$0xff] }
0x17c1   :  { %9411 = vmatpush3.msra.mxu0 %v7206_v17 }
0x17c2   :  { %9420 = vmatprep.subr.mxu0 %v7378_v54  ;;  %9413 = vmatmul.mubr.msk.f32.vlgmr.msra.gmra.mxu0 %vm5626_vm10, %v6858_v42 }
0x17c3   :  { %9421 = vmatpush3.msra.mxu0 %v7378_v54  ;;  %9424 = vmatprep.mubr.msk.f32.mxu0 %vm5626_vm10, %v6860_v45  ;;  %v7622_v45 = vsel %vm624_vm7, %v11586_v43, 0.0 }
0x17c4   :  { %9422 = vmatprep.subr.mxu0 %v7376_v23 }
0x17c5   :  { %9423 = vmatpush3.msra.mxu0 %v7376_v23  ;;  %v7658_v23 = vld [vmem:[#allocation19 + $0x8] sm:$0xff] }
0x17c6   :  { %9425 = vmatmul.mubr.msk.f32.vlgmr.msra.gmra.mxu0 %vm5626_vm10, %v6862_v41  ;;  %9432 = vmatprep.subr.mxu0 %v7660_v58  ;;  %v7605_v41 = vsub.s32 6, %v10368_v3 }
0x17c7   :  { %9433 = vmatpush3.msra.mxu0 %v7660_v58 }
0x17c8   :  { %v7606_v61 = vrot.slane %v11595_v44, %v7605_v41  ;;  %v7982_v41 = vld [vmem:[%s11803_s22 + $0x30] sm:$0xff] }
0x17e5   :  { %v7553_v48 = vpop.xlane.xlu0 %7552 }
0x17e6   :  { %v7563_v18 = vmul.f32 0.03125, %v7553_v48 }
0x17e8   :  { %v7567_v51 = vsub.f32 %v11519_v31, %v7563_v18 }
0x17ea   :  { %v7571_v17 = vmul.f32 %v7567_v51, %v7567_v51 }
0x17ec   :  { %v7575_v52 = vsel %vm624_vm7, %v7571_v17, 0.0 }
0x1838   :  { %v7580_v24 = vpop.xlane.xlu1 %7579 }
0x1839   :  { %v7588_v15 = vmul.f32 0.03125, %v7580_v24 }
0x183b   :  { %v7592_v38 = vadd.f32 1e-05, %v7588_v15 }
0x183c   :  { %v9390_v49 = vpop.f32.mrf.mxu0 }
0x183d   :  { %9706 = vrsqrt.f32 %v7592_v38 }
0x183e   :  { %v6943_v59 = vpop.f32.mrf.mxu0 }
0x183f   :  { %9393 = vmatprep.mubr.msk.f32.mxu1 %vm826_vm9, %v6943_v59 }
0x1840   :  { %9394 = vmatmul.mubr.msk.f32.vlgmr.msra.gmra.mxu1 %vm826_vm9, %v9390_v49 }
0x1841   :  { %9404 = vmatpush3.msra.mxu1 %v11415_v60 }
0x1842   :  { %9415 = vmatprep.subr.mxu1 %v11419_v30 }
0x184a   :  { %v9707_v49 = vpop.eup %9706 }
0x184b   :  { %v7600_v59 = vmul.f32 %v9707_v49, %v11526_v26  ;;  %v7776_v26 = vld [vmem:[%s11799_s18 + $0x38] sm:$0xff] }
0x187e   :  { %v9402_v12 = vpop.f32.mrf.mxu0 }
0x1880   :  { %v7113_v5 = vpop.f32.mrf.mxu0 }
0x1881   :  { %9405 = vmatprep.mubr.msk.f32.mxu1 %vm826_vm9, %v7113_v5 }
0x1882   :  { %9406 = vmatmul.mubr.msk.f32.vlgmr.msra.gmra.mxu1 %vm826_vm9, %v9402_v12  ;;  %v9414_v46 = vpop.f32.mrf.mxu0  ;;  %v7613_v12 = vsub.s32 7, %v10368_v3 }
0x1883   :  { %9416 = vmatpush3.msra.mxu1 %v11419_v30 }
0x1884   :  { %v7283_v39 = vpop.f32.mrf.mxu0  ;;  %9427 = vmatprep.subr.mxu1 %v11425_v16 }
0x1885   :  { %9417 = vmatprep.mubr.msk.f32.mxu1 %vm826_vm9, %v7283_v39  ;;  %v7614_v39 = vrot.slane %v11595_v44, %v7613_v12 }
0x1886   :  { %9418 = vmatmul.mubr.msk.f32.vlgmr.msra.gmra.mxu1 %vm826_vm9, %v9414_v46  ;;  %v9426_v33 = vpop.f32.mrf.mxu0 }
0x1887   :  { %9428 = vmatpush3.msra.mxu1 %v11425_v16 }
0x1888   :  { %v7453_v60 = vpop.f32.mrf.mxu0  ;;  %9446 = vmatprep.subr.mxu1 %v7776_v26 }
0x1889   :  { %9429 = vmatprep.mubr.msk.f32.mxu1 %vm826_vm9, %v7453_v60 }
0x188a   :  { %9430 = vmatmul.mubr.msk.f32.vlgmr.msra.gmra.mxu1 %vm826_vm9, %v9426_v33  ;;  %v7608_v33 = vmul.f32 %v7606_v61, %v7600_v59 }
0x188b   :  { %9447 = vmatpush3.msra.mxu1 %v7776_v26  ;;  %v7653_v26 = vsub.s32 5, %v10368_v3 }
0x1900   :  { %v9395_v50 = vpop.f32.mrf.mxu1 }
0x1901   :  { %v7034_v57 = vadd.f32 %v9395_v50, %v11455_v56 }
0x1902   :  { %v7024_v62 = vpop.f32.mrf.mxu1 }
0x1903   :  { %v7033_v36 = vadd.f32 %v11455_v56, %v7024_v62  ;;  %v7616_v62 = vadd.f32 %v7614_v39, %v7608_v33 }
0x1942   :  { %v9407_v63 = vpop.f32.mrf.mxu1 }
0x1943   :  { %v7204_v6 = vadd.f32 %v9407_v63, %v7034_v57  ;;  %v7775_v63 = vld [vmem:[%s11799_s18 + $0x30] sm:$0xff]  ;;  %v7772_v57 = vld [vmem:[%s11799_s18 + $0x18] sm:$0xff] }
0x1944   :  { %v7194_v53 = vpop.f32.mrf.mxu1  ;;  %9448 = vmatprep.subr.mxu1 %v7775_v63 }
0x1945   :  { %v7203_v7 = vadd.f32 %v7194_v53, %v7033_v36  ;;  %v7774_v53 = vld [vmem:[%s11799_s18 + $0x28] sm:$0xff]  ;;  %9449 = vmatpush3.msra.mxu1 %v7775_v63  ;;  %v7771_v36 = vld [vmem:[%s11799_s18 + $0x10] sm:$0xff] }
0x1946   :  { %v9419_v30 = vpop.f32.mrf.mxu1  ;;  %9450 = vmatprep.subr.mxu1 %v7774_v53 }
0x1947   :  { %v7374_v16 = vadd.f32 %v9419_v30, %v7204_v6  ;;  %v7773_v30 = vld [vmem:[%s11799_s18 + $0x20] sm:$0xff]  ;;  %9451 = vmatpush3.msra.mxu1 %v7774_v53 }
0x1948   :  { %v7364_v19 = vpop.f32.mrf.mxu1  ;;  %9452 = vmatprep.subr.mxu1 %v7773_v30  ;;  %v7769_v6 = vld [vmem:[%s11799_s18] sm:$0xff] }
0x1949   :  { %v7373_v10 = vadd.f32 %v7364_v19, %v7203_v7  ;;  %9453 = vmatpush3.msra.mxu1 %v7773_v30  ;;  %v7770_v19 = vld [vmem:[%s11799_s18 + $0x8] sm:$0xff] }
0x194a   :  { %v9431_v20 = vpop.f32.mrf.mxu1  ;;  %9454 = vmatprep.subr.mxu1 %v7772_v57 }
0x194b   :  { %v7544_v11 = vadd.f32 %v9431_v20, %v7374_v16  ;;  %9455 = vmatpush3.msra.mxu1 %v7772_v57 }
0x194c   :  { %v7534_v13 = vpop.f32.mrf.mxu1  ;;  %9456 = vmatprep.subr.mxu1 %v7771_v36 }
0x194d   :  { %v7543_v21 = vadd.f32 %v7534_v13, %v7373_v10  ;;  %v11562_v4 = vadd.f32 %v7544_v11, %v10658_v47  ;;  %v7657_v47 = vld [vmem:[#allocation19] sm:$0xff]  ;;  %9457 = vmatpush3.msra.mxu1 %v7771_v36 }
0x194e   :  { %9458 = vmatprep.subr.mxu1 %v7770_v19 }
0x194f   :  { %v11558_v25 = vadd.f32 %v7543_v21, %v10623_v14  ;;  %v7560_v2 = vsel %vm624_vm7, %v11562_v4, 0.0  ;;  %v7659_v14 = vld [vmem:[#allocation19 + $0x10] sm:$0xff]  ;;  %9459 = vmatpush3.msra.mxu1 %v7770_v19 }
0x1950   :  { %9434 = vmatprep.subr.mxu0 %v7659_v14  ;;  %9460 = vmatprep.subr.mxu1 %v7769_v6 }
0x1951   :  { %v7557_v56 = vsel %vm624_vm7, %v11558_v25, 0.0  ;;  %9435 = vmatpush3.msra.mxu0 %v7659_v14  ;;  %9461 = vmatpush3.msra.mxu1 %v7769_v6  ;;  %v7654_v6 = vrot.slane %v11595_v44, %v7653_v26 }
0x1952   :  { %7558 = vadd.xlane.f32.xlu0 %v7557_v56  ;;  %9436 = vmatprep.subr.mxu0 %v7658_v23 }
0x1953   :  { %9437 = vmatpush3.msra.mxu0 %v7658_v23 }
0x1954   :  { %9438 = vmatprep.subr.mxu0 %v7657_v47 }
0x1955   :  { %9439 = vmatpush3.msra.mxu0 %v7657_v47 }
0x1956   :  { %7561 = vadd.xlane.f32.xlu0 %v7560_v2 }
0x195a   :  { %7576 = vadd.xlane.f32.xlu0 %v7575_v52 }
0x19db   :  { %v7559_v22 = vpop.xlane.xlu0 %7558 }
0x19dc   :  { %v7565_v55 = vmul.f32 0.03125, %v7559_v22 }
0x19de   :  { %v11570_v35 = vsub.f32 %v11558_v25, %v7565_v55 }
0x19df   :  { %v7562_v28 = vpop.xlane.xlu0 %7561 }
0x19e0   :  { %v7566_v29 = vmul.f32 0.03125, %v7562_v28  ;;  %v7573_v32 = vmul.f32 %v11570_v35, %v11570_v35 }
0x19e2   :  { %v11579_v27 = vsub.f32 %v11562_v4, %v7566_v29  ;;  %v7581_v34 = vsel %vm624_vm7, %v7573_v32, 0.0  ;;  %v8694_v29 = vld [vmem:[#allocation20] ss:$0 sm:$0xff] }
0x19e3   :  { %7582 = vadd.xlane.f32.xlu0 %v7581_v34  ;;  %v7577_v0 = vpop.xlane.xlu0 %7576 }
0x19e4   :  { %v7587_v40 = vmul.f32 0.03125, %v7577_v0  ;;  %v7574_v42 = vmul.f32 %v11579_v27, %v11579_v27 }
0x19e6   :  { %v7591_v54 = vadd.f32 1e-05, %v7587_v40  ;;  %v7584_v8 = vsel %vm624_vm7, %v7574_v42, 0.0 }
0x19e7   :  { %7620 = vadd.xlane.f32.xlu0 %v7619_v37  ;;  %7585 = vadd.xlane.f32.xlu1 %v7584_v8  ;;  %v7883_v37 = vld [vmem:[#allocation23 + $0x8] sm:$0xff]  ;;  %v7882_v8 = vld [vmem:[#allocation23] sm:$0xff] }
0x19e8   :  { %9708 = vrsqrt.f32 %v7591_v54 }
0x19eb   :  { %7623 = vadd.xlane.f32.xlu1 %v7622_v45  ;;  %v7983_v45 = vld [vmem:[%s11803_s22 + $0x38] sm:$0xff] }
0x19ec   :  { %9479 = vmatprep.subr.mxu0 %v7983_v45 }
0x19f5   :  { %v9709_v5 = vpop.eup %9708 }
0x19f6   :  { %v7599_v46 = vmul.f32 %v9709_v5, %v7567_v51 }
0x19f8   :  { %v7607_v60 = vmul.f32 %v7606_v61, %v7599_v46 }
0x19fa   :  { %v7615_v50 = vadd.f32 %v7614_v39, %v7607_v60 }
0x19fc   :  { %9440 = vmatprep.mubr.msk.f32.mxu0 %vm624_vm7, %v7615_v50 }
0x19fd   :  { %9441 = vmatmul.mubr.msk.f32.vlgmr.msra.gmra.mxu0 %vm624_vm7, %v7616_v62 }
0x19fe   :  { %9480 = vmatpush3.msra.mxu0 %v7983_v45 }
0x19ff   :  { %9481 = vmatprep.subr.mxu0 %v7982_v41 }
0x1a00   :  { %9482 = vmatpush3.msra.mxu0 %v7982_v41 }
0x1a6c   :  { %v7583_v7 = vpop.xlane.xlu0 %7582 }
0x1a6d   :  { %v7589_v48 = vmul.f32 0.03125, %v7583_v7 }
0x1a6f   :  { %v7593_v20 = vadd.f32 1e-05, %v7589_v48 }
0x1a70   :  { %v7586_v16 = vpop.xlane.xlu1 %7585  ;;  %v7621_v10 = vpop.xlane.xlu0 %7620 }
0x1a71   :  { %9710 = vrsqrt.f32 %v7593_v20  ;;  %v7590_v13 = vmul.f32 0.03125, %v7586_v16  ;;  %v7625_v18 = vmul.f32 0.03125, %v7621_v10 }
0x1a73   :  { %v7594_v11 = vadd.f32 1e-05, %v7590_v13  ;;  %v7627_v21 = vsub.f32 %v11576_v1, %v7625_v18  ;;  %v10134_v13 = vmov 1966171168  }
0x1a74   :  { %v7624_v51 = vpop.xlane.xlu1 %7623  ;;  %v8081_v18 = vunpack.c.l.s4 %v10134_v13 }
0x1a75   :  { %9712 = vrsqrt.f32 %v7594_v11  ;;  %v7626_v56 = vmul.f32 0.03125, %v7624_v51  ;;  %v7629_v2 = vmul.f32 %v7627_v21, %v7627_v21 }
0x1a76   :  { %v8082_v11 = vunpack.c.0.s8 %v8081_v18 }
0x1a77   :  { %v7628_v17 = vsub.f32 %v11586_v43, %v7626_v56  ;;  %v7631_v52 = vsel %vm624_vm7, %v7629_v2, 0.0 }
0x1a78   :  { %7632 = vadd.xlane.f32.xlu0 %v7631_v52 }
0x1a79   :  { %v7630_v58 = vmul.f32 %v7628_v17, %v7628_v17 }
0x1a7b   :  { %v7634_v14 = vsel %vm624_vm7, %v7630_v58, 0.0 }
0x1a7c   :  { %7635 = vadd.xlane.f32.xlu1 %v7634_v14 }
0x1a7e   :  { %v9711_v23 = vpop.eup %9710 }
0x1a7f   :  { %v7601_v47 = vmul.f32 %v9711_v23, %v11570_v35  ;;  %v7885_v35 = vld [vmem:[#allocation23 + $0x18] sm:$0xff] }
0x1a80   :  { %9468 = vmatprep.subr.mxu1 %v7885_v35 }
0x1a81   :  { %v7609_v24 = vmul.f32 %v7606_v61, %v7601_v47 }
0x1a82   :  { %v9713_v15 = vpop.eup %9712 }
0x1a83   :  { %v7617_v22 = vadd.f32 %v7614_v39, %v7609_v24  ;;  %v7602_v55 = vmul.f32 %v9713_v15, %v11579_v27  ;;  %v7884_v27 = vld [vmem:[#allocation23 + $0x10] sm:$0xff] }
0x1a85   :  { %9443 = vmatprep.mubr.msk.f32.mxu0 %vm624_vm7, %v7617_v22  ;;  %v7610_v38 = vmul.f32 %v7606_v61, %v7602_v55 }
0x1a87   :  { %v7618_v28 = vadd.f32 %v7614_v39, %v7610_v38  ;;  %v7647_v39 = vsub.s32 4, %v10368_v3 }
0x1a89   :  { %9444 = vmatmul.mubr.msk.f32.gmra.mxu0 %vm624_vm7, %v7618_v28  ;;  %v7648_v62 = vrot.slane %v11595_v44, %v7647_v39  ;;  %v11653_v44 = vsub.s32 %v8082_v11, %v10368_v3  ;;  %v7976_v39 = vld [vmem:[%s11803_s22] sm:$0xff] }
0x1abd   :  { %v9442_v32 = vpop.f32.mrf.mxu0 }
0x1abe   :  { %v7752_v34 = vadd.f32 %v9442_v32, %v8694_v29 }
0x1abf   :  { %v7746_v0 = vpop.f32.mrf.mxu0 }
0x1ac0   :  { %v7747_v40 = vadd.f32 %v8694_v29, %v7746_v0  ;;  %v7766_v54 = vmax.f32 %v7752_v34, 0.0 }
0x1ac2   :  { %v7765_v42 = vmax.f32 %v7747_v40, 0.0 }
0x1ac4   :  { %9462 = vmatprep.mubr.msk.f32.mxu1 %vm7784_vm11, %v7765_v42 }
0x1ac5   :  { %9463 = vmatmul.mubr.msk.f32.vlgmr.msra.gmra.mxu1 %vm7784_vm11, %v7766_v54 }
0x1ac6   :  { %9469 = vmatpush3.msra.mxu1 %v7885_v35 }
0x1ac7   :  { %9470 = vmatprep.subr.mxu1 %v7884_v27 }
0x1ac8   :  { %9471 = vmatpush3.msra.mxu1 %v7884_v27 }
0x1ac9   :  { %9472 = vmatprep.subr.mxu1 %v7883_v37 }
0x1aca   :  { %9473 = vmatpush3.msra.mxu1 %v7883_v37  ;;  %v7981_v37 = vld [vmem:[%s11803_s22 + $0x28] sm:$0xff] }
0x1acb   :  { %9474 = vmatprep.subr.mxu1 %v7882_v8  ;;  %9483 = vmatprep.subr.mxu0 %v7981_v37 }
0x1acc   :  { %9475 = vmatpush3.msra.mxu1 %v7882_v8  ;;  %9484 = vmatpush3.msra.mxu0 %v7981_v37 }
0x1b01   :  { %v7633_v49 = vpop.xlane.xlu0 %7632 }
0x1b02   :  { %v7637_v59 = vmul.f32 0.03125, %v7633_v49 }
0x1b04   :  { %v7639_v5 = vadd.f32 1e-05, %v7637_v59  ;;  %v7980_v59 = vld [vmem:[%s11803_s22 + $0x20] sm:$0xff] }
0x1b05   :  { %v7636_v61 = vpop.xlane.xlu1 %7635  ;;  %9485 = vmatprep.subr.mxu0 %v7980_v59 }
0x1b06   :  { %v7638_v12 = vmul.f32 0.03125, %v7636_v61  ;;  %9714 = vrsqrt.f32 %v7639_v5  ;;  %9486 = vmatpush3.msra.mxu0 %v7980_v59  ;;  %v7978_v5 = vld [vmem:[%s11803_s22 + $0x10] sm:$0xff] }
0x1b08   :  { %v7640_v46 = vadd.f32 1e-05, %v7638_v12  ;;  %v7979_v12 = vld [vmem:[%s11803_s22 + $0x18] sm:$0xff] }
0x1b09   :  { %9487 = vmatprep.subr.mxu0 %v7979_v12 }
0x1b0a   :  { %9716 = vrsqrt.f32 %v7640_v46  ;;  %9488 = vmatpush3.msra.mxu0 %v7979_v12  ;;  %v7977_v46 = vld [vmem:[%s11803_s22 + $0x8] sm:$0xff]  ;;  %s10135_s22 = smov [#allocation29]  }
0x1b0b   :  { %9489 = vmatprep.subr.mxu0 %v7978_v5  ;;  %s8492_s26 = sshll.u32 %s10135_s22, 4  ;;  %s8493_s26 = int_to_ptr.vmem [resolvable:$true] %s8492_s26 }
0x1b0c   :  { %9490 = vmatpush3.msra.mxu0 %v7978_v5  ;;  %s10039_s4 = scalar_lea.vmem %s8493_s26, 512  ;;  %p10044_p11 = scmp.lt.s32.totalorder %s8493_s26, %s8493_s26 }
0x1b0d   :  { %9491 = vmatprep.subr.mxu0 %v7977_v46  ;;  %p10040_p10 = scmp.ne.s32.totalorder %s8493_s26, %s10039_s4  ;;  %p10045_p12 = scmp.lt.s32.totalorder %s10039_s4, %s10039_s4 }
0x1b0e   :  { %9492 = vmatpush3.msra.mxu0 %v7977_v46 }
0x1b0f   :  { %9493 = vmatprep.subr.mxu0 %v7976_v39  ;;  %p10046_p13 = por %p10045_p12, %p10044_p11 }
0x1b10   :  { %9494 = vmatpush3.msra.mxu0 %v7976_v39 }
0x1b11   :  { %p10047_p0 = pnand %p10046_p13, %p10040_p10 }
0x1b13   :  { %v9715_v33 = vpop.eup %9714 }
0x1b14   :  { %v7643_v50 = vmul.f32 %v9715_v33, %v7627_v21  ;;  %v11650_v21 = vld [vmem:[#allocation22] ss:$0 sm:$0xff] }
0x1b16   :  { %v7649_v19 = vmul.f32 %v7648_v62, %v7643_v50 }
0x1b17   :  { %v9717_v60 = vpop.eup %9716 }
0x1b18   :  { %v7644_v53 = vmul.f32 %v9717_v60, %v7628_v17  ;;  %v7655_v16 = vadd.f32 %v7654_v6, %v7649_v19 }
0x1b1a   :  { %v7650_v20 = vmul.f32 %v7648_v62, %v7644_v53 }
0x1b1c   :  { %v7656_v10 = vadd.f32 %v7654_v6, %v7650_v20 }
0x1b49   :  { %v9445_v63 = vpop.f32.mrf.mxu0 }
0x1b4a   :  { %v7762_v30 = vadd.f32 %v9445_v63, %v8694_v29  ;;  %v8704_v63 = vld [vmem:[#allocation25] ss:$0 sm:$0xff] }
0x1b4b   :  { %v7756_v57 = vpop.f32.mrf.mxu0 }
0x1b4c   :  { %v7757_v36 = vadd.f32 %v8694_v29, %v7756_v57  ;;  %v7768_v48 = vmax.f32 %v7762_v30, 0.0 }
0x1b4e   :  { %v7767_v7 = vmax.f32 %v7757_v36, 0.0 }
0x1b50   :  { %9465 = vmatprep.mubr.msk.f32.mxu1 %vm7784_vm11, %v7767_v7 }
0x1b51   :  { %9466 = vmatmul.mubr.msk.f32.gmra.mxu1 %vm7784_vm11, %v7768_v48 }
0x1b52   :  { %9476 = vmatprep.mubr.msk.f32.mxu1 %vm624_vm7, %v7655_v16 }
0x1b55   :  { %9477 = vmatmul.mubr.msk.f32.vlgmr.msra.gmra.mxu1 %vm624_vm7, %v7656_v10 }
0x1b85   :  { %v9464_v51 = vpop.f32.mrf.mxu1 }
0x1b86   :  { %v7869_v56 = vadd.f32 %v9464_v51, %v11650_v21 }
0x1b87   :  { %v7863_v2 = vpop.f32.mrf.mxu1 }
0x1b88   :  { %v8075_v17 = vadd.f32 %v7869_v56, %v11507_v9  ;;  %v7864_v52 = vadd.f32 %v11650_v21, %v7863_v2 }
0x1b8a   :  { %v8196_v58 = vcombine.high %v8075_v17, %v8075_v17  ;;  %v8203_v14 = vrot.slane %v8075_v17, %v11653_v44  ;;  %v8074_v23 = vadd.f32 %v7864_v52, %v11519_v31 }
0x1b8c   :  { %v8210_v47 = vrot.slane %v8196_v58, %v11653_v44  ;;  %v8211_v24 = vcombine.high %v8203_v14, %v8203_v14  ;;  %v8219_v15 = vrot.slane %v8203_v14, %v11653_v44  ;;  %v8147_v3 = vcombine.high %v8074_v23, %v8074_v23 }
0x1b8d   :  { %v8154_v22 = vrot.slane %v8074_v23, %v11653_v44 }
0x1b8e   :  { %v8212_v55 = vcombine.high %v8210_v47, %v8210_v47  ;;  %v8226_v38 = vrot.slane %v8210_v47, %v11653_v44  ;;  %v8233_v9 = vrot.slane %v8211_v24, %v11653_v44  ;;  %v8241_v28 = vcombine.high %v8219_v15, %v8219_v15  ;;  %8269 = vst.msk [vmem:[#allocation29 + $0x10] sm:$0x1] %vm8136_vm12, %v8219_v15 }
0x1b8f   :  { %v8161_v29 = vrot.slane %v8147_v3, %v11653_v44  ;;  %v8162_v31 = vcombine.high %v8154_v22, %v8154_v22  ;;  %v8170_v32 = vrot.slane %v8154_v22, %v11653_v44 }
0x1b90   :  { %v8240_v34 = vrot.slane %v8212_v55, %v11653_v44  ;;  %v8242_v0 = vcombine.high %v8226_v38, %v8226_v38  ;;  %v8243_v40 = vcombine.high %v8233_v9, %v8233_v9  ;;  %8270 = vst.msk [vmem:[#allocation29 + $0x12] sm:$0x1] %vm8136_vm12, %v8233_v9  ;;  %8271 = vst.msk [vmem:[#allocation29 + $0x14] sm:$0x1] %vm8136_vm12, %v8241_v28 }
0x1b91   :  { %8273 = vst.msk [vmem:[#allocation29 + $0x18] sm:$0x1] %vm8136_vm12, %v8226_v38  ;;  %v8163_v42 = vcombine.high %v8161_v29, %v8161_v29  ;;  %v8177_v54 = vrot.slane %v8161_v29, %v11653_v44  ;;  %v8184_v35 = vrot.slane %v8162_v31, %v11653_v44  ;;  %v8192_v27 = vcombine.high %v8170_v32, %v8170_v32 }
0x1b92   :  { %8261 = vst.msk [vmem:[#allocation29] sm:$0x1] %vm8136_vm12, %v8170_v32  ;;  %v8244_v8 = vcombine.high %v8240_v34, %v8240_v34  ;;  %8272 = vst.msk [vmem:[#allocation29 + $0x16] sm:$0x1] %vm8136_vm12, %v8243_v40 }
0x1b93   :  { %8274 = vst.msk [vmem:[#allocation29 + $0x1a] sm:$0x1] %vm8136_vm12, %v8240_v34  ;;  %8275 = vst.msk [vmem:[#allocation29 + $0x1c] sm:$0x1] %vm8136_vm12, %v8242_v0  ;;  %v8191_v45 = vrot.slane %v8163_v42, %v11653_v44  ;;  %v8193_v41 = vcombine.high %v8177_v54, %v8177_v54  ;;  %v8194_v49 = vcombine.high %v8184_v35, %v8184_v35 }
0x1b94   :  { %8262 = vst.msk [vmem:[#allocation29 + $0x2] sm:$0x1] %vm8136_vm12, %v8184_v35  ;;  %8263 = vst.msk [vmem:[#allocation29 + $0x4] sm:$0x1] %vm8136_vm12, %v8192_v27 }
0x1b95   :  { %8265 = vst.msk [vmem:[#allocation29 + $0x8] sm:$0x1] %vm8136_vm12, %v8177_v54  ;;  %8276 = vst.msk [vmem:[#allocation29 + $0x1e] sm:$0x1] %vm8136_vm12, %v8244_v8  ;;  %v8195_v61 = vcombine.high %v8191_v45, %v8191_v45 }
0x1b96   :  { %8264 = vst.msk [vmem:[#allocation29 + $0x6] sm:$0x1] %vm8136_vm12, %v8194_v49  ;;  %8266 = vst.msk [vmem:[#allocation29 + $0xa] sm:$0x1] %vm8136_vm12, %v8191_v45 }
0x1b97   :  { %8267 = vst.msk [vmem:[#allocation29 + $0xc] sm:$0x1] %vm8136_vm12, %v8193_v41  ;;  %8268 = vst.msk [vmem:[#allocation29 + $0xe] sm:$0x1] %vm8136_vm12, %v8195_v61 }
0x1c11   :  { %v9467_v33 = vpop.f32.mrf.mxu1 }
0x1c12   :  { %v7879_v60 = vadd.f32 %v9467_v33, %v11650_v21 }
0x1c13   :  { %v7873_v50 = vpop.f32.mrf.mxu1 }
0x1c14   :  { %v8077_v62 = vadd.f32 %v7879_v60, %v11562_v4  ;;  %v7874_v26 = vadd.f32 %v11650_v21, %v7873_v50 }
0x1c15   :  { %v9478_v53 = vpop.f32.mrf.mxu1 }
0x1c16   :  { %v8394_v30 = vcombine.high %v8077_v62, %v8077_v62  ;;  %v8401_v57 = vrot.slane %v8077_v62, %v11653_v44  ;;  %v8076_v36 = vadd.f32 %v7874_v26, %v11558_v25  ;;  %v7971_v19 = vadd.f32 %v9478_v53, %v8704_v63 }
0x1c17   :  { %v7965_v6 = vpop.f32.mrf.mxu1 }
0x1c18   :  { %v8408_v7 = vrot.slane %v8394_v30, %v11653_v44  ;;  %v8409_v48 = vcombine.high %v8401_v57, %v8401_v57  ;;  %v8417_v20 = vrot.slane %v8401_v57, %v11653_v44  ;;  %v8345_v16 = vcombine.high %v8076_v36, %v8076_v36 }
0x1c19   :  { %v8352_v10 = vrot.slane %v8076_v36, %v11653_v44  ;;  %v7966_v4 = vadd.f32 %v8704_v63, %v7965_v6  ;;  %v7975_v14 = vmax.f32 %v7971_v19, 0.0 }
0x1c1a   :  { %v8410_v13 = vcombine.high %v8408_v7, %v8408_v7  ;;  %v8424_v18 = vrot.slane %v8408_v7, %v11653_v44  ;;  %v8431_v11 = vrot.slane %v8409_v48, %v11653_v44  ;;  %v8439_v21 = vcombine.high %v8417_v20, %v8417_v20  ;;  %8467 = vst.msk [vmem:[#allocation29 + $0x11] sm:$0x1] %vm8136_vm12, %v8417_v20 }
0x1c1b   :  { %v8359_v25 = vrot.slane %v8345_v16, %v11653_v44  ;;  %v8360_v51 = vcombine.high %v8352_v10, %v8352_v10  ;;  %v8368_v56 = vrot.slane %v8352_v10, %v11653_v44  ;;  %v7974_v2 = vmax.f32 %v7966_v4, 0.0 }
0x1c1c   :  { %v8438_v17 = vrot.slane %v8410_v13, %v11653_v44  ;;  %v8440_v52 = vcombine.high %v8424_v18, %v8424_v18  ;;  %v8441_v58 = vcombine.high %v8431_v11, %v8431_v11  ;;  %8468 = vst.msk [vmem:[#allocation29 + $0x13] sm:$0x1] %vm8136_vm12, %v8431_v11  ;;  %8469 = vst.msk [vmem:[#allocation29 + $0x15] sm:$0x1] %vm8136_vm12, %v8439_v21 }
0x1c1d   :  { %8471 = vst.msk [vmem:[#allocation29 + $0x19] sm:$0x1] %vm8136_vm12, %v8424_v18  ;;  %v8361_v23 = vcombine.high %v8359_v25, %v8359_v25  ;;  %v8375_v47 = vrot.slane %v8359_v25, %v11653_v44  ;;  %v8382_v24 = vrot.slane %v8360_v51, %v11653_v44  ;;  %v8390_v15 = vcombine.high %v8368_v56, %v8368_v56 }
0x1c1e   :  { %8459 = vst.msk [vmem:[#allocation29 + $0x1] sm:$0x1] %vm8136_vm12, %v8368_v56  ;;  %9495 = vmatprep.mubr.msk.f32.mxu0 %vm7784_vm11, %v7974_v2  ;;  %v8442_v3 = vcombine.high %v8438_v17, %v8438_v17  ;;  %8470 = vst.msk [vmem:[#allocation29 + $0x17] sm:$0x1] %vm8136_vm12, %v8441_v58 }
0x1c1f   :  { %8472 = vst.msk [vmem:[#allocation29 + $0x1b] sm:$0x1] %vm8136_vm12, %v8438_v17  ;;  %8473 = vst.msk [vmem:[#allocation29 + $0x1d] sm:$0x1] %vm8136_vm12, %v8440_v52  ;;  %9496 = vmatmul.mubr.msk.f32.vlgmr.msra.gmra.mxu0 %vm7784_vm11, %v7975_v14  ;;  %v8389_v22 = vrot.slane %v8361_v23, %v11653_v44  ;;  %v8391_v55 = vcombine.high %v8375_v47, %v8375_v47  ;;  %v8392_v38 = vcombine.high %v8382_v24, %v8382_v24 }
0x1c20   :  { %8460 = vst.msk [vmem:[#allocation29 + $0x3] sm:$0x1] %vm8136_vm12, %v8382_v24  ;;  %8461 = vst.msk [vmem:[#allocation29 + $0x5] sm:$0x1] %vm8136_vm12, %v8390_v15 }
0x1c21   :  { %8463 = vst.msk [vmem:[#allocation29 + $0x9] sm:$0x1] %vm8136_vm12, %v8375_v47  ;;  %8474 = vst.msk [vmem:[#allocation29 + $0x1f] sm:$0x1] %vm8136_vm12, %v8442_v3  ;;  %v8393_v9 = vcombine.high %v8389_v22, %v8389_v22 }
0x1c22   :  { %8462 = vst.msk [vmem:[#allocation29 + $0x7] sm:$0x1] %vm8136_vm12, %v8392_v38  ;;  %8464 = vst.msk [vmem:[#allocation29 + $0xb] sm:$0x1] %vm8136_vm12, %v8389_v22 }
0x1c23   :  { %8465 = vst.msk [vmem:[#allocation29 + $0xd] sm:$0x1] %vm8136_vm12, %v8391_v55  ;;  %8466 = vst.msk [vmem:[#allocation29 + $0xf] sm:$0x1] %vm8136_vm12, %v8393_v9 }
0x1c24   :  { %10050 = shalt.err (!%p10047_p0)
}
0x1c25   :  { %8498 = dma.vmem_to_hbm [thread:$0]  %s8493_s26, 512, %s11806_s25, [#allocation30], %s10111_s17, %s10111_s17, %s10112_s0   ;;  %v8707_v28 = vld [vmem:[#allocation26] ss:$0 sm:$0xff] }
0x1c26   :  { %s10136_s25 = smov [#allocation28]  }
0x1c27   :  { %s8480_s2 = sshll.u32 %s10136_s25, 4  ;;  %s8481_s2 = int_to_ptr.vmem [resolvable:$true] %s8480_s2 }
0x1c28   :  { %s10059_s6 = scalar_lea.vmem %s8481_s2, 256  ;;  %p10064_p2 = scmp.lt.s32.totalorder %s8481_s2, %s8481_s2 }
0x1c29   :  { %p10060_p1 = scmp.ne.s32.totalorder %s8481_s2, %s10059_s6  ;;  %p10065_p3 = scmp.lt.s32.totalorder %s10059_s6, %s10059_s6 }
0x1c2b   :  { %p10066_p4 = por %p10065_p3, %p10064_p2 }
0x1c2d   :  { %p10067_p5 = pnand %p10066_p4, %p10060_p1 }
0x1cdf   :  { %v9497_v29 = vpop.f32.mrf.mxu0 }
0x1ce0   :  { %v8069_v31 = vadd.f32 %v9497_v29, %v8707_v28 }
0x1ce1   :  { %v8063_v32 = vpop.f32.mrf.mxu0 }
0x1ce2   :  { %v8073_v34 = vadd.f32 %v8069_v31, %v11586_v43  ;;  %v8064_v0 = vadd.f32 %v8707_v28, %v8063_v32 }
0x1ce4   :  { %v8278_v40 = vcombine.high %v8073_v34, %v8073_v34  ;;  %v8285_v42 = vrot.slane %v8073_v34, %v11653_v44  ;;  %v8072_v54 = vadd.f32 %v8064_v0, %v11576_v1 }
0x1ce6   :  { %v8292_v35 = vrot.slane %v8278_v40, %v11653_v44  ;;  %v8293_v27 = vcombine.high %v8285_v42, %v8285_v42  ;;  %v8301_v37 = vrot.slane %v8285_v42, %v11653_v44  ;;  %v8079_v8 = vcombine.high %v8072_v54, %v8072_v54 }
0x1ce7   :  { %v8086_v45 = vrot.slane %v8072_v54, %v11653_v44 }
0x1ce8   :  { %v8294_v41 = vcombine.high %v8292_v35, %v8292_v35  ;;  %v8308_v49 = vrot.slane %v8292_v35, %v11653_v44  ;;  %v8315_v59 = vrot.slane %v8293_v27, %v11653_v44  ;;  %v8323_v43 = vcombine.high %v8301_v37, %v8301_v37  ;;  %8335 = vst.msk [vmem:[#allocation28 + $0x1] sm:$0x1] %vm8136_vm12, %v8301_v37 }
0x1ce9   :  { %v8093_v61 = vrot.slane %v8079_v8, %v11653_v44  ;;  %v8094_v12 = vcombine.high %v8086_v45, %v8086_v45  ;;  %v8102_v1 = vrot.slane %v8086_v45, %v11653_v44 }
0x1cea   :  { %v8322_v5 = vrot.slane %v8294_v41, %v11653_v44  ;;  %v8324_v46 = vcombine.high %v8308_v49, %v8308_v49  ;;  %v8325_v39 = vcombine.high %v8315_v59, %v8315_v59  ;;  %8336 = vst.msk [vmem:[#allocation28 + $0x3] sm:$0x1] %vm8136_vm12, %v8315_v59  ;;  %8337 = vst.msk [vmem:[#allocation28 + $0x5] sm:$0x1] %vm8136_vm12, %v8323_v43 }
0x1ceb   :  { %8339 = vst.msk [vmem:[#allocation28 + $0x9] sm:$0x1] %vm8136_vm12, %v8308_v49  ;;  %v8095_v33 = vcombine.high %v8093_v61, %v8093_v61  ;;  %v8109_v60 = vrot.slane %v8093_v61, %v11653_v44  ;;  %v8116_v50 = vrot.slane %v8094_v12, %v11653_v44  ;;  %v8124_v62 = vcombine.high %v8102_v1, %v8102_v1 }
0x1cec   :  { %8137 = vst.msk [vmem:[#allocation28] sm:$0x1] %vm8136_vm12, %v8102_v1  ;;  %v8326_v26 = vcombine.high %v8322_v5, %v8322_v5  ;;  %8338 = vst.msk [vmem:[#allocation28 + $0x7] sm:$0x1] %vm8136_vm12, %v8325_v39 }
0x1ced   :  { %8340 = vst.msk [vmem:[#allocation28 + $0xb] sm:$0x1] %vm8136_vm12, %v8322_v5  ;;  %8341 = vst.msk [vmem:[#allocation28 + $0xd] sm:$0x1] %vm8136_vm12, %v8324_v46  ;;  %v8123_v63 = vrot.slane %v8095_v33, %v11653_v44  ;;  %v8125_v53 = vcombine.high %v8109_v60, %v8109_v60  ;;  %v8126_v30 = vcombine.high %v8116_v50, %v8116_v50 }
0x1cee   :  { %8138 = vst.msk [vmem:[#allocation28 + $0x2] sm:$0x1] %vm8136_vm12, %v8116_v50  ;;  %8139 = vst.msk [vmem:[#allocation28 + $0x4] sm:$0x1] %vm8136_vm12, %v8124_v62 }
0x1cef   :  { %8141 = vst.msk [vmem:[#allocation28 + $0x8] sm:$0x1] %vm8136_vm12, %v8109_v60  ;;  %8342 = vst.msk [vmem:[#allocation28 + $0xf] sm:$0x1] %vm8136_vm12, %v8326_v26  ;;  %v8127_v57 = vcombine.high %v8123_v63, %v8123_v63 }
0x1cf0   :  { %8140 = vst.msk [vmem:[#allocation28 + $0x6] sm:$0x1] %vm8136_vm12, %v8126_v30  ;;  %8142 = vst.msk [vmem:[#allocation28 + $0xa] sm:$0x1] %vm8136_vm12, %v8123_v63 }
0x1cf1   :  { %8143 = vst.msk [vmem:[#allocation28 + $0xc] sm:$0x1] %vm8136_vm12, %v8125_v53  ;;  %8144 = vst.msk [vmem:[#allocation28 + $0xe] sm:$0x1] %vm8136_vm12, %v8127_v57 }
0x1cf2   :  { %10070 = shalt.err (!%p10067_p5)
}
0x1cf3   :  { %8486 = dma.vmem_to_hbm [thread:$0]  %s8481_s2, 256, %s11805_s24, [#allocation4], %s10111_s17, %s10111_s17, %s10112_s0  }
0x1cf4   :  { %10097 = dma.done.wait [#allocation4], 256  }
0x1cf5   :  { %10098 = vsyncadd [#allocation4], 4294967040 }
0x1cf6   :  { %10099 = dma.done.wait [#allocation30], 512  }
0x1cf7   :  { %10100 = vsyncadd [#allocation30], 4294966784 }
0x1cf8   :  { %8505 = vsyncpa [#allocation3], 1 }
0x1cf9   :  { %8506 = vsyncpa [#allocation6], 1 }
0x1cfa   :  { %8507 = vsyncpa [#allocation9], 1 }
0x1cfb   :  { %8508 = vsyncpa [#allocation12], 1 }
0x1cfc   :  { %8509 = vsyncpa [#allocation15], 1 }
0x1cfd   :  { %8510 = vsyncpa [#allocation18], 1 }
0x1cfe   :  { %8511 = vsyncpa [#allocation21], 1 }
0x1cff   :  { %8512 = vsyncpa [#allocation24], 1 }
0x1d00   :  { %8513 = vsyncpa [#allocation27], 1 }
0x1d01   :  { %8514 = vsyncpa [#allocation4], 1 }
0x1d02   :  { %8515 = vsyncpa [#allocation30], 1 }

</bundles_post_ra>
